<compile_context>
chip_gen: v5e
topology: v5e:2x2
jax: 0.10.0
libtpu: 0.0.40
codegen_flags: <defaults>
</compile_context>

<pallas_src>
import functools

import jax
import jax.numpy as jnp
from jax import lax
from jax.experimental import pallas as pl
from jax.experimental.pallas import tpu as pltpu

# ----------------------------- configuration --------------------------------
# FullModel(device, image_shape, vocabulary):
#   embedding_size  E = image_shape[0]
#   hidden_size     H = image_shape[0] + image_shape[1]
#   vocab_size      V = len(vocabulary)
IMAGE_SHAPE = (32, 32)          # -> E = 32, H = 64
EMB = IMAGE_SHAPE[0]
HID = IMAGE_SHAPE[0] + IMAGE_SHAPE[1]
VOCAB = 40
RESNET_FEAT = 2048              # resnet152 fc.in_features
BN_EPS = 1e-5

B_PAD = 8                       # full f32 sublane
CHAN_PAD = 8                    # image channels 3 -> 8 (contraction padding)
H_PAD = 128                     # per-gate lane width (H=64 zero-padded)
V_PAD = 128                     # vocab lane width (V=40 zero-padded)

VMEM_SPEC = pl.BlockSpec(memory_space=pltpu.MemorySpace.VMEM)


def _pick_gate_dtype():
    """bf16 sigmoid/tanh halves EUP pushes on v6e/v7x; v5e has no bf16 VPU/EUP."""
    try:
        kind = jax.devices()[0].device_kind.lower()
    except Exception:
        return jnp.float32
    return jnp.bfloat16 if ("v6" in kind or "v7" in kind) else jnp.float32


GATE_DTYPE = _pick_gate_dtype()


# ----------------------------- fused Pallas kernel ---------------------------
def fused_kernel(pooled_ref, stem_w_ref, enc_w_ref, enc_b_ref, gamma_ref,
                 beta_ref, emb_ref, wih_ref, whh_ref, lstm_b_ref, out_w_ref,
                 out_b_ref, logits_ref, gates_ref, *, b_real, t_steps):
    """Encoder (Linear+BN) -> LSTM -> output Linear, all in one kernel.

    pooled_ref : (B_PAD, CHAN_PAD)        bf16  global-avg-pooled image
    stem_w_ref : (CHAN_PAD, 2048)         bf16  stand-in resnet projection
    enc_w_ref  : (2048, E)                bf16
    emb_ref    : (T_cap*B_PAD, E)         bf16  time-major flattened embeddings
    wih_ref    : (E, 4*H_PAD)             bf16  gate order i,f,g,o, zero-padded
    whh_ref    : (H_PAD, 4*H_PAD)         bf16
    out_w_ref  : (H_PAD, V_PAD)           bf16
    logits_ref : (T*B_PAD, V_PAD)         f32   logits for every (t, b) slot
    gates_ref  : (T*B_PAD, 4*H_PAD)       f32   VMEM scratch (hoisted x @ W_ih)
    """
    b_pad = pooled_ref.shape[0]
    h_pad = whh_ref.shape[0]

    # ---------------- CNN encoder ----------------
    # TODO(synk): resnet152 pretrained backbone has no in-script equivalent;
    # approximated by global-average-pool (wrapper) + fixed 3->2048 projection.
    feats2048 = jax.nn.relu(
        jnp.dot(pooled_ref[...], stem_w_ref[...],
                preferred_element_type=jnp.float32))               # (B_PAD, 2048)
    lin = jnp.dot(feats2048.astype(jnp.bfloat16), enc_w_ref[...],
                  preferred_element_type=jnp.float32) + enc_b_ref[...]  # (B_PAD, E)

    # BatchNorm1d (training mode): biased batch statistics over the REAL rows
    # only (padded batch rows are masked out of the stats).
    mask = (lax.broadcasted_iota(jnp.int32, lin.shape, 0) < b_real
            ).astype(jnp.float32)
    inv_n = 1.0 / float(b_real)
    mean = jnp.sum(lin * mask, axis=0, keepdims=True) * inv_n
    var = jnp.sum(jnp.square(lin - mean) * mask, axis=0, keepdims=True) * inv_n
    feats = gamma_ref[...] * (lin - mean) * lax.rsqrt(var + BN_EPS) \
        + beta_ref[...]                                            # (B_PAD, E) f32

    # -------- LSTM input projection, hoisted out of the recurrence ----------
    # No sublane concat: feats (step 0) and the embeddings (steps 1..T-1) get
    # their own matmuls, written straight into the VMEM gates scratch.
    gates_ref[pl.ds(0, b_pad), :] = jnp.dot(
        feats.astype(jnp.bfloat16), wih_ref[...],
        preferred_element_type=jnp.float32) + lstm_b_ref[...]
    gates_ref[pl.ds(b_pad, (t_steps - 1) * b_pad), :] = jnp.dot(
        emb_ref[...], wih_ref[...],
        preferred_element_type=jnp.float32) + lstm_b_ref[...]

    def _sig(x):
        return jax.nn.sigmoid(x.astype(GATE_DTYPE)).astype(jnp.float32)

    def _tanh(x):
        return jnp.tanh(x.astype(GATE_DTYPE)).astype(jnp.float32)

    # ---------------- LSTM recurrence (static unroll, T small) ---------------
    # W_hh / out_w are re-read from VMEM inside every step (cheap vld slots)
    # instead of being held live in vregs across the whole unrolled loop.
    h = jnp.zeros((b_pad, h_pad), jnp.float32)
    c = jnp.zeros((b_pad, h_pad), jnp.float32)
    for t in range(t_steps):
        g = gates_ref[pl.ds(t * b_pad, b_pad), :] + jnp.dot(
            h.astype(jnp.bfloat16), whh_ref[...],
            preferred_element_type=jnp.float32)                    # (B_PAD, 4*H_PAD)
        i_g = _sig(g[:, 0 * h_pad:1 * h_pad])                      # lane-aligned
        f_g = _sig(g[:, 1 * h_pad:2 * h_pad])
        g_g = _tanh(g[:, 2 * h_pad:3 * h_pad])
        o_g = _sig(g[:, 3 * h_pad:4 * h_pad])
        c = f_g * c + i_g * g_g
        h = o_g * jnp.tanh(c)
        # Per-step output head: the MXU push + (8,128)-aligned store hide under
        # the next step's sigmoid/tanh (EUP) latency.
        logits_ref[pl.ds(t * b_pad, b_pad), :] = jnp.dot(
            h.astype(jnp.bfloat16), out_w_ref[...],
            preferred_element_type=jnp.float32) + out_b_ref[...]


# ----------------------------- parameters ------------------------------------
def init_params(key):
    ks = jax.random.split(key, 8)
    p = {}
    # Encoder: stand-in resnet projection + Linear + BatchNorm1d
    stem_w = jax.random.normal(ks[0], (3, RESNET_FEAT), jnp.float32) * 0.1
    p["stem_w"] = jnp.pad(stem_w, ((0, CHAN_PAD - 3), (0, 0))
                          ).astype(jnp.bfloat16)                   # (8, 2048) bf16
    p["enc_w"] = (jax.random.normal(ks[1], (RESNET_FEAT, EMB), jnp.float32)
                  * (RESNET_FEAT ** -0.5)).astype(jnp.bfloat16)
    p["enc_b"] = jnp.zeros((1, EMB), jnp.float32)
    p["bn_gamma"] = jnp.ones((1, EMB), jnp.float32)
    p["bn_beta"] = jnp.zeros((1, EMB), jnp.float32)
    # Decoder: embedding, LSTM (gate order i,f,g,o), output linear
    p["emb_table"] = jax.random.normal(ks[2], (VOCAB, EMB), jnp.float32) * 0.1
    scale = HID ** -0.5
    w_ih = jax.random.uniform(ks[3], (EMB, 4, HID), jnp.float32, -scale, scale)
    w_hh = jax.random.uniform(ks[4], (HID, 4, HID), jnp.float32, -scale, scale)
    b_g = jax.random.uniform(ks[5], (1, 4, HID), jnp.float32, -scale, scale)
    # Pad every gate block H -> H_PAD (zero cols) so each gate slice is a full
    # 128-lane tile; pad W_hh input rows H -> H_PAD to match the padded h.
    # (Zero padding keeps the padded h/c lanes identically zero through time.)
    p["w_ih"] = jnp.pad(w_ih, ((0, 0), (0, 0), (0, H_PAD - HID))
                        ).reshape(EMB, 4 * H_PAD).astype(jnp.bfloat16)
    w_hh_p = jnp.pad(w_hh, ((0, 0), (0, 0), (0, H_PAD - HID))
                     ).reshape(HID, 4 * H_PAD)
    p["w_hh"] = jnp.pad(w_hh_p, ((0, H_PAD - HID), (0, 0))).astype(jnp.bfloat16)
    # TODO(synk): PyTorch draws b_ih and b_hh independently and sums them; a
    # single uniform draw is used here for the random-init stand-in.
    p["lstm_b"] = jnp.pad(b_g, ((0, 0), (0, 0), (0, H_PAD - HID))
                          ).reshape(1, 4 * H_PAD)
    out_w = jax.random.uniform(ks[6], (HID, VOCAB), jnp.float32, -scale, scale)
    p["out_w"] = jnp.pad(out_w, ((0, H_PAD - HID), (0, V_PAD - VOCAB))
                         ).astype(jnp.bfloat16)
    out_b = jax.random.uniform(ks[7], (1, VOCAB), jnp.float32, -scale, scale)
    p["out_b"] = jnp.pad(out_b, ((0, 0), (0, V_PAD - VOCAB)))
    return p


# ----------------------------- forward pass -----------------------------------
def full_model_forward(params, images, captions, pack_idx):
    b = images.shape[0]
    t_cap = captions.shape[1]
    t_steps = t_cap + 1

    # Stem of the CNN encoder (stand-in for the resnet152 backbone): global
    # average pool; batch / channel padded, cast bf16 for the MXU.
    pooled = jnp.mean(images, axis=(2, 3))                          # (B, 3)
    pooled = jnp.pad(pooled, ((0, B_PAD - b), (0, CHAN_PAD - 3))
                     ).astype(jnp.bfloat16)                         # (B_PAD, 8)

    # Embedding lookup (tiny gather, stays in XLA); time-major & flattened,
    # pre-cast bf16 so the kernel's hoisted (T*B, E) x (E, 4H) matmul needs no
    # in-kernel cast and the DMA is half-size.
    emb = jnp.take(params["emb_table"], captions, axis=0)           # (B, T_cap, E)
    emb = jnp.pad(emb, ((0, B_PAD - b), (0, 0), (0, 0)))            # (B_PAD, T_cap, E)
    emb_flat = jnp.transpose(emb, (1, 0, 2)).reshape(
        t_cap * B_PAD, EMB).astype(jnp.bfloat16)

    kern = functools.partial(fused_kernel, b_real=b, t_steps=t_steps)
    logits_full = pl.pallas_call(
        kern,
        out_shape=jax.ShapeDtypeStruct((t_steps * B_PAD, V_PAD), jnp.float32),
        in_specs=[VMEM_SPEC] * 12,
        out_specs=VMEM_SPEC,
        scratch_shapes=[pltpu.VMEM((t_steps * B_PAD, 4 * H_PAD), jnp.float32)],
    )(pooled, params["stem_w"], params["enc_w"], params["enc_b"],
      params["bn_gamma"], params["bn_beta"], emb_flat,
      params["w_ih"], params["w_hh"], params["lstm_b"],
      params["out_w"], params["out_b"])                             # (T*B_PAD, V_PAD)

    # pack_padded_sequence data ordering + strip vocab padding.
    packed = jnp.take(logits_full, pack_idx, axis=0)[:, :VOCAB]     # (N, V)
    return packed


def make_pack_indices(lens, batch_stride, max_t):
    """Flat (t*batch_stride + b) indices in pack_padded_sequence data order."""
    idx = []
    for t in range(max_t):
        for bi, ln in enumerate(lens):
            if ln > t:
                idx.append(t * batch_stride + bi)
    return jnp.asarray(idx, dtype=jnp.int32)


# ----------------------------- main -------------------------------------------
if __name__ == "__main__":
    key = jax.random.PRNGKey(0)
    k_img, k_cap, k_param = jax.random.split(key, 3)

    B = 4
    images = jax.random.normal(k_img, (B, 3, 16, 16), jnp.float32)   # NCHW
    captions = jax.random.randint(k_cap, (B, 7), 0, VOCAB, jnp.int32)
    lens = [8, 7, 6, 5]            # sorted descending, as pack_padded requires
    pack_idx = make_pack_indices(lens, B_PAD, captions.shape[1] + 1)

    params = init_params(k_param)

    fwd = jax.jit(functools.partial(full_model_forward, params))
    logits = fwd(images, captions, pack_idx)
    jax.block_until_ready(logits)

    assert logits.shape == (sum(lens), VOCAB), logits.shape
    assert jnp.all(jnp.isfinite(logits))
    print("KERNEL_OK")
</pallas_src>

<mosaic_0001>
module attributes {stable_mosaic.version = 11 : i64} {
  func.func @fused_kernel(%arg0: memref<8x8xbf16, #tpu.memory_space<vmem>>, %arg1: memref<8x2048xbf16, #tpu.memory_space<vmem>>, %arg2: memref<2048x32xbf16, #tpu.memory_space<vmem>>, %arg3: memref<1x32xf32, #tpu.memory_space<vmem>>, %arg4: memref<1x32xf32, #tpu.memory_space<vmem>>, %arg5: memref<1x32xf32, #tpu.memory_space<vmem>>, %arg6: memref<56x32xbf16, #tpu.memory_space<vmem>>, %arg7: memref<32x512xbf16, #tpu.memory_space<vmem>>, %arg8: memref<128x512xbf16, #tpu.memory_space<vmem>>, %arg9: memref<1x512xf32, #tpu.memory_space<vmem>>, %arg10: memref<128x128xbf16, #tpu.memory_space<vmem>>, %arg11: memref<1x128xf32, #tpu.memory_space<vmem>>, %arg12: memref<64x128xf32, #tpu.memory_space<vmem>>, %arg13: memref<64x512xf32, #tpu.memory_space<vmem>>) attributes {dimension_semantics = [], scalar_prefetch = 0 : i64, scratch_operands = 1 : i64, tpu.core_type = #tpu.core_type<tc>} {
    %c0 = arith.constant 0 : index
    %c0_0 = arith.constant 0 : index
    %0 = vector.load %arg0[%c0, %c0_0] : memref<8x8xbf16, #tpu.memory_space<vmem>>, vector<8x8xbf16>
    %c0_1 = arith.constant 0 : index
    %c0_2 = arith.constant 0 : index
    %1 = vector.load %arg1[%c0_1, %c0_2] : memref<8x2048xbf16, #tpu.memory_space<vmem>>, vector<8x2048xbf16>
    %cst = arith.constant dense<0.000000e+00> : vector<8x2048xf32>
    %2 = tpu.matmul %0, %1, %cst {dimension_numbers = #tpu.dot_dimension_numbers<[1], [0], [0], [1], [0, 0, 1, 1], [], []>} : vector<8x8xbf16>, vector<8x2048xbf16>, vector<8x2048xf32> -> vector<8x2048xf32>
    %cst_3 = arith.constant 0.000000e+00 : f32
    %3 = vector.broadcast %cst_3 : f32 to vector<8x2048xf32>
    %4 = arith.maximumf %2, %3 : vector<8x2048xf32>
    %5 = arith.truncf %4 : vector<8x2048xf32> to vector<8x2048xbf16>
    %c0_4 = arith.constant 0 : index
    %c0_5 = arith.constant 0 : index
    %6 = vector.load %arg2[%c0_4, %c0_5] : memref<2048x32xbf16, #tpu.memory_space<vmem>>, vector<2048x32xbf16>
    %cst_6 = arith.constant dense<0.000000e+00> : vector<8x32xf32>
    %7 = tpu.matmul %5, %6, %cst_6 {dimension_numbers = #tpu.dot_dimension_numbers<[1], [0], [0], [1], [0, 0, 1, 1], [], []>} : vector<8x2048xbf16>, vector<2048x32xbf16>, vector<8x32xf32> -> vector<8x32xf32>
    %c0_7 = arith.constant 0 : index
    %c0_8 = arith.constant 0 : index
    %8 = vector.load %arg3[%c0_7, %c0_8] : memref<1x32xf32, #tpu.memory_space<vmem>>, vector<1x32xf32>
    %9 = vector.broadcast %8 : vector<1x32xf32> to vector<8x32xf32>
    %10 = arith.addf %7, %9 : vector<8x32xf32>
    %11 = tpu.iota {dimensions = array<i32: 0>} : vector<8x32xi32>
    %c4_i32 = arith.constant 4 : i32
    %12 = vector.broadcast %c4_i32 : i32 to vector<8x32xi32>
    %13 = arith.cmpi slt, %11, %12 : vector<8x32xi32>
    %14 = arith.extui %13 : vector<8x32xi1> to vector<8x32xi32>
    %15 = arith.sitofp %14 : vector<8x32xi32> to vector<8x32xf32>
    %16 = arith.mulf %10, %15 : vector<8x32xf32>
    %cst_9 = arith.constant dense<0.000000e+00> : vector<32xf32>
    %17 = vector.multi_reduction <add>, %16, %cst_9 [0] : vector<8x32xf32> to vector<32xf32>
    %18 = vector.shape_cast %17 : vector<32xf32> to vector<1x32xf32>
    %cst_10 = arith.constant 2.500000e-01 : f32
    %19 = vector.broadcast %cst_10 : f32 to vector<1x32xf32>
    %20 = arith.mulf %18, %19 : vector<1x32xf32>
    %21 = vector.broadcast %20 : vector<1x32xf32> to vector<8x32xf32>
    %22 = arith.subf %10, %21 : vector<8x32xf32>
    %23 = arith.mulf %22, %22 : vector<8x32xf32>
    %24 = arith.mulf %23, %15 : vector<8x32xf32>
    %cst_11 = arith.constant dense<0.000000e+00> : vector<32xf32>
    %25 = vector.multi_reduction <add>, %24, %cst_11 [0] : vector<8x32xf32> to vector<32xf32>
    %26 = vector.shape_cast %25 : vector<32xf32> to vector<1x32xf32>
    %cst_12 = arith.constant 2.500000e-01 : f32
    %27 = vector.broadcast %cst_12 : f32 to vector<1x32xf32>
    %28 = arith.mulf %26, %27 : vector<1x32xf32>
    %c0_13 = arith.constant 0 : index
    %c0_14 = arith.constant 0 : index
    %29 = vector.load %arg4[%c0_13, %c0_14] : memref<1x32xf32, #tpu.memory_space<vmem>>, vector<1x32xf32>
    %30 = vector.broadcast %20 : vector<1x32xf32> to vector<8x32xf32>
    %31 = arith.subf %10, %30 : vector<8x32xf32>
    %32 = vector.broadcast %29 : vector<1x32xf32> to vector<8x32xf32>
    %33 = arith.mulf %32, %31 : vector<8x32xf32>
    %cst_15 = arith.constant 9.99999974E-6 : f32
    %34 = vector.broadcast %cst_15 : f32 to vector<1x32xf32>
    %35 = arith.addf %28, %34 : vector<1x32xf32>
    %36 = math.rsqrt %35 : vector<1x32xf32>
    %37 = vector.broadcast %36 : vector<1x32xf32> to vector<8x32xf32>
    %38 = arith.mulf %33, %37 : vector<8x32xf32>
    %c0_16 = arith.constant 0 : index
    %c0_17 = arith.constant 0 : index
    %39 = vector.load %arg5[%c0_16, %c0_17] : memref<1x32xf32, #tpu.memory_space<vmem>>, vector<1x32xf32>
    %40 = vector.broadcast %39 : vector<1x32xf32> to vector<8x32xf32>
    %41 = arith.addf %38, %40 : vector<8x32xf32>
    %42 = arith.truncf %41 : vector<8x32xf32> to vector<8x32xbf16>
    %c0_18 = arith.constant 0 : index
    %c0_19 = arith.constant 0 : index
    %43 = vector.load %arg7[%c0_18, %c0_19] : memref<32x512xbf16, #tpu.memory_space<vmem>>, vector<32x512xbf16>
    %cst_20 = arith.constant dense<0.000000e+00> : vector<8x512xf32>
    %44 = tpu.matmul %42, %43, %cst_20 {dimension_numbers = #tpu.dot_dimension_numbers<[1], [0], [0], [1], [0, 0, 1, 1], [], []>} : vector<8x32xbf16>, vector<32x512xbf16>, vector<8x512xf32> -> vector<8x512xf32>
    %c0_21 = arith.constant 0 : index
    %c0_22 = arith.constant 0 : index
    %45 = vector.load %arg9[%c0_21, %c0_22] : memref<1x512xf32, #tpu.memory_space<vmem>>, vector<1x512xf32>
    %46 = vector.broadcast %45 : vector<1x512xf32> to vector<8x512xf32>
    %47 = arith.addf %44, %46 : vector<8x512xf32>
    %c0_23 = arith.constant 0 : index
    %c0_24 = arith.constant 0 : index
    %48 = vector.load %arg13[%c0_23, %c0_24] : memref<64x512xf32, #tpu.memory_space<vmem>>, vector<8x512xf32>
    tpu.vector_store %arg13[%c0_23, %c0_24], %47 {strides = array<i32>} : memref<64x512xf32, #tpu.memory_space<vmem>>, vector<8x512xf32>,
    %c0_25 = arith.constant 0 : index
    %c0_26 = arith.constant 0 : index
    %49 = vector.load %arg6[%c0_25, %c0_26] : memref<56x32xbf16, #tpu.memory_space<vmem>>, vector<56x32xbf16>
    %c0_27 = arith.constant 0 : index
    %c0_28 = arith.constant 0 : index
    %50 = vector.load %arg7[%c0_27, %c0_28] : memref<32x512xbf16, #tpu.memory_space<vmem>>, vector<32x512xbf16>
    %cst_29 = arith.constant dense<0.000000e+00> : vector<56x512xf32>
    %51 = tpu.matmul %49, %50, %cst_29 {dimension_numbers = #tpu.dot_dimension_numbers<[1], [0], [0], [1], [0, 0, 1, 1], [], []>} : vector<56x32xbf16>, vector<32x512xbf16>, vector<56x512xf32> -> vector<56x512xf32>
    %c0_30 = arith.constant 0 : index
    %c0_31 = arith.constant 0 : index
    %52 = vector.load %arg9[%c0_30, %c0_31] : memref<1x512xf32, #tpu.memory_space<vmem>>, vector<1x512xf32>
    %53 = vector.broadcast %52 : vector<1x512xf32> to vector<56x512xf32>
    %54 = arith.addf %51, %53 : vector<56x512xf32>
    %c8 = arith.constant 8 : index
    %c0_32 = arith.constant 0 : index
    %55 = vector.load %arg13[%c8, %c0_32] : memref<64x512xf32, #tpu.memory_space<vmem>>, vector<56x512xf32>
    tpu.vector_store %arg13[%c8, %c0_32], %54 {strides = array<i32>} : memref<64x512xf32, #tpu.memory_space<vmem>>, vector<56x512xf32>,
    %cst_33 = arith.constant 0.000000e+00 : f32
    %56 = vector.broadcast %cst_33 : f32 to vector<8x128xf32>
    %cst_34 = arith.constant 0.000000e+00 : f32
    %57 = vector.broadcast %cst_34 : f32 to vector<8x128xf32>
    %c0_35 = arith.constant 0 : index
    %c0_36 = arith.constant 0 : index
    %58 = vector.load %arg13[%c0_35, %c0_36] : memref<64x512xf32, #tpu.memory_space<vmem>>, vector<8x512xf32>
    %59 = arith.truncf %56 : vector<8x128xf32> to vector<8x128xbf16>
    %c0_37 = arith.constant 0 : index
    %c0_38 = arith.constant 0 : index
    %60 = vector.load %arg8[%c0_37, %c0_38] : memref<128x512xbf16, #tpu.memory_space<vmem>>, vector<128x512xbf16>
    %cst_39 = arith.constant dense<0.000000e+00> : vector<8x512xf32>
    %61 = tpu.matmul %59, %60, %cst_39 {dimension_numbers = #tpu.dot_dimension_numbers<[1], [0], [0], [1], [0, 0, 1, 1], [], []>} : vector<8x128xbf16>, vector<128x512xbf16>, vector<8x512xf32> -> vector<8x512xf32>
    %62 = arith.addf %58, %61 : vector<8x512xf32>
    %63 = vector.extract_strided_slice %62 {offsets = [0, 0], sizes = [8, 128], strides = [1, 1]} : vector<8x512xf32> to vector<8x128xf32>
    %64 = arith.negf %63 : vector<8x128xf32>
    %65 = math.exp %64 : vector<8x128xf32>
    %cst_40 = arith.constant 1.000000e+00 : f32
    %66 = vector.broadcast %cst_40 : f32 to vector<8x128xf32>
    %67 = arith.addf %66, %65 : vector<8x128xf32>
    %68 = arith.divf %66, %67 : vector<8x128xf32>
    %69 = vector.extract_strided_slice %62 {offsets = [0, 128], sizes = [8, 128], strides = [1, 1]} : vector<8x512xf32> to vector<8x128xf32>
    %70 = arith.negf %69 : vector<8x128xf32>
    %71 = math.exp %70 : vector<8x128xf32>
    %cst_41 = arith.constant 1.000000e+00 : f32
    %72 = vector.broadcast %cst_41 : f32 to vector<8x128xf32>
    %73 = arith.addf %72, %71 : vector<8x128xf32>
    %74 = arith.divf %72, %73 : vector<8x128xf32>
    %75 = vector.extract_strided_slice %62 {offsets = [0, 256], sizes = [8, 128], strides = [1, 1]} : vector<8x512xf32> to vector<8x128xf32>
    %76 = math.tanh %75 : vector<8x128xf32>
    %77 = vector.extract_strided_slice %62 {offsets = [0, 384], sizes = [8, 128], strides = [1, 1]} : vector<8x512xf32> to vector<8x128xf32>
    %78 = arith.negf %77 : vector<8x128xf32>
    %79 = math.exp %78 : vector<8x128xf32>
    %cst_42 = arith.constant 1.000000e+00 : f32
    %80 = vector.broadcast %cst_42 : f32 to vector<8x128xf32>
    %81 = arith.addf %80, %79 : vector<8x128xf32>
    %82 = arith.divf %80, %81 : vector<8x128xf32>
    %83 = arith.mulf %74, %57 : vector<8x128xf32>
    %84 = arith.mulf %68, %76 : vector<8x128xf32>
    %85 = arith.addf %83, %84 : vector<8x128xf32>
    %86 = math.tanh %85 : vector<8x128xf32>
    %87 = arith.mulf %82, %86 : vector<8x128xf32>
    %88 = arith.truncf %87 : vector<8x128xf32> to vector<8x128xbf16>
    %c0_43 = arith.constant 0 : index
    %c0_44 = arith.constant 0 : index
    %89 = vector.load %arg10[%c0_43, %c0_44] : memref<128x128xbf16, #tpu.memory_space<vmem>>, vector<128x128xbf16>
    %cst_45 = arith.constant dense<0.000000e+00> : vector<8x128xf32>
    %90 = tpu.matmul %88, %89, %cst_45 {dimension_numbers = #tpu.dot_dimension_numbers<[1], [0], [0], [1], [0, 0, 1, 1], [], []>} : vector<8x128xbf16>, vector<128x128xbf16>, vector<8x128xf32> -> vector<8x128xf32>
    %c0_46 = arith.constant 0 : index
    %c0_47 = arith.constant 0 : index
    %91 = vector.load %arg11[%c0_46, %c0_47] : memref<1x128xf32, #tpu.memory_space<vmem>>, vector<1x128xf32>
    %92 = vector.broadcast %91 : vector<1x128xf32> to vector<8x128xf32>
    %93 = arith.addf %90, %92 : vector<8x128xf32>
    %c0_48 = arith.constant 0 : index
    %c0_49 = arith.constant 0 : index
    %94 = vector.load %arg12[%c0_48, %c0_49] : memref<64x128xf32, #tpu.memory_space<vmem>>, vector<8x128xf32>
    tpu.vector_store %arg12[%c0_48, %c0_49], %93 {strides = array<i32>} : memref<64x128xf32, #tpu.memory_space<vmem>>, vector<8x128xf32>,
    %c8_50 = arith.constant 8 : index
    %c0_51 = arith.constant 0 : index
    %95 = vector.load %arg13[%c8_50, %c0_51] : memref<64x512xf32, #tpu.memory_space<vmem>>, vector<8x512xf32>
    %96 = arith.truncf %87 : vector<8x128xf32> to vector<8x128xbf16>
    %c0_52 = arith.constant 0 : index
    %c0_53 = arith.constant 0 : index
    %97 = vector.load %arg8[%c0_52, %c0_53] : memref<128x512xbf16, #tpu.memory_space<vmem>>, vector<128x512xbf16>
    %cst_54 = arith.constant dense<0.000000e+00> : vector<8x512xf32>
    %98 = tpu.matmul %96, %97, %cst_54 {dimension_numbers = #tpu.dot_dimension_numbers<[1], [0], [0], [1], [0, 0, 1, 1], [], []>} : vector<8x128xbf16>, vector<128x512xbf16>, vector<8x512xf32> -> vector<8x512xf32>
    %99 = arith.addf %95, %98 : vector<8x512xf32>
    %100 = vector.extract_strided_slice %99 {offsets = [0, 0], sizes = [8, 128], strides = [1, 1]} : vector<8x512xf32> to vector<8x128xf32>
    %101 = arith.negf %100 : vector<8x128xf32>
    %102 = math.exp %101 : vector<8x128xf32>
    %cst_55 = arith.constant 1.000000e+00 : f32
    %103 = vector.broadcast %cst_55 : f32 to vector<8x128xf32>
    %104 = arith.addf %103, %102 : vector<8x128xf32>
    %105 = arith.divf %103, %104 : vector<8x128xf32>
    %106 = vector.extract_strided_slice %99 {offsets = [0, 128], sizes = [8, 128], strides = [1, 1]} : vector<8x512xf32> to vector<8x128xf32>
    %107 = arith.negf %106 : vector<8x128xf32>
    %108 = math.exp %107 : vector<8x128xf32>
    %cst_56 = arith.constant 1.000000e+00 : f32
    %109 = vector.broadcast %cst_56 : f32 to vector<8x128xf32>
    %110 = arith.addf %109, %108 : vector<8x128xf32>
    %111 = arith.divf %109, %110 : vector<8x128xf32>
    %112 = vector.extract_strided_slice %99 {offsets = [0, 256], sizes = [8, 128], strides = [1, 1]} : vector<8x512xf32> to vector<8x128xf32>
    %113 = math.tanh %112 : vector<8x128xf32>
    %114 = vector.extract_strided_slice %99 {offsets = [0, 384], sizes = [8, 128], strides = [1, 1]} : vector<8x512xf32> to vector<8x128xf32>
    %115 = arith.negf %114 : vector<8x128xf32>
    %116 = math.exp %115 : vector<8x128xf32>
    %cst_57 = arith.constant 1.000000e+00 : f32
    %117 = vector.broadcast %cst_57 : f32 to vector<8x128xf32>
    %118 = arith.addf %117, %116 : vector<8x128xf32>
    %119 = arith.divf %117, %118 : vector<8x128xf32>
    %120 = arith.mulf %111, %85 : vector<8x128xf32>
    %121 = arith.mulf %105, %113 : vector<8x128xf32>
    %122 = arith.addf %120, %121 : vector<8x128xf32>
    %123 = math.tanh %122 : vector<8x128xf32>
    %124 = arith.mulf %119, %123 : vector<8x128xf32>
    %125 = arith.truncf %124 : vector<8x128xf32> to vector<8x128xbf16>
    %c0_58 = arith.constant 0 : index
    %c0_59 = arith.constant 0 : index
    %126 = vector.load %arg10[%c0_58, %c0_59] : memref<128x128xbf16, #tpu.memory_space<vmem>>, vector<128x128xbf16>
    %cst_60 = arith.constant dense<0.000000e+00> : vector<8x128xf32>
    %127 = tpu.matmul %125, %126, %cst_60 {dimension_numbers = #tpu.dot_dimension_numbers<[1], [0], [0], [1], [0, 0, 1, 1], [], []>} : vector<8x128xbf16>, vector<128x128xbf16>, vector<8x128xf32> -> vector<8x128xf32>
    %c0_61 = arith.constant 0 : index
    %c0_62 = arith.constant 0 : index
    %128 = vector.load %arg11[%c0_61, %c0_62] : memref<1x128xf32, #tpu.memory_space<vmem>>, vector<1x128xf32>
    %129 = vector.broadcast %128 : vector<1x128xf32> to vector<8x128xf32>
    %130 = arith.addf %127, %129 : vector<8x128xf32>
    %c8_63 = arith.constant 8 : index
    %c0_64 = arith.constant 0 : index
    %131 = vector.load %arg12[%c8_63, %c0_64] : memref<64x128xf32, #tpu.memory_space<vmem>>, vector<8x128xf32>
    tpu.vector_store %arg12[%c8_63, %c0_64], %130 {strides = array<i32>} : memref<64x128xf32, #tpu.memory_space<vmem>>, vector<8x128xf32>,
    %c16 = arith.constant 16 : index
    %c0_65 = arith.constant 0 : index
    %132 = vector.load %arg13[%c16, %c0_65] : memref<64x512xf32, #tpu.memory_space<vmem>>, vector<8x512xf32>
    %133 = arith.truncf %124 : vector<8x128xf32> to vector<8x128xbf16>
    %c0_66 = arith.constant 0 : index
    %c0_67 = arith.constant 0 : index
    %134 = vector.load %arg8[%c0_66, %c0_67] : memref<128x512xbf16, #tpu.memory_space<vmem>>, vector<128x512xbf16>
    %cst_68 = arith.constant dense<0.000000e+00> : vector<8x512xf32>
    %135 = tpu.matmul %133, %134, %cst_68 {dimension_numbers = #tpu.dot_dimension_numbers<[1], [0], [0], [1], [0, 0, 1, 1], [], []>} : vector<8x128xbf16>, vector<128x512xbf16>, vector<8x512xf32> -> vector<8x512xf32>
    %136 = arith.addf %132, %135 : vector<8x512xf32>
    %137 = vector.extract_strided_slice %136 {offsets = [0, 0], sizes = [8, 128], strides = [1, 1]} : vector<8x512xf32> to vector<8x128xf32>
    %138 = arith.negf %137 : vector<8x128xf32>
    %139 = math.exp %138 : vector<8x128xf32>
    %cst_69 = arith.constant 1.000000e+00 : f32
    %140 = vector.broadcast %cst_69 : f32 to vector<8x128xf32>
    %141 = arith.addf %140, %139 : vector<8x128xf32>
    %142 = arith.divf %140, %141 : vector<8x128xf32>
    %143 = vector.extract_strided_slice %136 {offsets = [0, 128], sizes = [8, 128], strides = [1, 1]} : vector<8x512xf32> to vector<8x128xf32>
    %144 = arith.negf %143 : vector<8x128xf32>
    %145 = math.exp %144 : vector<8x128xf32>
    %cst_70 = arith.constant 1.000000e+00 : f32
    %146 = vector.broadcast %cst_70 : f32 to vector<8x128xf32>
    %147 = arith.addf %146, %145 : vector<8x128xf32>
    %148 = arith.divf %146, %147 : vector<8x128xf32>
    %149 = vector.extract_strided_slice %136 {offsets = [0, 256], sizes = [8, 128], strides = [1, 1]} : vector<8x512xf32> to vector<8x128xf32>
    %150 = math.tanh %149 : vector<8x128xf32>
    %151 = vector.extract_strided_slice %136 {offsets = [0, 384], sizes = [8, 128], strides = [1, 1]} : vector<8x512xf32> to vector<8x128xf32>
    %152 = arith.negf %151 : vector<8x128xf32>
    %153 = math.exp %152 : vector<8x128xf32>
    %cst_71 = arith.constant 1.000000e+00 : f32
    %154 = vector.broadcast %cst_71 : f32 to vector<8x128xf32>
    %155 = arith.addf %154, %153 : vector<8x128xf32>
    %156 = arith.divf %154, %155 : vector<8x128xf32>
    %157 = arith.mulf %148, %122 : vector<8x128xf32>
    %158 = arith.mulf %142, %150 : vector<8x128xf32>
    %159 = arith.addf %157, %158 : vector<8x128xf32>
    %160 = math.tanh %159 : vector<8x128xf32>
    %161 = arith.mulf %156, %160 : vector<8x128xf32>
    %162 = arith.truncf %161 : vector<8x128xf32> to vector<8x128xbf16>
    %c0_72 = arith.constant 0 : index
    %c0_73 = arith.constant 0 : index
    %163 = vector.load %arg10[%c0_72, %c0_73] : memref<128x128xbf16, #tpu.memory_space<vmem>>, vector<128x128xbf16>
    %cst_74 = arith.constant dense<0.000000e+00> : vector<8x128xf32>
    %164 = tpu.matmul %162, %163, %cst_74 {dimension_numbers = #tpu.dot_dimension_numbers<[1], [0], [0], [1], [0, 0, 1, 1], [], []>} : vector<8x128xbf16>, vector<128x128xbf16>, vector<8x128xf32> -> vector<8x128xf32>
    %c0_75 = arith.constant 0 : index
    %c0_76 = arith.constant 0 : index
    %165 = vector.load %arg11[%c0_75, %c0_76] : memref<1x128xf32, #tpu.memory_space<vmem>>, vector<1x128xf32>
    %166 = vector.broadcast %165 : vector<1x128xf32> to vector<8x128xf32>
    %167 = arith.addf %164, %166 : vector<8x128xf32>
    %c16_77 = arith.constant 16 : index
    %c0_78 = arith.constant 0 : index
    %168 = vector.load %arg12[%c16_77, %c0_78] : memref<64x128xf32, #tpu.memory_space<vmem>>, vector<8x128xf32>
    tpu.vector_store %arg12[%c16_77, %c0_78], %167 {strides = array<i32>} : memref<64x128xf32, #tpu.memory_space<vmem>>, vector<8x128xf32>,
    %c24 = arith.constant 24 : index
    %c0_79 = arith.constant 0 : index
    %169 = vector.load %arg13[%c24, %c0_79] : memref<64x512xf32, #tpu.memory_space<vmem>>, vector<8x512xf32>
    %170 = arith.truncf %161 : vector<8x128xf32> to vector<8x128xbf16>
    %c0_80 = arith.constant 0 : index
    %c0_81 = arith.constant 0 : index
    %171 = vector.load %arg8[%c0_80, %c0_81] : memref<128x512xbf16, #tpu.memory_space<vmem>>, vector<128x512xbf16>
    %cst_82 = arith.constant dense<0.000000e+00> : vector<8x512xf32>
    %172 = tpu.matmul %170, %171, %cst_82 {dimension_numbers = #tpu.dot_dimension_numbers<[1], [0], [0], [1], [0, 0, 1, 1], [], []>} : vector<8x128xbf16>, vector<128x512xbf16>, vector<8x512xf32> -> vector<8x512xf32>
    %173 = arith.addf %169, %172 : vector<8x512xf32>
    %174 = vector.extract_strided_slice %173 {offsets = [0, 0], sizes = [8, 128], strides = [1, 1]} : vector<8x512xf32> to vector<8x128xf32>
    %175 = arith.negf %174 : vector<8x128xf32>
    %176 = math.exp %175 : vector<8x128xf32>
    %cst_83 = arith.constant 1.000000e+00 : f32
    %177 = vector.broadcast %cst_83 : f32 to vector<8x128xf32>
    %178 = arith.addf %177, %176 : vector<8x128xf32>
    %179 = arith.divf %177, %178 : vector<8x128xf32>
    %180 = vector.extract_strided_slice %173 {offsets = [0, 128], sizes = [8, 128], strides = [1, 1]} : vector<8x512xf32> to vector<8x128xf32>
    %181 = arith.negf %180 : vector<8x128xf32>
    %182 = math.exp %181 : vector<8x128xf32>
    %cst_84 = arith.constant 1.000000e+00 : f32
    %183 = vector.broadcast %cst_84 : f32 to vector<8x128xf32>
    %184 = arith.addf %183, %182 : vector<8x128xf32>
    %185 = arith.divf %183, %184 : vector<8x128xf32>
    %186 = vector.extract_strided_slice %173 {offsets = [0, 256], sizes = [8, 128], strides = [1, 1]} : vector<8x512xf32> to vector<8x128xf32>
    %187 = math.tanh %186 : vector<8x128xf32>
    %188 = vector.extract_strided_slice %173 {offsets = [0, 384], sizes = [8, 128], strides = [1, 1]} : vector<8x512xf32> to vector<8x128xf32>
    %189 = arith.negf %188 : vector<8x128xf32>
    %190 = math.exp %189 : vector<8x128xf32>
    %cst_85 = arith.constant 1.000000e+00 : f32
    %191 = vector.broadcast %cst_85 : f32 to vector<8x128xf32>
    %192 = arith.addf %191, %190 : vector<8x128xf32>
    %193 = arith.divf %191, %192 : vector<8x128xf32>
    %194 = arith.mulf %185, %159 : vector<8x128xf32>
    %195 = arith.mulf %179, %187 : vector<8x128xf32>
    %196 = arith.addf %194, %195 : vector<8x128xf32>
    %197 = math.tanh %196 : vector<8x128xf32>
    %198 = arith.mulf %193, %197 : vector<8x128xf32>
    %199 = arith.truncf %198 : vector<8x128xf32> to vector<8x128xbf16>
    %c0_86 = arith.constant 0 : index
    %c0_87 = arith.constant 0 : index
    %200 = vector.load %arg10[%c0_86, %c0_87] : memref<128x128xbf16, #tpu.memory_space<vmem>>, vector<128x128xbf16>
    %cst_88 = arith.constant dense<0.000000e+00> : vector<8x128xf32>
    %201 = tpu.matmul %199, %200, %cst_88 {dimension_numbers = #tpu.dot_dimension_numbers<[1], [0], [0], [1], [0, 0, 1, 1], [], []>} : vector<8x128xbf16>, vector<128x128xbf16>, vector<8x128xf32> -> vector<8x128xf32>
    %c0_89 = arith.constant 0 : index
    %c0_90 = arith.constant 0 : index
    %202 = vector.load %arg11[%c0_89, %c0_90] : memref<1x128xf32, #tpu.memory_space<vmem>>, vector<1x128xf32>
    %203 = vector.broadcast %202 : vector<1x128xf32> to vector<8x128xf32>
    %204 = arith.addf %201, %203 : vector<8x128xf32>
    %c24_91 = arith.constant 24 : index
    %c0_92 = arith.constant 0 : index
    %205 = vector.load %arg12[%c24_91, %c0_92] : memref<64x128xf32, #tpu.memory_space<vmem>>, vector<8x128xf32>
    tpu.vector_store %arg12[%c24_91, %c0_92], %204 {strides = array<i32>} : memref<64x128xf32, #tpu.memory_space<vmem>>, vector<8x128xf32>,
    %c32 = arith.constant 32 : index
    %c0_93 = arith.constant 0 : index
    %206 = vector.load %arg13[%c32, %c0_93] : memref<64x512xf32, #tpu.memory_space<vmem>>, vector<8x512xf32>
    %207 = arith.truncf %198 : vector<8x128xf32> to vector<8x128xbf16>
    %c0_94 = arith.constant 0 : index
    %c0_95 = arith.constant 0 : index
    %208 = vector.load %arg8[%c0_94, %c0_95] : memref<128x512xbf16, #tpu.memory_space<vmem>>, vector<128x512xbf16>
    %cst_96 = arith.constant dense<0.000000e+00> : vector<8x512xf32>
    %209 = tpu.matmul %207, %208, %cst_96 {dimension_numbers = #tpu.dot_dimension_numbers<[1], [0], [0], [1], [0, 0, 1, 1], [], []>} : vector<8x128xbf16>, vector<128x512xbf16>, vector<8x512xf32> -> vector<8x512xf32>
    %210 = arith.addf %206, %209 : vector<8x512xf32>
    %211 = vector.extract_strided_slice %210 {offsets = [0, 0], sizes = [8, 128], strides = [1, 1]} : vector<8x512xf32> to vector<8x128xf32>
    %212 = arith.negf %211 : vector<8x128xf32>
    %213 = math.exp %212 : vector<8x128xf32>
    %cst_97 = arith.constant 1.000000e+00 : f32
    %214 = vector.broadcast %cst_97 : f32 to vector<8x128xf32>
    %215 = arith.addf %214, %213 : vector<8x128xf32>
    %216 = arith.divf %214, %215 : vector<8x128xf32>
    %217 = vector.extract_strided_slice %210 {offsets = [0, 128], sizes = [8, 128], strides = [1, 1]} : vector<8x512xf32> to vector<8x128xf32>
    %218 = arith.negf %217 : vector<8x128xf32>
    %219 = math.exp %218 : vector<8x128xf32>
    %cst_98 = arith.constant 1.000000e+00 : f32
    %220 = vector.broadcast %cst_98 : f32 to vector<8x128xf32>
    %221 = arith.addf %220, %219 : vector<8x128xf32>
    %222 = arith.divf %220, %221 : vector<8x128xf32>
    %223 = vector.extract_strided_slice %210 {offsets = [0, 256], sizes = [8, 128], strides = [1, 1]} : vector<8x512xf32> to vector<8x128xf32>
    %224 = math.tanh %223 : vector<8x128xf32>
    %225 = vector.extract_strided_slice %210 {offsets = [0, 384], sizes = [8, 128], strides = [1, 1]} : vector<8x512xf32> to vector<8x128xf32>
    %226 = arith.negf %225 : vector<8x128xf32>
    %227 = math.exp %226 : vector<8x128xf32>
    %cst_99 = arith.constant 1.000000e+00 : f32
    %228 = vector.broadcast %cst_99 : f32 to vector<8x128xf32>
    %229 = arith.addf %228, %227 : vector<8x128xf32>
    %230 = arith.divf %228, %229 : vector<8x128xf32>
    %231 = arith.mulf %222, %196 : vector<8x128xf32>
    %232 = arith.mulf %216, %224 : vector<8x128xf32>
    %233 = arith.addf %231, %232 : vector<8x128xf32>
    %234 = math.tanh %233 : vector<8x128xf32>
    %235 = arith.mulf %230, %234 : vector<8x128xf32>
    %236 = arith.truncf %235 : vector<8x128xf32> to vector<8x128xbf16>
    %c0_100 = arith.constant 0 : index
    %c0_101 = arith.constant 0 : index
    %237 = vector.load %arg10[%c0_100, %c0_101] : memref<128x128xbf16, #tpu.memory_space<vmem>>, vector<128x128xbf16>
    %cst_102 = arith.constant dense<0.000000e+00> : vector<8x128xf32>
    %238 = tpu.matmul %236, %237, %cst_102 {dimension_numbers = #tpu.dot_dimension_numbers<[1], [0], [0], [1], [0, 0, 1, 1], [], []>} : vector<8x128xbf16>, vector<128x128xbf16>, vector<8x128xf32> -> vector<8x128xf32>
    %c0_103 = arith.constant 0 : index
    %c0_104 = arith.constant 0 : index
    %239 = vector.load %arg11[%c0_103, %c0_104] : memref<1x128xf32, #tpu.memory_space<vmem>>, vector<1x128xf32>
    %240 = vector.broadcast %239 : vector<1x128xf32> to vector<8x128xf32>
    %241 = arith.addf %238, %240 : vector<8x128xf32>
    %c32_105 = arith.constant 32 : index
    %c0_106 = arith.constant 0 : index
    %242 = vector.load %arg12[%c32_105, %c0_106] : memref<64x128xf32, #tpu.memory_space<vmem>>, vector<8x128xf32>
    tpu.vector_store %arg12[%c32_105, %c0_106], %241 {strides = array<i32>} : memref<64x128xf32, #tpu.memory_space<vmem>>, vector<8x128xf32>,
    %c40 = arith.constant 40 : index
    %c0_107 = arith.constant 0 : index
    %243 = vector.load %arg13[%c40, %c0_107] : memref<64x512xf32, #tpu.memory_space<vmem>>, vector<8x512xf32>
    %244 = arith.truncf %235 : vector<8x128xf32> to vector<8x128xbf16>
    %c0_108 = arith.constant 0 : index
    %c0_109 = arith.constant 0 : index
    %245 = vector.load %arg8[%c0_108, %c0_109] : memref<128x512xbf16, #tpu.memory_space<vmem>>, vector<128x512xbf16>
    %cst_110 = arith.constant dense<0.000000e+00> : vector<8x512xf32>
    %246 = tpu.matmul %244, %245, %cst_110 {dimension_numbers = #tpu.dot_dimension_numbers<[1], [0], [0], [1], [0, 0, 1, 1], [], []>} : vector<8x128xbf16>, vector<128x512xbf16>, vector<8x512xf32> -> vector<8x512xf32>
    %247 = arith.addf %243, %246 : vector<8x512xf32>
    %248 = vector.extract_strided_slice %247 {offsets = [0, 0], sizes = [8, 128], strides = [1, 1]} : vector<8x512xf32> to vector<8x128xf32>
    %249 = arith.negf %248 : vector<8x128xf32>
    %250 = math.exp %249 : vector<8x128xf32>
    %cst_111 = arith.constant 1.000000e+00 : f32
    %251 = vector.broadcast %cst_111 : f32 to vector<8x128xf32>
    %252 = arith.addf %251, %250 : vector<8x128xf32>
    %253 = arith.divf %251, %252 : vector<8x128xf32>
    %254 = vector.extract_strided_slice %247 {offsets = [0, 128], sizes = [8, 128], strides = [1, 1]} : vector<8x512xf32> to vector<8x128xf32>
    %255 = arith.negf %254 : vector<8x128xf32>
    %256 = math.exp %255 : vector<8x128xf32>
    %cst_112 = arith.constant 1.000000e+00 : f32
    %257 = vector.broadcast %cst_112 : f32 to vector<8x128xf32>
    %258 = arith.addf %257, %256 : vector<8x128xf32>
    %259 = arith.divf %257, %258 : vector<8x128xf32>
    %260 = vector.extract_strided_slice %247 {offsets = [0, 256], sizes = [8, 128], strides = [1, 1]} : vector<8x512xf32> to vector<8x128xf32>
    %261 = math.tanh %260 : vector<8x128xf32>
    %262 = vector.extract_strided_slice %247 {offsets = [0, 384], sizes = [8, 128], strides = [1, 1]} : vector<8x512xf32> to vector<8x128xf32>
    %263 = arith.negf %262 : vector<8x128xf32>
    %264 = math.exp %263 : vector<8x128xf32>
    %cst_113 = arith.constant 1.000000e+00 : f32
    %265 = vector.broadcast %cst_113 : f32 to vector<8x128xf32>
    %266 = arith.addf %265, %264 : vector<8x128xf32>
    %267 = arith.divf %265, %266 : vector<8x128xf32>
    %268 = arith.mulf %259, %233 : vector<8x128xf32>
    %269 = arith.mulf %253, %261 : vector<8x128xf32>
    %270 = arith.addf %268, %269 : vector<8x128xf32>
    %271 = math.tanh %270 : vector<8x128xf32>
    %272 = arith.mulf %267, %271 : vector<8x128xf32>
    %273 = arith.truncf %272 : vector<8x128xf32> to vector<8x128xbf16>
    %c0_114 = arith.constant 0 : index
    %c0_115 = arith.constant 0 : index
    %274 = vector.load %arg10[%c0_114, %c0_115] : memref<128x128xbf16, #tpu.memory_space<vmem>>, vector<128x128xbf16>
    %cst_116 = arith.constant dense<0.000000e+00> : vector<8x128xf32>
    %275 = tpu.matmul %273, %274, %cst_116 {dimension_numbers = #tpu.dot_dimension_numbers<[1], [0], [0], [1], [0, 0, 1, 1], [], []>} : vector<8x128xbf16>, vector<128x128xbf16>, vector<8x128xf32> -> vector<8x128xf32>
    %c0_117 = arith.constant 0 : index
    %c0_118 = arith.constant 0 : index
    %276 = vector.load %arg11[%c0_117, %c0_118] : memref<1x128xf32, #tpu.memory_space<vmem>>, vector<1x128xf32>
    %277 = vector.broadcast %276 : vector<1x128xf32> to vector<8x128xf32>
    %278 = arith.addf %275, %277 : vector<8x128xf32>
    %c40_119 = arith.constant 40 : index
    %c0_120 = arith.constant 0 : index
    %279 = vector.load %arg12[%c40_119, %c0_120] : memref<64x128xf32, #tpu.memory_space<vmem>>, vector<8x128xf32>
    tpu.vector_store %arg12[%c40_119, %c0_120], %278 {strides = array<i32>} : memref<64x128xf32, #tpu.memory_space<vmem>>, vector<8x128xf32>,
    %c48 = arith.constant 48 : index
    %c0_121 = arith.constant 0 : index
    %280 = vector.load %arg13[%c48, %c0_121] : memref<64x512xf32, #tpu.memory_space<vmem>>, vector<8x512xf32>
    %281 = arith.truncf %272 : vector<8x128xf32> to vector<8x128xbf16>
    %c0_122 = arith.constant 0 : index
    %c0_123 = arith.constant 0 : index
    %282 = vector.load %arg8[%c0_122, %c0_123] : memref<128x512xbf16, #tpu.memory_space<vmem>>, vector<128x512xbf16>
    %cst_124 = arith.constant dense<0.000000e+00> : vector<8x512xf32>
    %283 = tpu.matmul %281, %282, %cst_124 {dimension_numbers = #tpu.dot_dimension_numbers<[1], [0], [0], [1], [0, 0, 1, 1], [], []>} : vector<8x128xbf16>, vector<128x512xbf16>, vector<8x512xf32> -> vector<8x512xf32>
    %284 = arith.addf %280, %283 : vector<8x512xf32>
    %285 = vector.extract_strided_slice %284 {offsets = [0, 0], sizes = [8, 128], strides = [1, 1]} : vector<8x512xf32> to vector<8x128xf32>
    %286 = arith.negf %285 : vector<8x128xf32>
    %287 = math.exp %286 : vector<8x128xf32>
    %cst_125 = arith.constant 1.000000e+00 : f32
    %288 = vector.broadcast %cst_125 : f32 to vector<8x128xf32>
    %289 = arith.addf %288, %287 : vector<8x128xf32>
    %290 = arith.divf %288, %289 : vector<8x128xf32>
    %291 = vector.extract_strided_slice %284 {offsets = [0, 128], sizes = [8, 128], strides = [1, 1]} : vector<8x512xf32> to vector<8x128xf32>
    %292 = arith.negf %291 : vector<8x128xf32>
    %293 = math.exp %292 : vector<8x128xf32>
    %cst_126 = arith.constant 1.000000e+00 : f32
    %294 = vector.broadcast %cst_126 : f32 to vector<8x128xf32>
    %295 = arith.addf %294, %293 : vector<8x128xf32>
    %296 = arith.divf %294, %295 : vector<8x128xf32>
    %297 = vector.extract_strided_slice %284 {offsets = [0, 256], sizes = [8, 128], strides = [1, 1]} : vector<8x512xf32> to vector<8x128xf32>
    %298 = math.tanh %297 : vector<8x128xf32>
    %299 = vector.extract_strided_slice %284 {offsets = [0, 384], sizes = [8, 128], strides = [1, 1]} : vector<8x512xf32> to vector<8x128xf32>
    %300 = arith.negf %299 : vector<8x128xf32>
    %301 = math.exp %300 : vector<8x128xf32>
    %cst_127 = arith.constant 1.000000e+00 : f32
    %302 = vector.broadcast %cst_127 : f32 to vector<8x128xf32>
    %303 = arith.addf %302, %301 : vector<8x128xf32>
    %304 = arith.divf %302, %303 : vector<8x128xf32>
    %305 = arith.mulf %296, %270 : vector<8x128xf32>
    %306 = arith.mulf %290, %298 : vector<8x128xf32>
    %307 = arith.addf %305, %306 : vector<8x128xf32>
    %308 = math.tanh %307 : vector<8x128xf32>
    %309 = arith.mulf %304, %308 : vector<8x128xf32>
    %310 = arith.truncf %309 : vector<8x128xf32> to vector<8x128xbf16>
    %c0_128 = arith.constant 0 : index
    %c0_129 = arith.constant 0 : index
    %311 = vector.load %arg10[%c0_128, %c0_129] : memref<128x128xbf16, #tpu.memory_space<vmem>>, vector<128x128xbf16>
    %cst_130 = arith.constant dense<0.000000e+00> : vector<8x128xf32>
    %312 = tpu.matmul %310, %311, %cst_130 {dimension_numbers = #tpu.dot_dimension_numbers<[1], [0], [0], [1], [0, 0, 1, 1], [], []>} : vector<8x128xbf16>, vector<128x128xbf16>, vector<8x128xf32> -> vector<8x128xf32>
    %c0_131 = arith.constant 0 : index
    %c0_132 = arith.constant 0 : index
    %313 = vector.load %arg11[%c0_131, %c0_132] : memref<1x128xf32, #tpu.memory_space<vmem>>, vector<1x128xf32>
    %314 = vector.broadcast %313 : vector<1x128xf32> to vector<8x128xf32>
    %315 = arith.addf %312, %314 : vector<8x128xf32>
    %c48_133 = arith.constant 48 : index
    %c0_134 = arith.constant 0 : index
    %316 = vector.load %arg12[%c48_133, %c0_134] : memref<64x128xf32, #tpu.memory_space<vmem>>, vector<8x128xf32>
    tpu.vector_store %arg12[%c48_133, %c0_134], %315 {strides = array<i32>} : memref<64x128xf32, #tpu.memory_space<vmem>>, vector<8x128xf32>,
    %c56 = arith.constant 56 : index
    %c0_135 = arith.constant 0 : index
    %317 = vector.load %arg13[%c56, %c0_135] : memref<64x512xf32, #tpu.memory_space<vmem>>, vector<8x512xf32>
    %318 = arith.truncf %309 : vector<8x128xf32> to vector<8x128xbf16>
    %c0_136 = arith.constant 0 : index
    %c0_137 = arith.constant 0 : index
    %319 = vector.load %arg8[%c0_136, %c0_137] : memref<128x512xbf16, #tpu.memory_space<vmem>>, vector<128x512xbf16>
    %cst_138 = arith.constant dense<0.000000e+00> : vector<8x512xf32>
    %320 = tpu.matmul %318, %319, %cst_138 {dimension_numbers = #tpu.dot_dimension_numbers<[1], [0], [0], [1], [0, 0, 1, 1], [], []>} : vector<8x128xbf16>, vector<128x512xbf16>, vector<8x512xf32> -> vector<8x512xf32>
    %321 = arith.addf %317, %320 : vector<8x512xf32>
    %322 = vector.extract_strided_slice %321 {offsets = [0, 0], sizes = [8, 128], strides = [1, 1]} : vector<8x512xf32> to vector<8x128xf32>
    %323 = arith.negf %322 : vector<8x128xf32>
    %324 = math.exp %323 : vector<8x128xf32>
    %cst_139 = arith.constant 1.000000e+00 : f32
    %325 = vector.broadcast %cst_139 : f32 to vector<8x128xf32>
    %326 = arith.addf %325, %324 : vector<8x128xf32>
    %327 = arith.divf %325, %326 : vector<8x128xf32>
    %328 = vector.extract_strided_slice %321 {offsets = [0, 128], sizes = [8, 128], strides = [1, 1]} : vector<8x512xf32> to vector<8x128xf32>
    %329 = arith.negf %328 : vector<8x128xf32>
    %330 = math.exp %329 : vector<8x128xf32>
    %cst_140 = arith.constant 1.000000e+00 : f32
    %331 = vector.broadcast %cst_140 : f32 to vector<8x128xf32>
    %332 = arith.addf %331, %330 : vector<8x128xf32>
    %333 = arith.divf %331, %332 : vector<8x128xf32>
    %334 = vector.extract_strided_slice %321 {offsets = [0, 256], sizes = [8, 128], strides = [1, 1]} : vector<8x512xf32> to vector<8x128xf32>
    %335 = math.tanh %334 : vector<8x128xf32>
    %336 = vector.extract_strided_slice %321 {offsets = [0, 384], sizes = [8, 128], strides = [1, 1]} : vector<8x512xf32> to vector<8x128xf32>
    %337 = arith.negf %336 : vector<8x128xf32>
    %338 = math.exp %337 : vector<8x128xf32>
    %cst_141 = arith.constant 1.000000e+00 : f32
    %339 = vector.broadcast %cst_141 : f32 to vector<8x128xf32>
    %340 = arith.addf %339, %338 : vector<8x128xf32>
    %341 = arith.divf %339, %340 : vector<8x128xf32>
    %342 = arith.mulf %333, %307 : vector<8x128xf32>
    %343 = arith.mulf %327, %335 : vector<8x128xf32>
    %344 = arith.addf %342, %343 : vector<8x128xf32>
    %345 = math.tanh %344 : vector<8x128xf32>
    %346 = arith.mulf %341, %345 : vector<8x128xf32>
    %347 = arith.truncf %346 : vector<8x128xf32> to vector<8x128xbf16>
    %c0_142 = arith.constant 0 : index
    %c0_143 = arith.constant 0 : index
    %348 = vector.load %arg10[%c0_142, %c0_143] : memref<128x128xbf16, #tpu.memory_space<vmem>>, vector<128x128xbf16>
    %cst_144 = arith.constant dense<0.000000e+00> : vector<8x128xf32>
    %349 = tpu.matmul %347, %348, %cst_144 {dimension_numbers = #tpu.dot_dimension_numbers<[1], [0], [0], [1], [0, 0, 1, 1], [], []>} : vector<8x128xbf16>, vector<128x128xbf16>, vector<8x128xf32> -> vector<8x128xf32>
    %c0_145 = arith.constant 0 : index
    %c0_146 = arith.constant 0 : index
    %350 = vector.load %arg11[%c0_145, %c0_146] : memref<1x128xf32, #tpu.memory_space<vmem>>, vector<1x128xf32>
    %351 = vector.broadcast %350 : vector<1x128xf32> to vector<8x128xf32>
    %352 = arith.addf %349, %351 : vector<8x128xf32>
    %c56_147 = arith.constant 56 : index
    %c0_148 = arith.constant 0 : index
    %353 = vector.load %arg12[%c56_147, %c0_148] : memref<64x128xf32, #tpu.memory_space<vmem>>, vector<8x128xf32>
    tpu.vector_store %arg12[%c56_147, %c0_148], %352 {strides = array<i32>} : memref<64x128xf32, #tpu.memory_space<vmem>>, vector<8x128xf32>,
    return
  }
}

</mosaic_0001>

<bundles_post_ra>
// kernel: full_model_forward.1
= control target key start
LH: loop header
LB: loop body
LE: loop exit
PB: predicated region body
PF: predicated region fallthrough
CT: control target
= control target key end

     0   :  { %17 = vsyncpa [#allocation4], 0  ;;  %s9910_s0 = inlined_call_operand.vmem [shape: bf16[8,8], index: 0, kind: input, shape index: {}]   ;;  %s9911_s1 = inlined_call_operand.vmem [shape: bf16[8,2048], index: 1, kind: input, shape index: {}]   ;;  %s9912_s2 = inlined_call_operand.hbm [shape: bf16[2048,32], index: 2, kind: input, shape index: {}]   ;;  %s9913_s3 = inlined_call_operand.vmem [shape: f32[1,32], index: 3, kind: input, shape index: {}, may-alias: {3,5}]   ;;  %s9914_s4 = inlined_call_operand.vmem [shape: f32[1,32], index: 4, kind: input, shape index: {}]   ;;  %s9915_s5 = inlined_call_operand.vmem [shape: f32[1,32], index: 5, kind: input, shape index: {}, may-alias: {3,5}]   ;;  %s9916_s6 = inlined_call_operand.vmem [shape: bf16[56,32], index: 6, kind: input, shape index: {}]   ;;  %s9917_s7 = inlined_call_operand.hbm [shape: bf16[32,512], index: 7, kind: input, shape index: {}]   ;;  %s9918_s8 = inlined_call_operand.vmem [shape: bf16[128,512], index: 8, kind: input, shape index: {}]   ;;  %s9919_s9 = inlined_call_operand.vmem [shape: f32[1,512], index: 9, kind: input, shape index: {}]   ;;  %s9920_s10 = inlined_call_operand.hbm [shape: bf16[128,128], index: 10, kind: input, shape index: {}]   ;;  %s9921_s11 = inlined_call_operand.vmem [shape: f32[1,128], index: 11, kind: input, shape index: {}]   ;;  %s9922_s12 = inlined_call_operand.vmem [shape: f32[64,128], index: 12, kind: output, shape index: {}]  }
   0x1   :  { %18 = vsyncpa [#allocation6], 0  ;;  %s48_s23 = sshll.u32 %s9917_s7, 4  ;;  %s7880_s24 = smov [#allocation5]   ;;  %s49_s23 = int_to_ptr.hbm [resolvable:$true] %s48_s23 }
   0x2   :  { %s50_s25 = sshll.u32 %s7880_s24, 4  ;;  %s27_s28 = sshll.u32 %s9912_s2, 4  ;;  %s51_s25 = int_to_ptr.vmem [resolvable:$true] %s50_s25  ;;  %s28_s28 = int_to_ptr.hbm [resolvable:$true] %s27_s28 }
   0x3   :  { %s7881_s29 = smov 256   ;;  %s7882_s30 = smov 16  }
   0x4   :  { %56 = dma.hbm_to_vmem [thread:$0]  %s49_s23, 1024, %s51_s25, [#allocation6], %s7881_s29, %s7881_s29, %s7882_s30  }
   0x5   :  { %s7883_s13 = smov [#allocation3]   ;;  %s7884_s15 = smov 64  }
   0x6   :  { %s29_s14 = sshll.u32 %s7883_s13, 4  ;;  %s7885_s16 = smov 4   ;;  %s30_s14 = int_to_ptr.vmem [resolvable:$true] %s29_s14 }
   0x7   :  { %35 = dma.hbm_to_vmem [thread:$0]  %s28_s28, 16384, %s30_s14, [#allocation4], %s7884_s15, %s7884_s15, %s7885_s16  }
   0x8   :  { %s65_s18 = sshll.u32 %s9920_s10, 4  ;;  %s7886_s19 = smov [#allocation7]   ;;  %s66_s18 = int_to_ptr.hbm [resolvable:$true] %s65_s18 }
   0x9   :  { %s67_s20 = sshll.u32 %s7886_s19, 4  ;;  %s68_s20 = int_to_ptr.vmem [resolvable:$true] %s67_s20 }
   0xa   :  { %73 = dma.hbm_to_vmem [thread:$0]  %s66_s18, 1024, %s68_s20, [#allocation6], %s7884_s15, %s7884_s15, %s7885_s16  }
   0xb   :  { %7876 = dma.done.wait [#allocation4], 16384  }
   0xc   :  { %7877 = vsyncadd [#allocation4], 4294950912 }
   0xd   :  { %7878 = dma.done.wait [#allocation6], 2048  }
   0xe   :  { %7879 = vsyncadd [#allocation6], 4294965248  ;;  %v90_v0 = vld [vmem:[%s9911_s1] sm:$0xff]  ;;  %vm142_vm0 = vcmask 1043456   ;;  %v91_v1 = vld [vmem:[%s9911_s1 + $0x8] sm:$0xff]  ;;  %vm138_vm1 = vcmask 64512  }
   0xf   :  { %v106_v2 = vunpack.c.l.b16 %v90_v0  ;;  %v108_v3 = vunpack.c.l.b16 %v91_v1  ;;  %v109_v4 = vunpack.c.h.b16 %v91_v1  ;;  %v107_v5 = vunpack.c.h.b16 %v90_v0  ;;  %v93_v6 = vld [vmem:[%s9911_s1 + $0x18] sm:$0xff]  ;;  %v92_v7 = vld [vmem:[%s9911_s1 + $0x10] sm:$0xff]  ;;  %v95_v12 = vld [vmem:[%s9911_s1 + $0x28] sm:$0xff] }
  0x10   :  { %v112_v8 = vunpack.c.l.b16 %v93_v6  ;;  %v110_v9 = vunpack.c.l.b16 %v92_v7  ;;  %v113_v10 = vunpack.c.h.b16 %v93_v6  ;;  %v111_v11 = vunpack.c.h.b16 %v92_v7  ;;  %v94_v13 = vld [vmem:[%s9911_s1 + $0x20] sm:$0xff]  ;;  %v97_v43 = vld [vmem:[%s9911_s1 + $0x38] sm:$0xff]  ;;  %v96_v44 = vld [vmem:[%s9911_s1 + $0x30] sm:$0xff] }
  0x11   :  { %v122_v14 = vpack.c.b16 %v106_v2, %v106_v2  ;;  %v124_v15 = vpack.c.b16 %v108_v3, %v108_v3  ;;  %v125_v16 = vpack.c.b16 %v109_v4, %v109_v4  ;;  %v123_v17 = vpack.c.b16 %v107_v5, %v107_v5  ;;  %v7988_v26 = vld [vmem:[%s9910_s0] sm:$0xf]  ;;  %v7194_v57 = vld [vmem:[#allocation3 + $0x38] sm:$0xff]  ;;  %v7193_v61 = vld [vmem:[#allocation3 + $0x30] sm:$0xff] }
  0x12   :  { %v128_v18 = vpack.c.b16 %v112_v8, %v112_v8  ;;  %v126_v19 = vpack.c.b16 %v110_v9, %v110_v9  ;;  %v129_v20 = vpack.c.b16 %v113_v10, %v113_v10  ;;  %v127_v21 = vpack.c.b16 %v111_v11, %v111_v11  ;;  %v7202_v58 = vld [vmem:[#allocation3 + $0x78] sm:$0xff]  ;;  %v7201_v62 = vld [vmem:[#allocation3 + $0x70] sm:$0xff]  ;;  %v7192_v1 = vld [vmem:[#allocation3 + $0x28] sm:$0xff] }
  0x13   :  { %v144_v22 = vsel %vm142_vm0, %v122_v14, 0  ;;  %v150_v23 = vsel %vm142_vm0, %v124_v15, 0  ;;  %v153_v24 = vsel %vm142_vm0, %v125_v16, 0  ;;  %v147_v25 = vsel %vm142_vm0, %v123_v17, 0  ;;  %v7210_v59 = vld [vmem:[#allocation3 + $0xb8] sm:$0xff]  ;;  %v7209_v63 = vld [vmem:[#allocation3 + $0xb0] sm:$0xff] }
  0x14   :  { %198 = vmatpush.bf16.msra.mxu0 %v144_v22  ;;  %224 = vmatpush.bf16.msra.mxu2 %v150_v23  ;;  %v162_v27 = vsel %vm142_vm0, %v128_v18, 0  ;;  %v156_v28 = vsel %vm142_vm0, %v126_v19, 0  ;;  %v116_v29 = vunpack.c.l.b16 %v95_v12  ;;  %v114_v30 = vunpack.c.l.b16 %v94_v13  ;;  %v7218_v60 = vld [vmem:[#allocation3 + $0xf8] sm:$0xff]  ;;  %v7217_v0 = vld [vmem:[#allocation3 + $0xf0] sm:$0xff]  ;;  %v7200_v2 = vld [vmem:[#allocation3 + $0x68] sm:$0xff] }
  0x15   :  { %237 = vmatpush.bf16.msra.mxu3 %v153_v24  ;;  %211 = vmatpush.bf16.msra.mxu1 %v147_v25  ;;  %v117_v31 = vunpack.c.h.b16 %v95_v12  ;;  %v115_v32 = vunpack.c.h.b16 %v94_v13  ;;  %v165_v33 = vsel %vm142_vm0, %v129_v20, 0  ;;  %v159_v34 = vsel %vm142_vm0, %v127_v21, 0  ;;  %v7208_v3 = vld [vmem:[#allocation3 + $0xa8] sm:$0xff]  ;;  %v7191_v5 = vld [vmem:[#allocation3 + $0x20] sm:$0xff]  ;;  %v7190_v9 = vld [vmem:[#allocation3 + $0x18] sm:$0xff] }
  0x16   :  { %v132_v35 = vpack.c.b16 %v116_v29, %v116_v29  ;;  %v130_v36 = vpack.c.b16 %v114_v30, %v114_v30  ;;  %v120_v45 = vunpack.c.l.b16 %v97_v43  ;;  %v121_v46 = vunpack.c.h.b16 %v97_v43  ;;  %v7216_v4 = vld [vmem:[#allocation3 + $0xe8] sm:$0xff]  ;;  %v7199_v6 = vld [vmem:[#allocation3 + $0x60] sm:$0xff]  ;;  %v7198_v10 = vld [vmem:[#allocation3 + $0x58] sm:$0xff] }
  0x17   :  { %5258 = vmatmul.msk.bf16.vlgmr.msra.gmra.mxu0 %vm138_vm1, %v7988_v26  ;;  %5260 = vmatmul.msk.bf16.vlgmr.msra.gmra.mxu2 %vm138_vm1, %v7988_v26  ;;  %v133_v37 = vpack.c.b16 %v117_v31, %v117_v31  ;;  %v131_v38 = vpack.c.b16 %v115_v32, %v115_v32  ;;  %v118_v47 = vunpack.c.l.b16 %v96_v44  ;;  %v119_v54 = vunpack.c.h.b16 %v96_v44  ;;  %v7207_v7 = vld [vmem:[#allocation3 + $0xa0] sm:$0xff]  ;;  %v7206_v11 = vld [vmem:[#allocation3 + $0x98] sm:$0xff]  ;;  %v7189_v13 = vld [vmem:[#allocation3 + $0x10] sm:$0xff] }
  0x18   :  { %276 = vmatpush.bf16.msrb.mxu2 %v162_v27  ;;  %250 = vmatpush.bf16.msrb.mxu0 %v156_v28  ;;  %v174_v39 = vsel %vm142_vm0, %v132_v35, 0  ;;  %v168_v40 = vsel %vm142_vm0, %v130_v36, 0  ;;  %v136_v48 = vpack.c.b16 %v120_v45, %v120_v45  ;;  %v137_v49 = vpack.c.b16 %v121_v46, %v121_v46  ;;  %v7215_v8 = vld [vmem:[#allocation3 + $0xe0] sm:$0xff]  ;;  %v7214_v12 = vld [vmem:[#allocation3 + $0xd8] sm:$0xff]  ;;  %v7197_v14 = vld [vmem:[#allocation3 + $0x50] sm:$0xff] }
  0x19   :  { %5261 = vmatmul.msk.bf16.vlgmr.msra.gmra.mxu3 %vm138_vm1, %v7988_v26  ;;  %5259 = vmatmul.msk.bf16.vlgmr.msra.gmra.mxu1 %vm138_vm1, %v7988_v26  ;;  %v177_v41 = vsel %vm142_vm0, %v133_v37, 0  ;;  %v171_v42 = vsel %vm142_vm0, %v131_v38, 0  ;;  %v134_v50 = vpack.c.b16 %v118_v47, %v118_v47  ;;  %v135_v55 = vpack.c.b16 %v119_v54, %v119_v54  ;;  %v7205_v15 = vld [vmem:[#allocation3 + $0x90] sm:$0xff]  ;;  %v7188_v17 = vld [vmem:[#allocation3 + $0x8] sm:$0xff]  ;;  %v7187_v21 = vld [vmem:[#allocation3] sm:$0xff] }
  0x1a   :  { %289 = vmatpush.bf16.msrb.mxu3 %v165_v33  ;;  %263 = vmatpush.bf16.msrb.mxu1 %v159_v34  ;;  %v186_v51 = vsel %vm142_vm0, %v136_v48, 0  ;;  %v189_v52 = vsel %vm142_vm0, %v137_v49, 0  ;;  %v7213_v16 = vld [vmem:[#allocation3 + $0xd0] sm:$0xff]  ;;  %v7196_v18 = vld [vmem:[#allocation3 + $0x48] sm:$0xff]  ;;  %v7195_v22 = vld [vmem:[#allocation3 + $0x40] sm:$0xff]  ;;  %vm1673_vm3 = vcmask 261120  }
  0x1b   :  { %v180_v53 = vsel %vm142_vm0, %v134_v50, 0  ;;  %v183_v56 = vsel %vm142_vm0, %v135_v55, 0  ;;  %v7204_v19 = vld [vmem:[#allocation3 + $0x88] sm:$0xff]  ;;  %v7226_v23 = vld [vmem:[#allocation3 + $0x138] sm:$0xff]  ;;  %v7203_v25 = vld [vmem:[#allocation3 + $0x80] sm:$0xff] }
  0x1c   :  { %328 = vmatpush.bf16.msra.mxu2 %v174_v39  ;;  %302 = vmatpush.bf16.msra.mxu0 %v168_v40  ;;  %v7212_v20 = vld [vmem:[#allocation3 + $0xc8] sm:$0xff]  ;;  %v7234_v24 = vld [vmem:[#allocation3 + $0x178] sm:$0xff]  ;;  %v7225_v29 = vld [vmem:[#allocation3 + $0x130] sm:$0xff] }
  0x1d   :  { %v7242_v27 = vld [vmem:[#allocation3 + $0x1b8] sm:$0xff]  ;;  %v7233_v30 = vld [vmem:[#allocation3 + $0x170] sm:$0xff]  ;;  %v7224_v33 = vld [vmem:[#allocation3 + $0x128] sm:$0xff] }
  0x1e   :  { %341 = vmatpush.bf16.msra.mxu3 %v177_v41  ;;  %315 = vmatpush.bf16.msra.mxu1 %v171_v42  ;;  %v7250_v28 = vld [vmem:[#allocation3 + $0x1f8] sm:$0xff]  ;;  %v7241_v31 = vld [vmem:[#allocation3 + $0x1b0] sm:$0xff]  ;;  %v7232_v34 = vld [vmem:[#allocation3 + $0x168] sm:$0xff] }
  0x1f   :  { %v7249_v32 = vld [vmem:[#allocation3 + $0x1f0] sm:$0xff]  ;;  %v7240_v35 = vld [vmem:[#allocation3 + $0x1a8] sm:$0xff]  ;;  %v7223_v37 = vld [vmem:[#allocation3 + $0x120] sm:$0xff] }
  0x20   :  { %v7248_v36 = vld [vmem:[#allocation3 + $0x1e8] sm:$0xff]  ;;  %v7231_v38 = vld [vmem:[#allocation3 + $0x160] sm:$0xff]  ;;  %v7222_v41 = vld [vmem:[#allocation3 + $0x118] sm:$0xff] }
  0x21   :  { %v7239_v39 = vld [vmem:[#allocation3 + $0x1a0] sm:$0xff]  ;;  %v7230_v42 = vld [vmem:[#allocation3 + $0x158] sm:$0xff]  ;;  %v7221_v45 = vld [vmem:[#allocation3 + $0x110] sm:$0xff] }
  0x22   :  { %v7247_v40 = vld [vmem:[#allocation3 + $0x1e0] sm:$0xff]  ;;  %v7238_v43 = vld [vmem:[#allocation3 + $0x198] sm:$0xff]  ;;  %v7229_v46 = vld [vmem:[#allocation3 + $0x150] sm:$0xff] }
  0x23   :  { %v7246_v44 = vld [vmem:[#allocation3 + $0x1d8] sm:$0xff]  ;;  %v7220_v47 = vld [vmem:[#allocation3 + $0x108] sm:$0xff]  ;;  %v7237_v49 = vld [vmem:[#allocation3 + $0x190] sm:$0xff] }
  0x24   :  { %v7228_v48 = vld [vmem:[#allocation3 + $0x148] sm:$0xff]  ;;  %v7245_v50 = vld [vmem:[#allocation3 + $0x1d0] sm:$0xff]  ;;  %v7235_v55 = vld [vmem:[#allocation3 + $0x180] sm:$0xff] }
  0x25   :  { %v7244_v54 = vld [vmem:[#allocation3 + $0x1c8] sm:$0xff] }
  0x27   :  { %5262 = vmatmul.msk.bf16.vlgmr.msrb.gmra.mxu0 %vm138_vm1, %v7988_v26  ;;  %5264 = vmatmul.msk.bf16.vlgmr.msrb.gmra.mxu2 %vm138_vm1, %v7988_v26 }
  0x28   :  { %380 = vmatpush.bf16.msrb.mxu2 %v186_v51  ;;  %354 = vmatpush.bf16.msrb.mxu0 %v180_v53  ;;  %v7219_v51 = vld [vmem:[#allocation3 + $0x100] sm:$0xff]  ;;  %v7236_v53 = vld [vmem:[#allocation3 + $0x188] sm:$0xff] }
  0x29   :  { %5263 = vmatmul.msk.bf16.vlgmr.msrb.gmra.mxu1 %vm138_vm1, %v7988_v26  ;;  %5265 = vmatmul.msk.bf16.vlgmr.msrb.gmra.mxu3 %vm138_vm1, %v7988_v26 }
  0x2a   :  { %393 = vmatpush.bf16.msrb.mxu3 %v189_v52  ;;  %367 = vmatpush.bf16.msrb.mxu1 %v183_v56  ;;  %v7227_v52 = vld [vmem:[#allocation3 + $0x140] sm:$0xff] }
  0x2b   :  { %v7243_v56 = vld [vmem:[#allocation3 + $0x1c0] sm:$0xff] }
  0x37   :  { %5266 = vmatmul.msk.bf16.vlgmr.msra.gmra.mxu0 %vm138_vm1, %v7988_v26  ;;  %5268 = vmatmul.msk.bf16.vlgmr.msra.gmra.mxu2 %vm138_vm1, %v7988_v26 }
  0x38   :  { %1459 = vmatpush.bf16.msra.mxu0 %v7194_v57  ;;  %1485 = vmatpush.bf16.msra.mxu2 %v7210_v59 }
  0x39   :  { %5267 = vmatmul.msk.bf16.vlgmr.msra.gmra.mxu1 %vm138_vm1, %v7988_v26  ;;  %5269 = vmatmul.msk.bf16.vlgmr.msra.gmra.mxu3 %vm138_vm1, %v7988_v26 }
  0x3a   :  { %1472 = vmatpush.bf16.msra.mxu1 %v7202_v58  ;;  %1498 = vmatpush.bf16.msra.mxu3 %v7218_v60 }
  0x3c   :  { %1460 = vmatpush.bf16.msra.mxu0 %v7193_v61  ;;  %1486 = vmatpush.bf16.msra.mxu2 %v7209_v63  ;;  %v7258_v61 = vld [vmem:[#allocation3 + $0x238] sm:$0xff] }
  0x3d   :  { %v7266_v63 = vld [vmem:[#allocation3 + $0x278] sm:$0xff] }
  0x3e   :  { %1473 = vmatpush.bf16.msra.mxu1 %v7201_v62  ;;  %1499 = vmatpush.bf16.msra.mxu3 %v7217_v0 }
  0x40   :  { %1461 = vmatpush.bf16.msra.mxu0 %v7192_v1  ;;  %1487 = vmatpush.bf16.msra.mxu2 %v7208_v3 }
  0x42   :  { %1474 = vmatpush.bf16.msra.mxu1 %v7200_v2  ;;  %1500 = vmatpush.bf16.msra.mxu3 %v7216_v4  ;;  %v7257_v2 = vld [vmem:[#allocation3 + $0x230] sm:$0xff] }
  0x44   :  { %1462 = vmatpush.bf16.msra.mxu0 %v7191_v5  ;;  %1488 = vmatpush.bf16.msra.mxu2 %v7207_v7  ;;  %v7265_v5 = vld [vmem:[#allocation3 + $0x270] sm:$0xff] }
  0x46   :  { %1475 = vmatpush.bf16.msra.mxu1 %v7199_v6  ;;  %1501 = vmatpush.bf16.msra.mxu3 %v7215_v8  ;;  %v7274_v8 = vld [vmem:[#allocation3 + $0x2b8] sm:$0xff] }
  0x47   :  { %5272 = vmatmul.msk.bf16.vlgmr.msrb.gmra.mxu2 %vm138_vm1, %v7988_v26  ;;  %5270 = vmatmul.msk.bf16.vlgmr.msrb.gmra.mxu0 %vm138_vm1, %v7988_v26 }
  0x48   :  { %1463 = vmatpush.bf16.msra.mxu0 %v7190_v9  ;;  %1489 = vmatpush.bf16.msra.mxu2 %v7206_v11  ;;  %v7282_v11 = vld [vmem:[#allocation3 + $0x2f8] sm:$0xff] }
  0x49   :  { %5273 = vmatmul.msk.bf16.vlgmr.msrb.gmra.mxu3 %vm138_vm1, %v7988_v26  ;;  %5271 = vmatmul.msk.bf16.vlgmr.msrb.gmra.mxu1 %vm138_vm1, %v7988_v26  ;;  %v7211_v26 = vld [vmem:[#allocation3 + $0xc0] sm:$0xff] }
  0x4a   :  { %1476 = vmatpush.bf16.msra.mxu1 %v7198_v10  ;;  %1502 = vmatpush.bf16.msra.mxu3 %v7214_v12 }
  0x4c   :  { %1464 = vmatpush.bf16.msra.mxu0 %v7189_v13  ;;  %1490 = vmatpush.bf16.msra.mxu2 %v7205_v15  ;;  %v7256_v13 = vld [vmem:[#allocation3 + $0x228] sm:$0xff]  ;;  %v7273_v15 = vld [vmem:[#allocation3 + $0x2b0] sm:$0xff] }
  0x4e   :  { %1477 = vmatpush.bf16.msra.mxu1 %v7197_v14  ;;  %1503 = vmatpush.bf16.msra.mxu3 %v7213_v16  ;;  %v7264_v14 = vld [vmem:[#allocation3 + $0x268] sm:$0xff]  ;;  %v7281_v16 = vld [vmem:[#allocation3 + $0x2f0] sm:$0xff] }
  0x50   :  { %1465 = vmatpush.bf16.msra.mxu0 %v7188_v17  ;;  %1491 = vmatpush.bf16.msra.mxu2 %v7204_v19 }
  0x52   :  { %1478 = vmatpush.bf16.msra.mxu1 %v7196_v18  ;;  %1504 = vmatpush.bf16.msra.mxu3 %v7212_v20  ;;  %v7255_v18 = vld [vmem:[#allocation3 + $0x220] sm:$0xff] }
  0x53   :  { %v7263_v20 = vld [vmem:[#allocation3 + $0x260] sm:$0xff] }
  0x54   :  { %1466 = vmatpush.bf16.msra.mxu0 %v7187_v21  ;;  %1492 = vmatpush.bf16.msra.mxu2 %v7203_v25  ;;  %v7280_v25 = vld [vmem:[#allocation3 + $0x2e8] sm:$0xff] }
  0x56   :  { %1479 = vmatpush.bf16.msra.mxu1 %v7195_v22  ;;  %1505 = vmatpush.bf16.msra.mxu3 %v7211_v26  ;;  %v7272_v22 = vld [vmem:[#allocation3 + $0x2a8] sm:$0xff] }
  0x58   :  { %1511 = vmatpush.bf16.msrb.mxu0 %v7226_v23  ;;  %1537 = vmatpush.bf16.msrb.mxu2 %v7242_v27  ;;  %v7254_v27 = vld [vmem:[#allocation3 + $0x218] sm:$0xff] }
  0x5a   :  { %1524 = vmatpush.bf16.msrb.mxu1 %v7234_v24  ;;  %1550 = vmatpush.bf16.msrb.mxu3 %v7250_v28 }
  0x5c   :  { %1512 = vmatpush.bf16.msrb.mxu0 %v7225_v29  ;;  %1538 = vmatpush.bf16.msrb.mxu2 %v7241_v31  ;;  %v7262_v29 = vld [vmem:[#allocation3 + $0x258] sm:$0xff]  ;;  %v7271_v31 = vld [vmem:[#allocation3 + $0x2a0] sm:$0xff] }
  0x5e   :  { %1525 = vmatpush.bf16.msrb.mxu1 %v7233_v30  ;;  %1551 = vmatpush.bf16.msrb.mxu3 %v7249_v32  ;;  %v7279_v32 = vld [vmem:[#allocation3 + $0x2e0] sm:$0xff] }
  0x60   :  { %1513 = vmatpush.bf16.msrb.mxu0 %v7224_v33  ;;  %1539 = vmatpush.bf16.msrb.mxu2 %v7240_v35 }
  0x62   :  { %1526 = vmatpush.bf16.msrb.mxu1 %v7232_v34  ;;  %1552 = vmatpush.bf16.msrb.mxu3 %v7248_v36  ;;  %v7253_v34 = vld [vmem:[#allocation3 + $0x210] sm:$0xff] }
  0x64   :  { %1514 = vmatpush.bf16.msrb.mxu0 %v7223_v37  ;;  %1540 = vmatpush.bf16.msrb.mxu2 %v7239_v39  ;;  %v7261_v37 = vld [vmem:[#allocation3 + $0x250] sm:$0xff] }
  0x66   :  { %1527 = vmatpush.bf16.msrb.mxu1 %v7231_v38  ;;  %1553 = vmatpush.bf16.msrb.mxu3 %v7247_v40  ;;  %v7270_v40 = vld [vmem:[#allocation3 + $0x298] sm:$0xff] }
  0x68   :  { %1515 = vmatpush.bf16.msrb.mxu0 %v7222_v41  ;;  %1541 = vmatpush.bf16.msrb.mxu2 %v7238_v43  ;;  %v7278_v43 = vld [vmem:[#allocation3 + $0x2d8] sm:$0xff] }
  0x6a   :  { %1528 = vmatpush.bf16.msrb.mxu1 %v7230_v42  ;;  %1554 = vmatpush.bf16.msrb.mxu3 %v7246_v44 }
  0x6c   :  { %1516 = vmatpush.bf16.msrb.mxu0 %v7221_v45  ;;  %1542 = vmatpush.bf16.msrb.mxu2 %v7237_v49  ;;  %v7252_v45 = vld [vmem:[#allocation3 + $0x208] sm:$0xff] }
  0x6e   :  { %1529 = vmatpush.bf16.msrb.mxu1 %v7229_v46  ;;  %1555 = vmatpush.bf16.msrb.mxu3 %v7245_v50  ;;  %v7260_v46 = vld [vmem:[#allocation3 + $0x248] sm:$0xff]  ;;  %v7251_v50 = vld [vmem:[#allocation3 + $0x200] sm:$0xff] }
  0x70   :  { %1517 = vmatpush.bf16.msrb.mxu0 %v7220_v47  ;;  %1543 = vmatpush.bf16.msrb.mxu2 %v7236_v53  ;;  %v7269_v47 = vld [vmem:[#allocation3 + $0x290] sm:$0xff]  ;;  %v7259_v53 = vld [vmem:[#allocation3 + $0x240] sm:$0xff] }
  0x72   :  { %1530 = vmatpush.bf16.msrb.mxu1 %v7228_v48  ;;  %1556 = vmatpush.bf16.msrb.mxu3 %v7244_v54  ;;  %v7277_v48 = vld [vmem:[#allocation3 + $0x2d0] sm:$0xff] }
  0x74   :  { %1518 = vmatpush.bf16.msrb.mxu0 %v7219_v51  ;;  %1544 = vmatpush.bf16.msrb.mxu2 %v7235_v55  ;;  %v7268_v55 = vld [vmem:[#allocation3 + $0x288] sm:$0xff] }
  0x76   :  { %1531 = vmatpush.bf16.msrb.mxu1 %v7227_v52  ;;  %1557 = vmatpush.bf16.msrb.mxu3 %v7243_v56  ;;  %v7290_v52 = vld [vmem:[#allocation3 + $0x338] sm:$0xff] }
  0x77   :  { %v7298_v56 = vld [vmem:[#allocation3 + $0x378] sm:$0xff] }
  0x94   :  { %v200_v57 = vpop.f32.mrf.mxu0 }
  0x95   :  { %v399_v58 = vmax.f32 %v200_v57, 0.0 }
  0x96   :  { %v213_v59 = vpop.f32.mrf.mxu1 }
  0x97   :  { %v400_v60 = vmax.f32 %v213_v59, 0.0  ;;  %v415_v62 = vpack.c.bf16 %v399_v58, %v399_v58  ;;  %v7276_v59 = vld [vmem:[#allocation3 + $0x2c8] sm:$0xff] }
  0x99   :  { %v416_v0 = vpack.c.bf16 %v400_v60, %v400_v60  ;;  %1467 = vmatmul.bf16.vlgmr.msra.gmra.mxu0 %v415_v62  ;;  %v7289_v62 = vld [vmem:[#allocation3 + $0x330] sm:$0xff] }
  0x9a   :  { %1563 = vmatpush.bf16.msra.mxu0 %v7258_v61  ;;  %v226_v1 = vpop.f32.mrf.mxu2 }
  0x9b   :  { %1480 = vmatmul.bf16.vlgmr.msra.gmra.mxu1 %v416_v0  ;;  %v401_v3 = vmax.f32 %v226_v1, 0.0  ;;  %v7267_v0 = vld [vmem:[#allocation3 + $0x280] sm:$0xff]  ;;  %v7297_v1 = vld [vmem:[#allocation3 + $0x370] sm:$0xff] }
  0x9c   :  { %v239_v4 = vpop.f32.mrf.mxu3  ;;  %1576 = vmatpush.bf16.msra.mxu1 %v7266_v63  ;;  %v202_v7 = vpop.f32.mrf.mxu0 }
  0x9d   :  { %v402_v6 = vmax.f32 %v239_v4, 0.0  ;;  %v417_v9 = vpack.c.bf16 %v401_v3, %v401_v3  ;;  %v7306_v3 = vld [vmem:[#allocation3 + $0x3b8] sm:$0xff] }
  0x9e   :  { %v215_v10 = vpop.f32.mrf.mxu1  ;;  %1564 = vmatpush.bf16.msra.mxu0 %v7257_v2  ;;  %v7275_v2 = vld [vmem:[#allocation3 + $0x2c0] sm:$0xff] }
  0x9f   :  { %v418_v12 = vpack.c.bf16 %v402_v6, %v402_v6  ;;  %1493 = vmatmul.bf16.vlgmr.msra.gmra.mxu2 %v417_v9  ;;  %v7296_v10 = vld [vmem:[#allocation3 + $0x368] sm:$0xff] }
  0xa0   :  { %1577 = vmatpush.bf16.msra.mxu1 %v7265_v5  ;;  %1589 = vmatpush.bf16.msra.mxu2 %v7274_v8  ;;  %v7314_v5 = vld [vmem:[#allocation3 + $0x3f8] sm:$0xff]  ;;  %v7288_v8 = vld [vmem:[#allocation3 + $0x328] sm:$0xff] }
  0xa1   :  { %1506 = vmatmul.bf16.vlgmr.msra.gmra.mxu3 %v418_v12 }
  0xa2   :  { %1602 = vmatpush.bf16.msra.mxu3 %v7282_v11  ;;  %1565 = vmatpush.bf16.msra.mxu0 %v7256_v13  ;;  %v228_v17 = vpop.f32.mrf.mxu2  ;;  %v7305_v13 = vld [vmem:[#allocation3 + $0x3b0] sm:$0xff] }
  0xa3   :  { %v7287_v17 = vld [vmem:[#allocation3 + $0x320] sm:$0xff] }
  0xa4   :  { %v241_v19 = vpop.f32.mrf.mxu3  ;;  %1578 = vmatpush.bf16.msra.mxu1 %v7264_v14  ;;  %1590 = vmatpush.bf16.msra.mxu2 %v7273_v15  ;;  %v252_v21 = vpop.f32.mrf.mxu0 }
  0xa5   :  { %v403_v23 = vmax.f32 %v252_v21, 0.0  ;;  %v7304_v19 = vld [vmem:[#allocation3 + $0x3a8] sm:$0xff] }
  0xa6   :  { %1603 = vmatpush.bf16.msra.mxu3 %v7281_v16  ;;  %v265_v24 = vpop.f32.mrf.mxu1  ;;  %1566 = vmatpush.bf16.msra.mxu0 %v7255_v18  ;;  %v7313_v16 = vld [vmem:[#allocation3 + $0x3f0] sm:$0xff]  ;;  %v7295_v18 = vld [vmem:[#allocation3 + $0x360] sm:$0xff] }
  0xa7   :  { %v404_v26 = vmax.f32 %v265_v24, 0.0  ;;  %v419_v28 = vpack.c.bf16 %v403_v23, %v403_v23  ;;  %v7294_v24 = vld [vmem:[#allocation3 + $0x358] sm:$0xff] }
  0xa8   :  { %1579 = vmatpush.bf16.msra.mxu1 %v7263_v20  ;;  %1591 = vmatpush.bf16.msra.mxu2 %v7272_v22  ;;  %v7312_v20 = vld [vmem:[#allocation3 + $0x3e8] sm:$0xff]  ;;  %v7286_v22 = vld [vmem:[#allocation3 + $0x318] sm:$0xff] }
  0xa9   :  { %v420_v30 = vpack.c.bf16 %v404_v26, %v404_v26  ;;  %1519 = vmatmul.bf16.vlgmr.msrb.gmra.mxu0 %v419_v28  ;;  %v7303_v26 = vld [vmem:[#allocation3 + $0x3a0] sm:$0xff] }
  0xaa   :  { %1604 = vmatpush.bf16.msra.mxu3 %v7280_v25  ;;  %1567 = vmatpush.bf16.msra.mxu0 %v7254_v27  ;;  %v278_v33 = vpop.f32.mrf.mxu2  ;;  %v7311_v28 = vld [vmem:[#allocation3 + $0x3e0] sm:$0xff] }
  0xab   :  { %1532 = vmatmul.bf16.vlgmr.msrb.gmra.mxu1 %v420_v30  ;;  %v405_v35 = vmax.f32 %v278_v33, 0.0  ;;  %v7293_v30 = vld [vmem:[#allocation3 + $0x350] sm:$0xff] }
  0xac   :  { %1580 = vmatpush.bf16.msra.mxu1 %v7262_v29  ;;  %v291_v36 = vpop.f32.mrf.mxu3  ;;  %1592 = vmatpush.bf16.msra.mxu2 %v7271_v31  ;;  %v254_v38 = vpop.f32.mrf.mxu0  ;;  %v7285_v29 = vld [vmem:[#allocation3 + $0x310] sm:$0xff]  ;;  %v7302_v31 = vld [vmem:[#allocation3 + $0x398] sm:$0xff] }
  0xad   :  { %v406_v39 = vmax.f32 %v291_v36, 0.0  ;;  %v421_v41 = vpack.c.bf16 %v405_v35, %v405_v35  ;;  %v7292_v36 = vld [vmem:[#allocation3 + $0x348] sm:$0xff]  ;;  %v7301_v38 = vld [vmem:[#allocation3 + $0x390] sm:$0xff] }
  0xae   :  { %1605 = vmatpush.bf16.msra.mxu3 %v7279_v32  ;;  %v267_v42 = vpop.f32.mrf.mxu1  ;;  %1568 = vmatpush.bf16.msra.mxu0 %v7253_v34  ;;  %v7310_v32 = vld [vmem:[#allocation3 + $0x3d8] sm:$0xff]  ;;  %v7284_v34 = vld [vmem:[#allocation3 + $0x308] sm:$0xff] }
  0xaf   :  { %v422_v44 = vpack.c.bf16 %v406_v39, %v406_v39  ;;  %1545 = vmatmul.bf16.vlgmr.msrb.gmra.mxu2 %v421_v41  ;;  %v7309_v41 = vld [vmem:[#allocation3 + $0x3d0] sm:$0xff] }
  0xb0   :  { %1581 = vmatpush.bf16.msra.mxu1 %v7261_v37  ;;  %1593 = vmatpush.bf16.msra.mxu2 %v7270_v40 }
  0xb1   :  { %1558 = vmatmul.bf16.vlgmr.msrb.gmra.mxu3 %v422_v44  ;;  %v7291_v44 = vld [vmem:[#allocation3 + $0x340] sm:$0xff] }
  0xb2   :  { %1606 = vmatpush.bf16.msra.mxu3 %v7278_v43  ;;  %1569 = vmatpush.bf16.msra.mxu0 %v7252_v45  ;;  %v280_v49 = vpop.f32.mrf.mxu2  ;;  %v7283_v43 = vld [vmem:[#allocation3 + $0x300] sm:$0xff]  ;;  %v7300_v45 = vld [vmem:[#allocation3 + $0x388] sm:$0xff] }
  0xb4   :  { %1582 = vmatpush.bf16.msra.mxu1 %v7260_v46  ;;  %v293_v51 = vpop.f32.mrf.mxu3  ;;  %1594 = vmatpush.bf16.msra.mxu2 %v7269_v47  ;;  %v304_v54 = vpop.f32.mrf.mxu0  ;;  %v7308_v47 = vld [vmem:[#allocation3 + $0x3c8] sm:$0xff] }
  0xb5   :  { %v407_v57 = vmax.f32 %v304_v54, 0.0  ;;  %v7307_v54 = vld [vmem:[#allocation3 + $0x3c0] sm:$0xff] }
  0xb6   :  { %1607 = vmatpush.bf16.msra.mxu3 %v7277_v48  ;;  %v317_v58 = vpop.f32.mrf.mxu1  ;;  %1570 = vmatpush.bf16.msra.mxu0 %v7251_v50 }
  0xb7   :  { %v408_v60 = vmax.f32 %v317_v58, 0.0  ;;  %v423_v61 = vpack.c.bf16 %v407_v57, %v407_v57 }
  0xb8   :  { %1583 = vmatpush.bf16.msra.mxu1 %v7259_v53  ;;  %1595 = vmatpush.bf16.msra.mxu2 %v7268_v55  ;;  %v7299_v53 = vld [vmem:[#allocation3 + $0x380] sm:$0xff] }
  0xb9   :  { %v424_v63 = vpack.c.bf16 %v408_v60, %v408_v60  ;;  %1571 = vmatmul.bf16.vlgmr.msra.gmra.mxu0 %v423_v61 }
  0xba   :  { %1615 = vmatpush.bf16.msrb.mxu0 %v7290_v52  ;;  %1608 = vmatpush.bf16.msra.mxu3 %v7276_v59  ;;  %v330_v4 = vpop.f32.mrf.mxu2 }
  0xbb   :  { %1584 = vmatmul.bf16.vlgmr.msra.gmra.mxu1 %v424_v63  ;;  %v409_v6 = vmax.f32 %v330_v4, 0.0 }
  0xbc   :  { %1628 = vmatpush.bf16.msrb.mxu1 %v7298_v56  ;;  %v343_v7 = vpop.f32.mrf.mxu3  ;;  %1596 = vmatpush.bf16.msra.mxu2 %v7267_v0  ;;  %v306_v11 = vpop.f32.mrf.mxu0 }
  0xbd   :  { %v410_v9 = vmax.f32 %v343_v7, 0.0  ;;  %v425_v12 = vpack.c.bf16 %v409_v6, %v409_v6 }
  0xbe   :  { %1616 = vmatpush.bf16.msrb.mxu0 %v7289_v62  ;;  %1609 = vmatpush.bf16.msra.mxu3 %v7275_v2  ;;  %v319_v14 = vpop.f32.mrf.mxu1 }
  0xbf   :  { %v426_v15 = vpack.c.bf16 %v410_v9, %v410_v9  ;;  %1597 = vmatmul.bf16.vlgmr.msra.gmra.mxu2 %v425_v12 }
  0xc0   :  { %1629 = vmatpush.bf16.msrb.mxu1 %v7297_v1  ;;  %1641 = vmatpush.bf16.msrb.mxu2 %v7306_v3  ;;  %v7663_v3 = vld [vmem:[%s9913_s3] ss:$0 sm:$0xff] }
  0xc1   :  { %1610 = vmatmul.bf16.vlgmr.msra.gmra.mxu3 %v426_v15 }
  0xc2   :  { %1654 = vmatpush.bf16.msrb.mxu3 %v7314_v5  ;;  %1617 = vmatpush.bf16.msrb.mxu0 %v7288_v8  ;;  %v332_v21 = vpop.f32.mrf.mxu2 }
  0xc4   :  { %1630 = vmatpush.bf16.msrb.mxu1 %v7296_v10  ;;  %1642 = vmatpush.bf16.msrb.mxu2 %v7305_v13  ;;  %v345_v23 = vpop.f32.mrf.mxu3  ;;  %v356_v25 = vpop.f32.mrf.mxu0 }
  0xc5   :  { %v411_v40 = vmax.f32 %v356_v25, 0.0 }
  0xc6   :  { %1655 = vmatpush.bf16.msrb.mxu3 %v7313_v16  ;;  %1618 = vmatpush.bf16.msrb.mxu0 %v7287_v17  ;;  %v369_v27 = vpop.f32.mrf.mxu1 }
  0xc7   :  { %v412_v42 = vmax.f32 %v369_v27, 0.0  ;;  %v427_v46 = vpack.c.bf16 %v411_v40, %v411_v40 }
  0xc8   :  { %1631 = vmatpush.bf16.msrb.mxu1 %v7295_v18  ;;  %1643 = vmatpush.bf16.msrb.mxu2 %v7304_v19 }
  0xc9   :  { %v428_v49 = vpack.c.bf16 %v412_v42, %v412_v42 }
  0xca   :  { %1656 = vmatpush.bf16.msrb.mxu3 %v7312_v20  ;;  %1619 = vmatpush.bf16.msrb.mxu0 %v7286_v22  ;;  %v382_v33 = vpop.f32.mrf.mxu2 }
  0xcb   :  { %v413_v51 = vmax.f32 %v382_v33, 0.0 }
  0xcc   :  { %1632 = vmatpush.bf16.msrb.mxu1 %v7294_v24  ;;  %1644 = vmatpush.bf16.msrb.mxu2 %v7303_v26  ;;  %v395_v35 = vpop.f32.mrf.mxu3  ;;  %v358_v37 = vpop.f32.mrf.mxu0 }
  0xcd   :  { %v414_v52 = vmax.f32 %v395_v35, 0.0  ;;  %v429_v55 = vpack.c.bf16 %v413_v51, %v413_v51 }
  0xce   :  { %1657 = vmatpush.bf16.msrb.mxu3 %v7311_v28  ;;  %1620 = vmatpush.bf16.msrb.mxu0 %v7285_v29  ;;  %v371_v39 = vpop.f32.mrf.mxu1 }
  0xcf   :  { %v430_v56 = vpack.c.bf16 %v414_v52, %v414_v52 }
  0xd0   :  { %1633 = vmatpush.bf16.msrb.mxu1 %v7293_v30  ;;  %1645 = vmatpush.bf16.msrb.mxu2 %v7302_v31  ;;  %v1667_v31 = vlaneseq }
  0xd2   :  { %1658 = vmatpush.bf16.msrb.mxu3 %v7310_v32  ;;  %1621 = vmatpush.bf16.msrb.mxu0 %v7284_v34  ;;  %v384_v48 = vpop.f32.mrf.mxu2  ;;  %v1668_v34 = vshrl.u32 %v1667_v31, 7  ;;  %v5863_v31 = vld [vmem:[#allocation5 + $0x38] sm:$0xf0] }
  0xd4   :  { %1634 = vmatpush.bf16.msrb.mxu1 %v7292_v36  ;;  %1646 = vmatpush.bf16.msrb.mxu2 %v7301_v38  ;;  %v397_v50 = vpop.f32.mrf.mxu3  ;;  %vm1669_vm2 = vcmp.lt.s32.totalorder %v1668_v34, 4  ;;  %v5837_v34 = vld [vmem:[#allocation5] sm:$0xf] }
  0xd6   :  { %1659 = vmatpush.bf16.msrb.mxu3 %v7309_v41  ;;  %1622 = vmatpush.bf16.msrb.mxu0 %v7283_v43  ;;  %v7887_v41 = vmov 0.0  }
  0xd7   :  { %v5786_v42 = vsel %vm1669_vm2, 1.0, %v7887_v41 }
  0xd8   :  { %1635 = vmatpush.bf16.msrb.mxu1 %v7291_v44  ;;  %1647 = vmatpush.bf16.msrb.mxu2 %v7300_v45 }
  0xd9   :  { %1623 = vmatmul.bf16.vlgmr.msrb.gmra.mxu0 %v427_v46 }
  0xda   :  { %1660 = vmatpush.bf16.msrb.mxu3 %v7308_v47 }
  0xdb   :  { %1636 = vmatmul.bf16.vlgmr.msrb.gmra.mxu1 %v428_v49 }
  0xdc   :  { %1648 = vmatpush.bf16.msrb.mxu2 %v7299_v53 }
  0xde   :  { %1661 = vmatpush.bf16.msrb.mxu3 %v7307_v54 }
  0xdf   :  { %1649 = vmatmul.bf16.vlgmr.msrb.gmra.mxu2 %v429_v55 }
  0xe1   :  { %1662 = vmatmul.bf16.vlgmr.msrb.gmra.mxu3 %v430_v56 }
 0x116   :  { %v1468_v57 = vpop.f32.mrf.mxu0 }
 0x117   :  { %v1469_v6 = vadd.f32 %v7663_v3, %v1468_v57  ;;  %v5815_v3 = vld [vmem:[#allocation5 + $0x38] sm:$0xf0] }
 0x118   :  { %v1481_v58 = vpop.f32.mrf.mxu1 }
 0x119   :  { %v1482_v9 = vadd.f32 %v1481_v58, %v1469_v6 }
 0x11e   :  { %v1470_v59 = vpop.f32.mrf.mxu0 }
 0x11f   :  { %v5805_v59 = vld [vmem:[#allocation5 + $0x20] sm:$0xf] }
 0x120   :  { %v1483_v60 = vpop.f32.mrf.mxu1 }
 0x121   :  { %v7321_v60 = vld [vmem:[#allocation5 + $0x2c] sm:$0xf0] }
 0x122   :  { %v1494_v61 = vpop.f32.mrf.mxu2 }
 0x123   :  { %v1495_v12 = vadd.f32 %v1494_v61, %v1482_v9  ;;  %v7317_v9 = vld [vmem:[#allocation5 + $0xc] sm:$0xf0] }
 0x124   :  { %v1507_v62 = vpop.f32.mrf.mxu3 }
 0x125   :  { %v1508_v15 = vadd.f32 %v1507_v62, %v1495_v12  ;;  %v5806_v62 = vor.u32 %v7321_v60, %v5805_v59  ;;  %v7665_v60 = vld [vmem:[%s9915_s5] ss:$0 sm:$0xff] }
 0x126   :  { %v1520_v63 = vpop.f32.mrf.mxu0 }
 0x127   :  { %v1521_v18 = vadd.f32 %v1520_v63, %v1508_v15  ;;  %v7319_v63 = vld [vmem:[#allocation5 + $0x24] sm:$0xf]  ;;  %1783 = vmatpush.bf16.msra.mxu0 %v5806_v62  ;;  %v5797_v15 = vld [vmem:[#allocation5 + $0x8] sm:$0xf] }
 0x128   :  { %v1533_v0 = vpop.f32.mrf.mxu1 }
 0x129   :  { %v1534_v21 = vadd.f32 %v1533_v0, %v1521_v18  ;;  %v5807_v0 = vld [vmem:[#allocation5 + $0x30] sm:$0xf0]  ;;  %v7316_v18 = vld [vmem:[#allocation5 + $0xc] sm:$0xf] }
 0x12a   :  { %v1496_v1 = vpop.f32.mrf.mxu2 }
 0x12b   :  { %v5810_v1 = vor.u32 %v7319_v63, %v5807_v0  ;;  %v5997_v63 = vld [vmem:[%s9918_s8 + $0xe0] sm:$0xf]  ;;  %v7364_v0 = vld [vmem:[%s9918_s8 + $0xec] sm:$0xf0] }
 0x12c   :  { %v1509_v2 = vpop.f32.mrf.mxu3 }
 0x12d   :  { %v7320_v2 = vld [vmem:[#allocation5 + $0x2c] sm:$0xf]  ;;  %1796 = vmatpush.bf16.msra.mxu1 %v5810_v1  ;;  %v7362_v1 = vld [vmem:[%s9918_s8 + $0xe4] sm:$0xf] }
 0x12e   :  { %v1522_v4 = vpop.f32.mrf.mxu0  ;;  %v5818_v6 = vor.u32 %v7320_v2, %v5815_v3  ;;  %v7363_v2 = vld [vmem:[%s9918_s8 + $0xec] sm:$0xf] }
 0x12f   :  { %v5813_v4 = vld [vmem:[#allocation5 + $0x28] sm:$0xf] }
 0x130   :  { %v1535_v5 = vpop.f32.mrf.mxu1  ;;  %1822 = vmatpush.bf16.msra.mxu3 %v5818_v6  ;;  %v7365_v6 = vld [vmem:[%s9918_s8 + $0xf4] sm:$0xf0] }
 0x132   :  { %v1546_v7 = vpop.f32.mrf.mxu2 }
 0x133   :  { %v1547_v22 = vadd.f32 %v1546_v7, %v1534_v21  ;;  %v7322_v7 = vld [vmem:[#allocation5 + $0x34] sm:$0xf0] }
 0x134   :  { %v1559_v8 = vpop.f32.mrf.mxu3 }
 0x135   :  { %v1560_v23 = vadd.f32 %v1559_v8, %v1547_v22  ;;  %v5789_v8 = vld [vmem:[#allocation5] sm:$0xf] }
 0x136   :  { %v1572_v10 = vpop.f32.mrf.mxu0 }
 0x137   :  { %v1573_v26 = vadd.f32 %v1572_v10, %v1560_v23  ;;  %v7315_v10 = vld [vmem:[#allocation5 + $0x4] sm:$0xf] }
 0x138   :  { %v1585_v11 = vpop.f32.mrf.mxu1 }
 0x139   :  { %v1586_v27 = vadd.f32 %v1585_v11, %v1573_v26  ;;  %v5814_v11 = vor.u32 %v7322_v7, %v5813_v4  ;;  %v7330_v26 = vld [vmem:[#allocation5 + $0x24] sm:$0xf]  ;;  %v6007_v4 = vld [vmem:[%s9918_s8 + $0xf8] sm:$0xf0] }
 0x13a   :  { %v1548_v13 = vpop.f32.mrf.mxu2 }
 0x13b   :  { %v5790_v13 = vor.u32 %v7317_v9, %v5789_v8  ;;  %1809 = vmatpush.bf16.msra.mxu2 %v5814_v11  ;;  %v5998_v8 = vor.u32 %v7364_v0, %v5997_v63  ;;  %v6010_v11 = vor.u32 %v7363_v2, %v6007_v4  ;;  %v5941_v2 = vld [vmem:[%s9918_s8 + $0x68] sm:$0xf]  ;;  %v7349_v4 = vld [vmem:[%s9918_s8 + $0x74] sm:$0xf0] }
 0x13c   :  { %v1561_v14 = vpop.f32.mrf.mxu3 }
 0x13d   :  { %v5791_v14 = vld [vmem:[#allocation5 + $0x10] sm:$0xf0]  ;;  %1784 = vmatpush.bf16.msra.mxu0 %v5790_v13  ;;  %v7358_v13 = vld [vmem:[%s9918_s8 + $0xc4] sm:$0xf] }
 0x13e   :  { %v1574_v16 = vpop.f32.mrf.mxu0 }
 0x13f   :  { %v5794_v16 = vor.u32 %v7315_v10, %v5791_v14  ;;  %v5981_v10 = vld [vmem:[%s9918_s8 + $0xc0] sm:$0xf]  ;;  %v5983_v14 = vld [vmem:[%s9918_s8 + $0xd0] sm:$0xf0] }
 0x140   :  { %v1587_v17 = vpop.f32.mrf.mxu1 }
 0x141   :  { %v7318_v17 = vld [vmem:[#allocation5 + $0x14] sm:$0xf0]  ;;  %1797 = vmatpush.bf16.msra.mxu1 %v5794_v16  ;;  %v7359_v16 = vld [vmem:[%s9918_s8 + $0xcc] sm:$0xf] }
 0x142   :  { %v1598_v19 = vpop.f32.mrf.mxu2  ;;  %v5798_v21 = vor.u32 %v7318_v17, %v5797_v15  ;;  %v5991_v17 = vld [vmem:[%s9918_s8 + $0xd8] sm:$0xf0] }
 0x143   :  { %v1599_v29 = vadd.f32 %v1598_v19, %v1586_v27  ;;  %v5799_v19 = vld [vmem:[#allocation5 + $0x18] sm:$0xf0] }
 0x144   :  { %v1611_v20 = vpop.f32.mrf.mxu3  ;;  %v5802_v22 = vor.u32 %v7316_v18, %v5799_v19  ;;  %1810 = vmatpush.bf16.msra.mxu2 %v5798_v21  ;;  %v5986_v19 = vor.u32 %v7358_v13, %v5983_v14  ;;  %v7356_v21 = vld [vmem:[%s9918_s8 + $0xac] sm:$0xf0]  ;;  %v7345_v13 = vld [vmem:[%s9918_s8 + $0x54] sm:$0xf0] }
 0x145   :  { %v1612_v32 = vadd.f32 %v1611_v20, %v1599_v29  ;;  %v5855_v29 = vld [vmem:[#allocation5 + $0x30] sm:$0xf0] }
 0x146   :  { %1823 = vmatpush.bf16.msra.mxu3 %v5802_v22  ;;  %v7354_v22 = vld [vmem:[%s9918_s8 + $0xa4] sm:$0xf] }
 0x14a   :  { %v1600_v24 = vpop.f32.mrf.mxu2 }
 0x14b   :  { %v5853_v24 = vld [vmem:[#allocation5 + $0x20] sm:$0xf] }
 0x14c   :  { %v1613_v25 = vpop.f32.mrf.mxu3 }
 0x14d   :  { %v7332_v25 = vld [vmem:[#allocation5 + $0x2c] sm:$0xf0] }
 0x156   :  { %v1624_v28 = vpop.f32.mrf.mxu0 }
 0x157   :  { %v1625_v33 = vadd.f32 %v1624_v28, %v1612_v32  ;;  %v5854_v28 = vor.u32 %v7332_v25, %v5853_v24  ;;  %v5858_v32 = vor.u32 %v7330_v26, %v5855_v29  ;;  %v5967_v24 = vld [vmem:[%s9918_s8 + $0xb0] sm:$0xf0]  ;;  %v5989_v25 = vld [vmem:[%s9918_s8 + $0xc8] sm:$0xf]  ;;  %v7361_v26 = vld [vmem:[%s9918_s8 + $0xd4] sm:$0xf0] }
 0x158   :  { %v1637_v30 = vpop.f32.mrf.mxu1  ;;  %v5990_v29 = vor.u32 %v7361_v26, %v5989_v25  ;;  %v5909_v25 = vld [vmem:[%s9918_s8 + $0x28] sm:$0xf]  ;;  %v7341_v26 = vld [vmem:[%s9918_s8 + $0x34] sm:$0xf0] }
 0x159   :  { %v1638_v37 = vadd.f32 %v1637_v30, %v1625_v33  ;;  %v7331_v30 = vld [vmem:[#allocation5 + $0x2c] sm:$0xf]  ;;  %1934 = vmatpush.bf16.msrb.mxu0 %v5854_v28  ;;  %1962 = vmatpush.bf16.msrb.mxu1 %v5858_v32  ;;  %v5975_v28 = vld [vmem:[%s9918_s8 + $0xb8] sm:$0xf0]  ;;  %v5970_v32 = vor.u32 %v7354_v22, %v5967_v24  ;;  %v5887_v22 = vld [vmem:[%s9918_s8 + $0x10] sm:$0xf0] }
 0x15a   :  { %v5866_v33 = vor.u32 %v7331_v30, %v5863_v31  ;;  %v5973_v30 = vld [vmem:[%s9918_s8 + $0xa8] sm:$0xf] }
 0x15c   :  { %2018 = vmatpush.bf16.msrb.mxu3 %v5866_v33  ;;  %v5949_v33 = vld [vmem:[%s9918_s8 + $0x80] sm:$0xf] }
 0x15e   :  { %v1626_v35 = vpop.f32.mrf.mxu0 }
 0x15f   :  { %v7328_v35 = vld [vmem:[#allocation5 + $0xc] sm:$0xf0] }
 0x160   :  { %v1639_v36 = vpop.f32.mrf.mxu1 }
 0x161   :  { %v7326_v36 = vld [vmem:[#allocation5 + $0x4] sm:$0xf] }
 0x162   :  { %v1650_v38 = vpop.f32.mrf.mxu2 }
 0x163   :  { %v1651_v39 = vadd.f32 %v1650_v38, %v1638_v37  ;;  %v5838_v38 = vor.u32 %v7328_v35, %v5837_v34  ;;  %v7357_v34 = vld [vmem:[%s9918_s8 + $0xb4] sm:$0xf0] }
 0x164   :  { %v1663_v40 = vpop.f32.mrf.mxu3 }
 0x165   :  { %v1664_v43 = vadd.f32 %v1663_v40, %v1651_v39  ;;  %v5839_v39 = vld [vmem:[#allocation5 + $0x10] sm:$0xf0]  ;;  %v5861_v40 = vld [vmem:[#allocation5 + $0x28] sm:$0xf]  ;;  %1935 = vmatpush.bf16.msrb.mxu0 %v5838_v38 }
 0x166   :  { %v5842_v41 = vor.u32 %v7326_v36, %v5839_v39  ;;  %v7352_v36 = vld [vmem:[%s9918_s8 + $0x8c] sm:$0xf0]  ;;  %v5951_v38 = vld [vmem:[%s9918_s8 + $0x90] sm:$0xf0]  ;;  %v5974_v39 = vor.u32 %v7357_v34, %v5973_v30  ;;  %v7335_v30 = vld [vmem:[%s9918_s8 + $0xc] sm:$0xf] }
 0x167   :  { %v1672_v44 = vmul.f32 %v5786_v42, %v1664_v43  ;;  %v7325_v34 = vld [vmem:[%s9916_s6 + $0x10] sm:$0xff] }
 0x168   :  { %1963 = vmatpush.bf16.msrb.mxu1 %v5842_v41  ;;  %v5959_v41 = vld [vmem:[%s9918_s8 + $0x98] sm:$0xf0] }
 0x169   :  { %v1674_v45 = vsel %vm1673_vm3, %v1672_v44, 0.0  ;;  %v7329_v44 = vld [vmem:[#allocation5 + $0x14] sm:$0xf0] }
 0x16a   :  { %v1675_v46 = vrot.slane %v1674_v45, 4  ;;  %v1652_v47 = vpop.f32.mrf.mxu2 }
 0x16b   :  { %v7327_v47 = vld [vmem:[#allocation5 + $0xc] sm:$0xf] }
 0x16c   :  { %v1665_v48 = vpop.f32.mrf.mxu3  ;;  %v1676_v49 = vadd.f32 %v1675_v46, %v1674_v45 }
 0x16d   :  { %v5847_v48 = vld [vmem:[#allocation5 + $0x18] sm:$0xf0] }
 0x16e   :  { %v1677_v50 = vrot.slane %v1676_v49, 2 }
 0x170   :  { %v1678_v51 = vadd.f32 %v1677_v50, %v1676_v49  ;;  %v5850_v49 = vor.u32 %v7327_v47, %v5847_v48  ;;  %v7348_v47 = vld [vmem:[%s9918_s8 + $0x6c] sm:$0xf0]  ;;  %v7346_v48 = vld [vmem:[%s9918_s8 + $0x64] sm:$0xf] }
 0x172   :  { %v1679_v52 = vrot.slane %v1678_v51, 1  ;;  %2019 = vmatpush.bf16.msrb.mxu3 %v5850_v49 }
 0x174   :  { %v1680_v53 = vadd.f32 %v1679_v52, %v1678_v51 }
 0x176   :  { %v1681_v54 = vmul.f32 0.25, %v1680_v53 }
 0x178   :  { %v8044_v55 = vsub.f32 %v1664_v43, %v1681_v54  ;;  %v5845_v43 = vld [vmem:[#allocation5 + $0x8] sm:$0xf] }
 0x179   :  { %v5846_v50 = vor.u32 %v7329_v44, %v5845_v43 }
 0x17a   :  { %v1683_v56 = vmul.f32 %v8044_v55, %v8044_v55 }
 0x17c   :  { %v1684_v57 = vmul.f32 %v5786_v42, %v1683_v56  ;;  %v7333_v42 = vld [vmem:[#allocation5 + $0x34] sm:$0xf0]  ;;  %v7664_v56 = vld [vmem:[%s9914_s4] ss:$0 sm:$0xff] }
 0x17d   :  { %v5862_v46 = vor.u32 %v7333_v42, %v5861_v40  ;;  %v1697_v59 = vmul.f32 %v7664_v56, %v8044_v55  ;;  %v5999_v55 = vld [vmem:[%s9918_s8 + $0xf0] sm:$0xf0]  ;;  %v7351_v40 = vld [vmem:[%s9918_s8 + $0x8c] sm:$0xf]  ;;  %v5950_v42 = vor.u32 %v7352_v36, %v5949_v33  ;;  %v5957_v56 = vld [vmem:[%s9918_s8 + $0x88] sm:$0xf] }
 0x17e   :  { %v1685_v58 = vsel %vm1673_vm3, %v1684_v57, 0.0  ;;  %v6002_v9 = vor.u32 %v7362_v1, %v5999_v55  ;;  %v5962_v44 = vor.u32 %v7351_v40, %v5959_v41  ;;  %v7343_v1 = vld [vmem:[%s9918_s8 + $0x4c] sm:$0xf]  ;;  %v5927_v55 = vld [vmem:[%s9918_s8 + $0x58] sm:$0xf0] }
 0x17f   :  { %v1686_v61 = vrot.slane %v1685_v58, 4  ;;  %1990 = vmatpush.bf16.msrb.mxu2 %v5862_v46  ;;  %v5933_v46 = vld [vmem:[%s9918_s8 + $0x60] sm:$0xf] }
 0x180   :  { %v5934_v49 = vor.u32 %v7348_v47, %v5933_v46 }
 0x181   :  { %v1687_v5 = vadd.f32 %v1686_v61, %v1685_v58 }
 0x183   :  { %v1688_v12 = vrot.slane %v1687_v5, 2  ;;  %1991 = vmatpush.bf16.msrb.mxu2 %v5846_v50  ;;  %v5935_v50 = vld [vmem:[%s9918_s8 + $0x70] sm:$0xf0] }
 0x185   :  { %v1689_v20 = vadd.f32 %v1688_v12, %v1687_v5  ;;  %v6005_v5 = vld [vmem:[%s9918_s8 + $0xe8] sm:$0xf]  ;;  %v7360_v12 = vld [vmem:[%s9918_s8 + $0xcc] sm:$0xf0] }
 0x186   :  { %v6006_v15 = vor.u32 %v7365_v6, %v6005_v5  ;;  %v5982_v18 = vor.u32 %v7360_v12, %v5981_v10  ;;  %v5942_v5 = vor.u32 %v7349_v4, %v5941_v2  ;;  %v7324_v6 = vld [vmem:[%s9916_s6 + $0x8] sm:$0xff] }
 0x187   :  { %v1690_v23 = vrot.slane %v1689_v20, 1  ;;  %v5925_v12 = vld [vmem:[%s9918_s8 + $0x48] sm:$0xf] }
 0x189   :  { %v1691_v27 = vadd.f32 %v1690_v23, %v1689_v20  ;;  %v5965_v20 = vld [vmem:[%s9918_s8 + $0xa0] sm:$0xf]  ;;  %v5994_v23 = vor.u32 %v7359_v16, %v5991_v17  ;;  %v7339_v16 = vld [vmem:[%s9918_s8 + $0x2c] sm:$0xf]  ;;  %v5911_v17 = vld [vmem:[%s9918_s8 + $0x38] sm:$0xf0] }
 0x18a   :  { %v5966_v31 = vor.u32 %v7356_v21, %v5965_v20  ;;  %v7336_v20 = vld [vmem:[%s9918_s8 + $0xc] sm:$0xf0]  ;;  %v7334_v21 = vld [vmem:[%s9918_s8 + $0x4] sm:$0xf] }
 0x18b   :  { %v1692_v37 = vmul.f32 0.25, %v1691_v27  ;;  %v7355_v27 = vld [vmem:[%s9918_s8 + $0xac] sm:$0xf]  ;;  %v5890_v24 = vor.u32 %v7334_v21, %v5887_v22 }
 0x18c   :  { %v5978_v35 = vor.u32 %v7355_v27, %v5975_v28  ;;  %v5893_v27 = vld [vmem:[%s9918_s8 + $0x8] sm:$0xf]  ;;  %v5910_v28 = vor.u32 %v7341_v26, %v5909_v25  ;;  %v7404_v25 = vld [vmem:[%s9918_s8 + $0xec] sm:$0xf0] }
 0x18d   :  { %v1698_v45 = vadd.f32 1e-05, %v1692_v37  ;;  %v7350_v37 = vld [vmem:[%s9918_s8 + $0x84] sm:$0xf]  ;;  %v7371_v22 = vld [vmem:[#allocation7 + $0x28] sm:$0xff] }
 0x18e   :  { %v5954_v43 = vor.u32 %v7350_v37, %v5951_v38  ;;  %v7888_v38 = vmov 0  }
 0x18f   :  { %7674 = vrsqrt.f32 %v1698_v45  ;;  %vm1705_vm5 = vweird.f32 %v1698_v45 }
 0x195   :  { %v7675_v51 = vpop.eup %7674 }
 0x196   :  { %v1700_v52 = vmul.f32 %v7675_v51, %v1698_v45  ;;  %vm1706_vm4 = vweird.f32 %v7675_v51  ;;  %v7323_v45 = vld [vmem:[%s9916_s6] sm:$0xff] }
 0x197   :  { %vm1707_vm6 = vmor %vm1705_vm5, %vm1706_vm4 }
 0x198   :  { %v1701_v53 = vmul.f32 %v7675_v51, %v1700_v52  ;;  %v5943_v52 = vld [vmem:[%s9918_s8 + $0x78] sm:$0xf0] }
 0x19a   :  { %v1702_v54 = vmul.f32 0.5, %v1701_v53  ;;  %v5938_v53 = vor.u32 %v7346_v48, %v5935_v50 }
 0x19c   :  { %v1703_v57 = vsub.f32 1.5, %v1702_v54 }
 0x19e   :  { %v1704_v58 = vmul.f32 %v7675_v51, %v1703_v57  ;;  %v7353_v57 = vld [vmem:[%s9918_s8 + $0x94] sm:$0xf0] }
 0x1a0   :  { %v1708_v61 = vsel %vm1707_vm6, %v7675_v51, %v1704_v58  ;;  %v7347_v51 = vld [vmem:[%s9918_s8 + $0x6c] sm:$0xf]  ;;  %v5917_v58 = vld [vmem:[%s9918_s8 + $0x40] sm:$0xf] }
 0x1a1   :  { %v1709_v62 = vmul.f32 %v1708_v61, %v1697_v59  ;;  %v5946_v54 = vor.u32 %v7347_v51, %v5943_v52  ;;  %v5958_v59 = vor.u32 %v7353_v57, %v5957_v56  ;;  %v7342_v61 = vld [vmem:[%s9918_s8 + $0x44] sm:$0xf] }
 0x1a3   :  { %v1714_v3 = vadd.f32 %v7665_v60, %v1709_v62  ;;  %v7344_v60 = vld [vmem:[%s9918_s8 + $0x4c] sm:$0xf0]  ;;  %v5919_v62 = vld [vmem:[%s9918_s8 + $0x50] sm:$0xf0] }
 0x1a4   :  { %v5918_v63 = vor.u32 %v7344_v60, %v5917_v58  ;;  %v5922_v0 = vor.u32 %v7342_v61, %v5919_v62 }
 0x1a5   :  { %v1715_v7 = vpack.c.bf16 %v1714_v3, %v1714_v3  ;;  %v5930_v3 = vor.u32 %v7343_v1, %v5927_v55 }
 0x1a7   :  { %5819 = vmatmul.msk.bf16.vlgmr.msra.gmra.mxu0 %vm1673_vm3, %v1715_v7  ;;  %5820 = vmatmul.msk.bf16.vlgmr.msra.gmra.mxu1 %vm1673_vm3, %v1715_v7 }
 0x1a8   :  { %5821 = vmatmul.msk.bf16.vlgmr.msra.gmra.mxu2 %vm1673_vm3, %v1715_v7  ;;  %5822 = vmatmul.msk.bf16.vlgmr.msra.gmra.mxu3 %vm1673_vm3, %v1715_v7  ;;  %v5901_v7 = vld [vmem:[%s9918_s8 + $0x20] sm:$0xf] }
 0x1a9   :  { %2264 = vmatpush.bf16.msra.mxu0 %v5998_v8  ;;  %2277 = vmatpush.bf16.msra.mxu1 %v6002_v9  ;;  %v7340_v8 = vld [vmem:[%s9918_s8 + $0x2c] sm:$0xf0]  ;;  %v7338_v9 = vld [vmem:[%s9918_s8 + $0x24] sm:$0xf] }
 0x1aa   :  { %2303 = vmatpush.bf16.msra.mxu3 %v6010_v11  ;;  %2290 = vmatpush.bf16.msra.mxu2 %v6006_v15  ;;  %v5902_v10 = vor.u32 %v7340_v8, %v5901_v7  ;;  %v5903_v11 = vld [vmem:[%s9918_s8 + $0x30] sm:$0xf0]  ;;  %v5926_v15 = vor.u32 %v7345_v13, %v5925_v12  ;;  %v7373_v12 = vld [vmem:[#allocation7 + $0x38] sm:$0xff] }
 0x1ab   :  { %v5906_v14 = vor.u32 %v7338_v9, %v5903_v11  ;;  %v7372_v13 = vld [vmem:[#allocation7 + $0x30] sm:$0xff] }
 0x1ad   :  { %2265 = vmatpush.bf16.msra.mxu0 %v5982_v18  ;;  %2278 = vmatpush.bf16.msra.mxu1 %v5986_v19  ;;  %v5885_v18 = vld [vmem:[%s9918_s8] sm:$0xf]  ;;  %v5914_v19 = vor.u32 %v7339_v16, %v5911_v17 }
 0x1ae   :  { %2304 = vmatpush.bf16.msra.mxu3 %v5994_v23  ;;  %2291 = vmatpush.bf16.msra.mxu2 %v5990_v29  ;;  %v5886_v23 = vor.u32 %v7336_v20, %v5885_v18  ;;  %v7337_v29 = vld [vmem:[%s9918_s8 + $0x14] sm:$0xf0] }
 0x1af   :  { %v5894_v33 = vor.u32 %v7337_v29, %v5893_v27  ;;  %v7402_v29 = vld [vmem:[%s9918_s8 + $0xe4] sm:$0xf] }
 0x1b1   :  { %2266 = vmatpush.bf16.msra.mxu0 %v5966_v31  ;;  %2279 = vmatpush.bf16.msra.mxu1 %v5970_v32  ;;  %v5895_v31 = vld [vmem:[%s9918_s8 + $0x18] sm:$0xf0] }
 0x1b2   :  { %2305 = vmatpush.bf16.msra.mxu3 %v5978_v35  ;;  %2292 = vmatpush.bf16.msra.mxu2 %v5974_v39  ;;  %v5898_v32 = vor.u32 %v7335_v30, %v5895_v31  ;;  %v1839_v35 = vld [vmem:[%s9916_s6 + $0x18] sm:$0xf]  ;;  %v6162_v30 = vld [vmem:[%s9918_s8 + $0xf0] sm:$0xf0]  ;;  %v6168_v31 = vld [vmem:[%s9918_s8 + $0xe8] sm:$0xf] }
 0x1b3   :  { %v1871_v36 = vunpack.c.l.b16 %v1839_v35 }
 0x1b5   :  { %2267 = vmatpush.bf16.msra.mxu0 %v5950_v42  ;;  %2280 = vmatpush.bf16.msra.mxu1 %v5954_v43  ;;  %v1875_v37 = vpack.c.b16 %v1871_v36, %v1871_v36  ;;  %v6165_v36 = vor.u32 %v7402_v29, %v6162_v30 }
 0x1b6   :  { %2306 = vmatpush.bf16.msra.mxu3 %v5962_v44  ;;  %2293 = vmatpush.bf16.msra.mxu2 %v5958_v59 }
 0x1b7   :  { %5867 = vmatmul.msk.bf16.vlgmr.msrb.gmra.mxu0 %vm1673_vm3, %v7323_v45  ;;  %5871 = vmatmul.msk.bf16.vlgmr.msrb.gmra.mxu1 %vm1673_vm3, %v7323_v45 }
 0x1b8   :  { %5875 = vmatmul.msk.bf16.vlgmr.msrb.gmra.mxu2 %vm1673_vm3, %v7323_v45  ;;  %5879 = vmatmul.msk.bf16.vlgmr.msrb.gmra.mxu3 %vm1673_vm3, %v7323_v45 }
 0x1b9   :  { %2268 = vmatpush.bf16.msra.mxu0 %v5934_v49  ;;  %2281 = vmatpush.bf16.msra.mxu1 %v5938_v53  ;;  %v1848_v53 = vld [vmem:[%s9919_s9] sm:$0xf] }
 0x1ba   :  { %2307 = vmatpush.bf16.msra.mxu3 %v5946_v54  ;;  %2294 = vmatpush.bf16.msra.mxu2 %v5942_v5  ;;  %v8303_v54 = vperm.slane %v1848_v53, 0  ;;  %v8305_v56 = vperm.slane %v1848_v53, 1 }
 0x1bd   :  { %2269 = vmatpush.bf16.msra.mxu0 %v5918_v63  ;;  %2282 = vmatpush.bf16.msra.mxu1 %v5922_v0  ;;  %v8317_v63 = vperm.slane %v1848_v53, 2  ;;  %v8319_v0 = vperm.slane %v1848_v53, 3  ;;  %v7400_v53 = vld [vmem:[%s9918_s8 + $0xcc] sm:$0xf0] }
 0x1be   :  { %2308 = vmatpush.bf16.msra.mxu3 %v5930_v3  ;;  %2295 = vmatpush.bf16.msra.mxu2 %v5926_v15 }
 0x1c1   :  { %2270 = vmatpush.bf16.msra.mxu0 %v5902_v10  ;;  %2283 = vmatpush.bf16.msra.mxu1 %v5906_v14 }
 0x1c2   :  { %2309 = vmatpush.bf16.msra.mxu3 %v5914_v19  ;;  %2296 = vmatpush.bf16.msra.mxu2 %v5910_v28 }
 0x1c5   :  { %2271 = vmatpush.bf16.msra.mxu0 %v5886_v23  ;;  %2284 = vmatpush.bf16.msra.mxu1 %v5890_v24  ;;  %v7370_v23 = vld [vmem:[#allocation7 + $0x20] sm:$0xff] }
 0x1c6   :  { %2310 = vmatpush.bf16.msra.mxu3 %v5898_v32  ;;  %2297 = vmatpush.bf16.msra.mxu2 %v5894_v33  ;;  %v6160_v24 = vld [vmem:[%s9918_s8 + $0xe0] sm:$0xf] }
 0x1c7   :  { %5868 = vmatmul.msk.bf16.gmra.mxu0 %vm1673_vm3, %v7324_v6  ;;  %5872 = vmatmul.msk.bf16.gmra.mxu1 %vm1673_vm3, %v7324_v6  ;;  %v6161_v28 = vor.u32 %v7404_v25, %v6160_v24  ;;  %v7394_v24 = vld [vmem:[%s9918_s8 + $0xa4] sm:$0xf]  ;;  %v6130_v25 = vld [vmem:[%s9918_s8 + $0xb0] sm:$0xf0] }
 0x1c8   :  { %5876 = vmatmul.msk.bf16.gmra.mxu2 %vm1673_vm3, %v7324_v6  ;;  %5880 = vmatmul.msk.bf16.gmra.mxu3 %vm1673_vm3, %v7324_v6 }
 0x1c9   :  { %2452 = vmatpush.bf16.msrb.mxu0 %v7373_v12  ;;  %2662 = vmatpush.bf16.msrb.mxu1 %v6161_v28  ;;  %v8404_v12 = vld [vmem:[%s9919_s9] sm:$0xf] }
 0x1ca   :  { %2675 = vmatpush.bf16.msrb.mxu2 %v6165_v36 }
 0x1cd   :  { %2453 = vmatpush.bf16.msrb.mxu0 %v7372_v13 }
 0x1d1   :  { %2454 = vmatpush.bf16.msrb.mxu0 %v7371_v22 }
 0x1d5   :  { %2455 = vmatpush.bf16.msrb.mxu0 %v7370_v23 }
 0x1d7   :  { %5869 = vmatmul.msk.bf16.gmra.mxu0 %vm1673_vm3, %v7325_v34  ;;  %5873 = vmatmul.msk.bf16.gmra.mxu1 %vm1673_vm3, %v7325_v34 }
 0x1d8   :  { %5877 = vmatmul.msk.bf16.gmra.mxu2 %vm1673_vm3, %v7325_v34  ;;  %5881 = vmatmul.msk.bf16.gmra.mxu3 %vm1673_vm3, %v7325_v34 }
 0x1e7   :  { %5870 = vmatmul.msk.bf16.gmra.mxu0 %vm1673_vm3, %v1875_v37  ;;  %5874 = vmatmul.msk.bf16.gmra.mxu1 %vm1673_vm3, %v1875_v37 }
 0x1e8   :  { %5878 = vmatmul.msk.bf16.gmra.mxu2 %vm1673_vm3, %v1875_v37  ;;  %5882 = vmatmul.msk.bf16.gmra.mxu3 %vm1673_vm3, %v1875_v37  ;;  %v7405_v37 = vld [vmem:[%s9918_s8 + $0xf4] sm:$0xf0] }
 0x1f7   :  { %2272 = vmatmul.bf16.vlgmr.msra.gmra.mxu0 %v7888_v38  ;;  %2285 = vmatmul.bf16.vlgmr.msra.gmra.mxu1 %v7888_v38 }
 0x1f8   :  { %2298 = vmatmul.bf16.vlgmr.msra.gmra.mxu2 %v7888_v38  ;;  %2311 = vmatmul.bf16.vlgmr.msra.gmra.mxu3 %v7888_v38 }
 0x224   :  { %v8280_v39 = vpop.f32.mrf.mxu0  ;;  %v8282_v40 = vpop.f32.mrf.mxu1 }
 0x22b   :  { %v8284_v41 = vpop.f32.mrf.mxu2  ;;  %v8286_v42 = vpop.f32.mrf.mxu3 }
 0x22c   :  { %v1788_v43 = vpop.f32.mrf.mxu0  ;;  %v1801_v44 = vpop.f32.mrf.mxu1 }
 0x22d   :  { %v6169_v44 = vor.u32 %v7405_v37, %v6168_v31  ;;  %v6133_v31 = vor.u32 %v7394_v24, %v6130_v25  ;;  %v1727_v37 = vperm.slane %v8404_v12, 1 }
 0x22f   :  { %2688 = vmatpush.bf16.msrb.mxu3 %v6169_v44  ;;  %v7367_v44 = vld [vmem:[#allocation7 + $0x8] sm:$0xff] }
 0x233   :  { %v1814_v45 = vpop.f32.mrf.mxu2  ;;  %v1827_v46 = vpop.f32.mrf.mxu3 }
 0x234   :  { %v8288_v47 = vpop.f32.mrf.mxu0  ;;  %v8290_v48 = vpop.f32.mrf.mxu1  ;;  %v7369_v45 = vld [vmem:[#allocation7 + $0x18] sm:$0xff]  ;;  %v6144_v46 = vld [vmem:[%s9918_s8 + $0xc0] sm:$0xf] }
 0x235   :  { %2456 = vmatpush.bf16.msrb.mxu0 %v7369_v45  ;;  %v6112_v45 = vld [vmem:[%s9918_s8 + $0x80] sm:$0xf] }
 0x23b   :  { %v8292_v49 = vpop.f32.mrf.mxu2  ;;  %v8294_v50 = vpop.f32.mrf.mxu3 }
 0x23c   :  { %v8296_v51 = vpop.f32.mrf.mxu0  ;;  %v8298_v52 = vpop.f32.mrf.mxu1 }
 0x243   :  { %v8307_v57 = vpop.f32.mrf.mxu2  ;;  %v8309_v58 = vpop.f32.mrf.mxu3 }
 0x244   :  { %v1942_v59 = vpop.f32.mrf.mxu0  ;;  %v1970_v60 = vpop.f32.mrf.mxu1 }
 0x245   :  { %v8312_v61 = vadd.f32 %v1942_v59, %v8303_v54  ;;  %v8315_v62 = vadd.f32 %v1970_v60, %v8305_v56  ;;  %v6145_v59 = vor.u32 %v7400_v53, %v6144_v46  ;;  %v7398_v60 = vld [vmem:[%s9918_s8 + $0xc4] sm:$0xf]  ;;  %v7392_v46 = vld [vmem:[%s9918_s8 + $0x8c] sm:$0xf0] }
 0x246   :  { %v6113_v53 = vor.u32 %v7392_v46, %v6112_v45 }
 0x247   :  { %2663 = vmatpush.bf16.msrb.mxu1 %v6145_v59  ;;  %v7390_v59 = vld [vmem:[%s9918_s8 + $0x84] sm:$0xf] }
 0x24b   :  { %v1998_v1 = vpop.f32.mrf.mxu2  ;;  %v2026_v55 = vpop.f32.mrf.mxu3 }
 0x24c   :  { %v8322_v2 = vadd.f32 %v1998_v1, %v8317_v63  ;;  %v8325_v3 = vadd.f32 %v2026_v55, %v8319_v0  ;;  %v8327_v4 = vpop.f32.mrf.mxu0  ;;  %v8329_v5 = vpop.f32.mrf.mxu1  ;;  %v6146_v1 = vld [vmem:[%s9918_s8 + $0xd0] sm:$0xf0]  ;;  %v6152_v55 = vld [vmem:[%s9918_s8 + $0xc8] sm:$0xf] }
 0x253   :  { %v8331_v6 = vpop.f32.mrf.mxu2  ;;  %v8333_v7 = vpop.f32.mrf.mxu3 }
 0x254   :  { %v1947_v8 = vpop.f32.mrf.mxu0  ;;  %v1975_v9 = vpop.f32.mrf.mxu1 }
 0x255   :  { %v8336_v10 = vadd.f32 %v1947_v8, %v8303_v54  ;;  %v8339_v11 = vadd.f32 %v1975_v9, %v8305_v56  ;;  %v6149_v8 = vor.u32 %v7398_v60, %v6146_v1  ;;  %v7401_v9 = vld [vmem:[%s9918_s8 + $0xd4] sm:$0xf0]  ;;  %v6114_v60 = vld [vmem:[%s9918_s8 + $0x90] sm:$0xf0]  ;;  %v6120_v1 = vld [vmem:[%s9918_s8 + $0x88] sm:$0xf] }
 0x256   :  { %v6153_v13 = vor.u32 %v7401_v9, %v6152_v55  ;;  %v6117_v55 = vor.u32 %v7390_v59, %v6114_v60  ;;  %v7384_v59 = vld [vmem:[%s9918_s8 + $0x4c] sm:$0xf0]  ;;  %v7382_v60 = vld [vmem:[%s9918_s8 + $0x44] sm:$0xf] }
 0x257   :  { %2676 = vmatpush.bf16.msrb.mxu2 %v6149_v8  ;;  %v7393_v8 = vld [vmem:[%s9918_s8 + $0x94] sm:$0xf0] }
 0x258   :  { %2689 = vmatpush.bf16.msrb.mxu3 %v6153_v13  ;;  %v6121_v9 = vor.u32 %v7393_v8, %v6120_v1  ;;  %v1729_v13 = vperm.slane %v8404_v12, 3 }
 0x25b   :  { %v2003_v14 = vpop.f32.mrf.mxu2  ;;  %v2031_v15 = vpop.f32.mrf.mxu3  ;;  %2677 = vmatpush.bf16.msrb.mxu2 %v6133_v31 }
 0x25c   :  { %v8342_v16 = vadd.f32 %v2003_v14, %v8317_v63  ;;  %v8345_v17 = vadd.f32 %v2031_v15, %v8319_v0  ;;  %v1949_v18 = vpop.f32.mrf.mxu0  ;;  %v1977_v19 = vpop.f32.mrf.mxu1  ;;  %v7368_v14 = vld [vmem:[#allocation7 + $0x10] sm:$0xff]  ;;  %v6128_v15 = vld [vmem:[%s9918_s8 + $0xa0] sm:$0xf] }
 0x25d   :  { %v8348_v20 = vadd.f32 %v1949_v18, %v8303_v54  ;;  %v8351_v21 = vadd.f32 %v1977_v19, %v8305_v56  ;;  %v7396_v18 = vld [vmem:[%s9918_s8 + $0xac] sm:$0xf0]  ;;  %2457 = vmatpush.bf16.msrb.mxu0 %v7368_v14  ;;  %v7366_v14 = vld [vmem:[#allocation7] sm:$0xff] }
 0x25e   :  { %v6129_v23 = vor.u32 %v7396_v18, %v6128_v15  ;;  %v6096_v15 = vld [vmem:[%s9918_s8 + $0x60] sm:$0xf]  ;;  %v7388_v18 = vld [vmem:[%s9918_s8 + $0x6c] sm:$0xf0] }
 0x25f   :  { %2678 = vmatpush.bf16.msrb.mxu2 %v6117_v55  ;;  %v6097_v25 = vor.u32 %v7388_v18, %v6096_v15  ;;  %v6088_v15 = vld [vmem:[%s9918_s8 + $0x48] sm:$0xf]  ;;  %v7385_v18 = vld [vmem:[%s9918_s8 + $0x54] sm:$0xf0] }
 0x260   :  { %2664 = vmatpush.bf16.msrb.mxu1 %v6129_v23 }
 0x261   :  { %2458 = vmatpush.bf16.msrb.mxu0 %v7367_v44 }
 0x263   :  { %v2005_v26 = vpop.f32.mrf.mxu2  ;;  %v2033_v27 = vpop.f32.mrf.mxu3 }
 0x264   :  { %v8369_v32 = vadd.f32 %v2005_v26, %v8317_v63  ;;  %v8372_v33 = vadd.f32 %v2033_v27, %v8319_v0  ;;  %v1952_v34 = vpop.f32.mrf.mxu0  ;;  %v1980_v35 = vpop.f32.mrf.mxu1  ;;  %v6136_v26 = vld [vmem:[%s9918_s8 + $0xa8] sm:$0xf]  ;;  %2665 = vmatpush.bf16.msrb.mxu1 %v6113_v53  ;;  %v6080_v53 = vld [vmem:[%s9918_s8 + $0x40] sm:$0xf] }
 0x265   :  { %v8378_v38 = vadd.f32 %v1952_v34, %v8303_v54  ;;  %v8381_v43 = vadd.f32 %v1980_v35, %v8305_v56  ;;  %v7397_v34 = vld [vmem:[%s9918_s8 + $0xb4] sm:$0xf0]  ;;  %v1726_v35 = vperm.slane %v8404_v12, 0  ;;  %2459 = vmatpush.bf16.msrb.mxu0 %v7366_v14  ;;  %v6081_v8 = vor.u32 %v7384_v59, %v6080_v53 }
 0x266   :  { %v6137_v36 = vor.u32 %v7397_v34, %v6136_v26  ;;  %v7386_v26 = vld [vmem:[%s9918_s8 + $0x64] sm:$0xf]  ;;  %v7389_v34 = vld [vmem:[%s9918_s8 + $0x74] sm:$0xf0] }
 0x268   :  { %2690 = vmatpush.bf16.msrb.mxu3 %v6137_v36  ;;  %v6170_v36 = vld [vmem:[%s9918_s8 + $0xf8] sm:$0xf0]  ;;  %2666 = vmatpush.bf16.msrb.mxu1 %v6097_v25  ;;  %v7380_v25 = vld [vmem:[%s9918_s8 + $0x2c] sm:$0xf0] }
 0x26b   :  { %v2008_v19 = vpop.f32.mrf.mxu2  ;;  %v2036_v22 = vpop.f32.mrf.mxu3 }
 0x26c   :  { %v8422_v27 = vadd.f32 %v2008_v19, %v8317_v63  ;;  %v8425_v28 = vadd.f32 %v2036_v22, %v8319_v0  ;;  %v1954_v29 = vpop.f32.mrf.mxu0  ;;  %v1982_v30 = vpop.f32.mrf.mxu1  ;;  %v1787_v19 = vadd.f32 %v8280_v39, %v1726_v35  ;;  %v1800_v22 = vadd.f32 %v8282_v40, %v1727_v37  ;;  %2691 = vmatpush.bf16.msrb.mxu3 %v6121_v9  ;;  %v7403_v35 = vld [vmem:[%s9918_s8 + $0xec] sm:$0xf]  ;;  %v6082_v9 = vld [vmem:[%s9918_s8 + $0x50] sm:$0xf0] }
 0x26d   :  { %v6098_v29 = vld [vmem:[%s9918_s8 + $0x70] sm:$0xf0]  ;;  %v6104_v30 = vld [vmem:[%s9918_s8 + $0x68] sm:$0xf]  ;;  %v6173_v46 = vor.u32 %v7403_v35, %v6170_v36  ;;  %v6085_v14 = vor.u32 %v7382_v60, %v6082_v9  ;;  %2667 = vmatpush.bf16.msrb.mxu1 %v6081_v8  ;;  %v7395_v36 = vld [vmem:[%s9918_s8 + $0xac] sm:$0xf] }
 0x26e   :  { %v6101_v40 = vor.u32 %v7386_v26, %v6098_v29  ;;  %v6105_v45 = vor.u32 %v7389_v34, %v6104_v30  ;;  %v1826_v26 = vadd.f32 %v8286_v42, %v1729_v13  ;;  %v7381_v13 = vld [vmem:[%s9918_s8 + $0x34] sm:$0xf0]  ;;  %v6048_v60 = vld [vmem:[%s9918_s8] sm:$0xf]  ;;  %v6050_v9 = vld [vmem:[%s9918_s8 + $0x10] sm:$0xf0] }
 0x26f   :  { %2701 = vmatpush.bf16.msra.mxu0 %v6173_v46 }
 0x270   :  { %2679 = vmatpush.bf16.msrb.mxu2 %v6101_v40  ;;  %2692 = vmatpush.bf16.msrb.mxu3 %v6105_v45  ;;  %v6072_v40 = vld [vmem:[%s9918_s8 + $0x28] sm:$0xf] }
 0x271   :  { %v6073_v53 = vor.u32 %v7381_v13, %v6072_v40  ;;  %v7387_v40 = vld [vmem:[%s9918_s8 + $0x6c] sm:$0xf]  ;;  %v6106_v13 = vld [vmem:[%s9918_s8 + $0x78] sm:$0xf0] }
 0x273   :  { %v2010_v23 = vpop.f32.mrf.mxu2  ;;  %v2038_v24 = vpop.f32.mrf.mxu3 }
 0x274   :  { %v2273_v31 = vpop.f32.mrf.mxu0  ;;  %v2286_v39 = vpop.f32.mrf.mxu1  ;;  %v6154_v23 = vld [vmem:[%s9918_s8 + $0xd8] sm:$0xf0]  ;;  %v6064_v24 = vld [vmem:[%s9918_s8 + $0x20] sm:$0xf]  ;;  %2680 = vmatpush.bf16.msrb.mxu2 %v6085_v14  ;;  %v6056_v14 = vld [vmem:[%s9918_s8 + $0x8] sm:$0xf] }
 0x275   :  { %v2316_v37 = vadd.f32 %v2273_v31, %v1787_v19  ;;  %v2317_v44 = vadd.f32 %v2286_v39, %v1800_v22  ;;  %v7399_v19 = vld [vmem:[%s9918_s8 + $0xcc] sm:$0xf]  ;;  %v6089_v22 = vor.u32 %v7385_v18, %v6088_v15  ;;  %v6065_v30 = vor.u32 %v7380_v25, %v6064_v24  ;;  %v7378_v31 = vld [vmem:[%s9918_s8 + $0x24] sm:$0xf]  ;;  %v6066_v39 = vld [vmem:[%s9918_s8 + $0x30] sm:$0xf0] }
 0x276   :  { %v6157_v29 = vor.u32 %v7399_v19, %v6154_v23  ;;  %v6069_v42 = vor.u32 %v7378_v31, %v6066_v39  ;;  %v7377_v15 = vld [vmem:[%s9918_s8 + $0x14] sm:$0xf0]  ;;  %v6122_v23 = vld [vmem:[%s9918_s8 + $0x98] sm:$0xf0]  ;;  %v1728_v31 = vperm.slane %v8404_v12, 2 }
 0x277   :  { %v6011_v1 = vmul.f32 -1.442695, %v2316_v37  ;;  %v6012_v55 = vmul.f32 -1.442695, %v2317_v44  ;;  %2693 = vmatpush.bf16.msrb.mxu3 %v6089_v22  ;;  %v6138_v37 = vld [vmem:[%s9918_s8 + $0xb8] sm:$0xf0]  ;;  %2668 = vmatpush.bf16.msrb.mxu1 %v6065_v30  ;;  %v6057_v25 = vor.u32 %v7377_v15, %v6056_v14 }
 0x278   :  { %2702 = vmatpush.bf16.msra.mxu0 %v6157_v29  ;;  %v6141_v59 = vor.u32 %v7395_v36, %v6138_v37  ;;  %2681 = vmatpush.bf16.msrb.mxu2 %v6069_v42  ;;  %v7391_v22 = vld [vmem:[%s9918_s8 + $0x8c] sm:$0xf]  ;;  %v6109_v36 = vor.u32 %v7387_v40, %v6106_v13  ;;  %v1813_v12 = vadd.f32 %v8284_v41, %v1728_v31 }
 0x279   :  { %7676 = vpow2.f32 %v6011_v1  ;;  %v7376_v1 = vld [vmem:[%s9918_s8 + $0xc] sm:$0xf0]  ;;  %v6125_v30 = vor.u32 %v7391_v22, %v6122_v23  ;;  %v7383_v37 = vld [vmem:[%s9918_s8 + $0x4c] sm:$0xf] }
 0x27a   :  { %7678 = vpow2.f32 %v6012_v55  ;;  %v7374_v55 = vld [vmem:[%s9918_s8 + $0x4] sm:$0xf]  ;;  %v6049_v8 = vor.u32 %v7376_v1, %v6048_v60  ;;  %v7379_v41 = vld [vmem:[%s9918_s8 + $0x2c] sm:$0xf] }
 0x27b   :  { %v2299_v34 = vpop.f32.mrf.mxu2  ;;  %v2312_v35 = vpop.f32.mrf.mxu3  ;;  %v6053_v19 = vor.u32 %v7374_v55, %v6050_v9  ;;  %2694 = vmatpush.bf16.msrb.mxu3 %v6073_v53 }
 0x27c   :  { %v2319_v44 = vadd.f32 %v2312_v35, %v1826_v26  ;;  %v2275_v45 = vpop.f32.mrf.mxu0  ;;  %v2288_v46 = vpop.f32.mrf.mxu1  ;;  %2703 = vmatpush.bf16.msra.mxu0 %v6141_v59  ;;  %2669 = vmatpush.bf16.msrb.mxu1 %v6049_v8  ;;  %v6074_v8 = vld [vmem:[%s9918_s8 + $0x38] sm:$0xf0] }
 0x27d   :  { %2682 = vmatpush.bf16.msrb.mxu2 %v6053_v19  ;;  %v2318_v46 = vadd.f32 %v2299_v34, %v1813_v12  ;;  %v6077_v19 = vor.u32 %v7379_v41, %v6074_v8 }
 0x27e   :  { %v6013_v18 = vmul.f32 -1.442695, %v2319_v44  ;;  %v6090_v44 = vld [vmem:[%s9918_s8 + $0x58] sm:$0xf0] }
 0x27f   :  { %v7677_v24 = vpop.eup %7676  ;;  %2695 = vmatpush.bf16.msrb.mxu3 %v6057_v25  ;;  %v6093_v60 = vor.u32 %v7383_v37, %v6090_v44  ;;  %v6058_v25 = vld [vmem:[%s9918_s8 + $0x18] sm:$0xf0] }
 0x280   :  { %v7679_v26 = vpop.eup %7678  ;;  %v2323_v29 = vadd.f32 1.0, %v7677_v24  ;;  %7680 = vpow2.f32 %v6013_v18  ;;  %2704 = vmatpush.bf16.msra.mxu0 %v6125_v30  ;;  %v7375_v24 = vld [vmem:[%s9918_s8 + $0xc] sm:$0xf] }
 0x281   :  { %v2342_v39 = vadd.f32 1.0, %v7679_v26 }
 0x282   :  { %7682 = vrcp.f32 %v2323_v29  ;;  %v2333_v34 = vand.u32 2147483647, %v2323_v29  ;;  %v2335_v18 = vand.u32 2147483648, %v2323_v29  ;;  %vm2329_vm10 = vweird.f32 %v2323_v29 }
 0x283   :  { %7684 = vrcp.f32 %v2342_v39  ;;  %v2314_v35 = vpop.f32.mrf.mxu3  ;;  %v2301_v42 = vpop.f32.mrf.mxu2  ;;  %v2354_v22 = vand.u32 2147483648, %v2342_v39  ;;  %v2352_v30 = vand.u32 2147483647, %v2342_v39  ;;  %vm2348_vm9 = vweird.f32 %v2342_v39 }
 0x284   :  { %2705 = vmatpush.bf16.msra.mxu0 %v6109_v36  ;;  %v2336_v35 = vor.u32 1.1754944e-38, %v2335_v18  ;;  %v6061_v36 = vor.u32 %v7375_v24, %v6058_v25  ;;  %vm2334_vm12 = vcmp.eq.f32.partialorder %v2333_v34, 8.507059e+37  ;;  %v7412_v24 = vld [vmem:[#allocation7 + $0x30] sm:$0xff]  ;;  %v7411_v25 = vld [vmem:[#allocation7 + $0x28] sm:$0xff] }
 0x285   :  { %v2355_v37 = vor.u32 1.1754944e-38, %v2354_v22  ;;  %vm2353_vm14 = vcmp.eq.f32.partialorder %v2352_v30, 8.507059e+37  ;;  %v7444_v30 = vld [vmem:[%s9918_s8 + $0xec] sm:$0xf0] }
 0x286   :  { %v7681_v45 = vpop.eup %7680 }
 0x287   :  { %v2362_v53 = vadd.f32 1.0, %v7681_v45 }
 0x288   :  { %v7683_v59 = vpop.eup %7682  ;;  %2706 = vmatpush.bf16.msra.mxu0 %v6093_v60 }
 0x289   :  { %v7685_v1 = vpop.eup %7684  ;;  %v2325_v55 = vmul.f32 %v7683_v59, %v2323_v29  ;;  %7686 = vrcp.f32 %v2362_v53  ;;  %vm2330_vm7 = vweird.f32 %v7683_v59  ;;  %vm2368_vm0 = vweird.f32 %v2362_v53 }
 0x28a   :  { %v2344_v9 = vmul.f32 %v7685_v1, %v2342_v39  ;;  %7688 = vtanh.f32 %v2318_v46  ;;  %vm2349_vm8 = vweird.f32 %v7685_v1  ;;  %vm2331_vm11 = vmor %vm2329_vm10, %vm2330_vm7 }
 0x28b   :  { %v2326_v14 = vsub.f32 1.0, %v2325_v55  ;;  %vm2350_vm13 = vmor %vm2348_vm9, %vm2349_vm8 }
 0x28c   :  { %v2345_v15 = vsub.f32 1.0, %v2344_v9  ;;  %2707 = vmatpush.bf16.msra.mxu0 %v6077_v19 }
 0x28d   :  { %v2327_v23 = vmul.f32 %v7683_v59, %v2326_v14  ;;  %v2374_v14 = vand.u32 2147483648, %v2362_v53 }
 0x28e   :  { %v2346_v26 = vmul.f32 %v7685_v1, %v2345_v15 }
 0x28f   :  { %v7687_v31 = vpop.eup %7686  ;;  %v2328_v40 = vadd.f32 %v7683_v59, %v2327_v23  ;;  %v2375_v34 = vor.u32 1.1754944e-38, %v2374_v14  ;;  %v7413_v23 = vld [vmem:[#allocation7 + $0x38] sm:$0xff] }
 0x290   :  { %v2347_v42 = vadd.f32 %v7685_v1, %v2346_v26  ;;  %v2364_v13 = vmul.f32 %v7687_v31, %v2362_v53  ;;  %v7689_v12 = vpop.eup %7688  ;;  %2708 = vmatpush.bf16.msra.mxu0 %v6061_v36  ;;  %vm2369_vm15 = vweird.f32 %v7687_v31  ;;  %2850 = vmatpush.bf16.msra.mxu1 %v7413_v23  ;;  %v6323_v26 = vld [vmem:[%s9918_s8 + $0xe0] sm:$0xf]  ;;  %v7445_v36 = vld [vmem:[%s9918_s8 + $0xf4] sm:$0xf0] }
 0x291   :  { %v2332_v44 = vsel %vm2331_vm11, %v7683_v59, %v2328_v40  ;;  %v2372_v59 = vand.u32 2147483647, %v2362_v53  ;;  %vm2370_vm1 = vmor %vm2368_vm0, %vm2369_vm15  ;;  %v7410_v53 = vld [vmem:[#allocation7 + $0x20] sm:$0xff] }
 0x292   :  { %v2337_v45 = vsel %vm2334_vm12, %v2336_v35, %v2332_v44  ;;  %v2351_v46 = vsel %vm2350_vm13, %v7685_v1, %v2347_v42  ;;  %v2365_v60 = vsub.f32 1.0, %v2364_v13  ;;  %v7442_v40 = vld [vmem:[%s9918_s8 + $0xe4] sm:$0xf]  ;;  %v6325_v35 = vld [vmem:[%s9918_s8 + $0xf0] sm:$0xf0] }
 0x293   :  { %v2356_v55 = vsel %vm2353_vm14, %v2355_v37, %v2351_v46  ;;  %v2379_v39 = vmul.f32 %v7689_v12, %v2337_v45  ;;  %vm2373_vm2 = vcmp.eq.f32.partialorder %v2372_v59, 8.507059e+37  ;;  %v6331_v42 = vld [vmem:[%s9918_s8 + $0xe8] sm:$0xf]  ;;  %v6328_v13 = vor.u32 %v7442_v40, %v6325_v35  ;;  %v7409_v37 = vld [vmem:[#allocation7 + $0x18] sm:$0xff]  ;;  %v6307_v44 = vld [vmem:[%s9918_s8 + $0xc0] sm:$0xf] }
 0x294   :  { %v2378_v41 = vmul.f32 0.0, %v2356_v55  ;;  %v2366_v29 = vmul.f32 %v7687_v31, %v2365_v60  ;;  %2851 = vmatpush.bf16.msra.mxu1 %v7412_v24  ;;  %v6332_v12 = vor.u32 %v7445_v36, %v6331_v42  ;;  %v7440_v45 = vld [vmem:[%s9918_s8 + $0xcc] sm:$0xf0]  ;;  %v7438_v60 = vld [vmem:[%s9918_s8 + $0xc4] sm:$0xf] }
 0x295   :  { %3073 = vmatpush.bf16.msra.mxu3 %v6328_v13  ;;  %v6308_v46 = vor.u32 %v7440_v45, %v6307_v44  ;;  %v6309_v55 = vld [vmem:[%s9918_s8 + $0xd0] sm:$0xf0]  ;;  %v7437_v24 = vld [vmem:[%s9918_s8 + $0xb4] sm:$0xf0]  ;;  %v6275_v40 = vld [vmem:[%s9918_s8 + $0x80] sm:$0xf] }
 0x296   :  { %v8577_v8 = vadd.f32 %v2379_v39, %v2378_v41  ;;  %v2367_v9 = vadd.f32 %v7687_v31, %v2366_v29  ;;  %v6315_v39 = vld [vmem:[%s9918_s8 + $0xc8] sm:$0xf]  ;;  %v6312_v41 = vor.u32 %v7438_v60, %v6309_v55  ;;  %v7441_v29 = vld [vmem:[%s9918_s8 + $0xd4] sm:$0xf0]  ;;  %v7408_v59 = vld [vmem:[#allocation7 + $0x10] sm:$0xff] }
 0x297   :  { %v6316_v14 = vor.u32 %v7441_v29, %v6315_v39  ;;  %v7432_v35 = vld [vmem:[%s9918_s8 + $0x8c] sm:$0xf0]  ;;  %v7433_v45 = vld [vmem:[%s9918_s8 + $0x94] sm:$0xf0]  ;;  %v7406_v55 = vld [vmem:[#allocation7] sm:$0xff] }
 0x298   :  { %7690 = vtanh.f32 %v8577_v8  ;;  %v2371_v15 = vsel %vm2370_vm1, %v7687_v31, %v2367_v9  ;;  %2852 = vmatpush.bf16.msra.mxu1 %v7411_v25  ;;  %v6324_v31 = vor.u32 %v7444_v30, %v6323_v26  ;;  %v7666_v9 = vld [vmem:[%s9921_s11] ss:$0 sm:$0xff]  ;;  %v1938_v25 = vadd.f32 %v8288_v47, %v8303_v54  ;;  %v7430_v47 = vld [vmem:[%s9918_s8 + $0x84] sm:$0xf] }
 0x299   :  { %v2376_v18 = vsel %vm2373_vm2, %v2375_v34, %v2371_v15  ;;  %3074 = vmatpush.bf16.msra.mxu3 %v6312_v41  ;;  %v6291_v15 = vld [vmem:[%s9918_s8 + $0xa0] sm:$0xf]  ;;  %v7436_v34 = vld [vmem:[%s9918_s8 + $0xac] sm:$0xf0]  ;;  %v6276_v36 = vor.u32 %v7432_v35, %v6275_v40  ;;  %v7422_v40 = vld [vmem:[%s9918_s8 + $0x44] sm:$0xf] }
 0x29a   :  { %3060 = vmatpush.bf16.msra.mxu2 %v6324_v31  ;;  %v7407_v31 = vld [vmem:[#allocation7 + $0x8] sm:$0xff]  ;;  %v6259_v39 = vld [vmem:[%s9918_s8 + $0x60] sm:$0xf]  ;;  %v7428_v41 = vld [vmem:[%s9918_s8 + $0x6c] sm:$0xf0] }
 0x29b   :  { %v6260_v29 = vor.u32 %v7428_v41, %v6259_v39  ;;  %v7420_v39 = vld [vmem:[%s9918_s8 + $0x2c] sm:$0xf0]  ;;  %v7418_v41 = vld [vmem:[%s9918_s8 + $0x24] sm:$0xf] }
 0x29c   :  { %2853 = vmatpush.bf16.msra.mxu1 %v7410_v53 }
 0x29e   :  { %v7691_v1 = vpop.eup %7690  ;;  %3061 = vmatpush.bf16.msra.mxu2 %v6308_v46 }
 0x29f   :  { %v2382_v19 = vmul.f32 %v7691_v1, %v2376_v18  ;;  %v6292_v1 = vor.u32 %v7436_v34, %v6291_v15  ;;  %v7434_v18 = vld [vmem:[%s9918_s8 + $0xa4] sm:$0xf]  ;;  %v1966_v15 = vadd.f32 %v8290_v48, %v8305_v56 }
 0x2a0   :  { %2854 = vmatpush.bf16.msra.mxu1 %v7409_v37  ;;  %v6283_v37 = vld [vmem:[%s9918_s8 + $0x88] sm:$0xf] }
 0x2a1   :  { %v2383_v22 = vpack.c.bf16 %v2382_v19, %v2382_v19  ;;  %v6293_v19 = vld [vmem:[%s9918_s8 + $0xb0] sm:$0xf0]  ;;  %v6284_v60 = vor.u32 %v7433_v45, %v6283_v37  ;;  %v6317_v45 = vld [vmem:[%s9918_s8 + $0xd8] sm:$0xf0] }
 0x2a2   :  { %v6296_v23 = vor.u32 %v7434_v18, %v6293_v19  ;;  %3062 = vmatpush.bf16.msra.mxu2 %v6292_v1  ;;  %v7429_v1 = vld [vmem:[%s9918_s8 + $0x74] sm:$0xf0]  ;;  %v7443_v18 = vld [vmem:[%s9918_s8 + $0xec] sm:$0xf]  ;;  %v6333_v19 = vld [vmem:[%s9918_s8 + $0xf8] sm:$0xf0] }
 0x2a3   :  { %2460 = vmatmul.bf16.vlgmr.msrb.gmra.mxu0 %v2383_v22  ;;  %2670 = vmatmul.bf16.vlgmr.msrb.gmra.mxu1 %v2383_v22  ;;  %v6336_v48 = vor.u32 %v7443_v18, %v6333_v19  ;;  %v6301_v18 = vld [vmem:[%s9918_s8 + $0xb8] sm:$0xf0]  ;;  %v6211_v19 = vld [vmem:[%s9918_s8] sm:$0xf] }
 0x2a4   :  { %2683 = vmatmul.bf16.vlgmr.msrb.gmra.mxu2 %v2383_v22  ;;  %2696 = vmatmul.bf16.vlgmr.msrb.gmra.mxu3 %v2383_v22 }
 0x2a5   :  { %3086 = vmatpush.bf16.msrb.mxu0 %v6332_v12  ;;  %2855 = vmatpush.bf16.msra.mxu1 %v7408_v59  ;;  %v6277_v12 = vld [vmem:[%s9918_s8 + $0x90] sm:$0xf0]  ;;  %v6267_v59 = vld [vmem:[%s9918_s8 + $0x68] sm:$0xf] }
 0x2a6   :  { %3075 = vmatpush.bf16.msra.mxu3 %v6296_v23  ;;  %v6280_v44 = vor.u32 %v7430_v47, %v6277_v12  ;;  %3063 = vmatpush.bf16.msra.mxu2 %v6276_v36  ;;  %v7425_v36 = vld [vmem:[%s9918_s8 + $0x54] sm:$0xf0] }
 0x2a9   :  { %3087 = vmatpush.bf16.msrb.mxu0 %v6316_v14  ;;  %2856 = vmatpush.bf16.msra.mxu1 %v7407_v31  ;;  %v6261_v14 = vld [vmem:[%s9918_s8 + $0x70] sm:$0xf0]  ;;  %v7424_v31 = vld [vmem:[%s9918_s8 + $0x4c] sm:$0xf0] }
 0x2aa   :  { %3076 = vmatpush.bf16.msra.mxu3 %v6280_v44  ;;  %3064 = vmatpush.bf16.msra.mxu2 %v6260_v29  ;;  %v7439_v44 = vld [vmem:[%s9918_s8 + $0xcc] sm:$0xf] }
 0x2ad   :  { %2857 = vmatpush.bf16.msra.mxu1 %v7406_v55  ;;  %v6227_v55 = vld [vmem:[%s9918_s8 + $0x20] sm:$0xf] }
 0x2b1   :  { %3099 = vmatpush.bf16.msrb.mxu1 %v6336_v48 }
 0x2b3   :  { %2709 = vmatmul.bf16.vlgmr.msra.gmra.mxu0 %v2383_v22  ;;  %v6299_v22 = vld [vmem:[%s9918_s8 + $0xa8] sm:$0xf] }
 0x2b4   :  { %v6300_v53 = vor.u32 %v7437_v24, %v6299_v22  ;;  %v6268_v24 = vor.u32 %v7429_v1, %v6267_v59  ;;  %v6235_v59 = vld [vmem:[%s9918_s8 + $0x28] sm:$0xf]  ;;  %v7435_v1 = vld [vmem:[%s9918_s8 + $0xac] sm:$0xf] }
 0x2b6   :  { %3088 = vmatpush.bf16.msrb.mxu0 %v6300_v53 }
 0x2ba   :  { %3089 = vmatpush.bf16.msrb.mxu0 %v6284_v60  ;;  %v6320_v60 = vor.u32 %v7439_v44, %v6317_v45  ;;  %v1994_v45 = vadd.f32 %v8292_v49, %v8317_v63 }
 0x2bc   :  { %3100 = vmatpush.bf16.msrb.mxu1 %v6320_v60 }
 0x2be   :  { %3090 = vmatpush.bf16.msrb.mxu0 %v6268_v24 }
 0x320   :  { %v2461_v26 = vpop.f32.mrf.mxu0  ;;  %v2671_v30 = vpop.f32.mrf.mxu1 }
 0x321   :  { %v2462_v42 = vadd.f32 %v7666_v9, %v2461_v26  ;;  %v2714_v13 = vadd.f32 %v2671_v30, %v1938_v25  ;;  %v7426_v9 = vld [vmem:[%s9918_s8 + $0x64] sm:$0xf]  ;;  %v6243_v30 = vld [vmem:[%s9918_s8 + $0x40] sm:$0xf] }
 0x322   :  { %v6264_v34 = vor.u32 %v7426_v9, %v6261_v14  ;;  %v6244_v35 = vor.u32 %v7424_v31, %v6243_v30  ;;  %v6228_v9 = vor.u32 %v7420_v39, %v6227_v55  ;;  %v6229_v14 = vld [vmem:[%s9918_s8 + $0x30] sm:$0xf0]  ;;  %v7414_v30 = vld [vmem:[%s9918_s8 + $0x4] sm:$0xf] }
 0x323   :  { %2465 = vst [vmem:[%s9922_s12] sm:$0xff] %v2462_v42  ;;  %v6174_v46 = vmul.f32 -1.442695, %v2714_v13  ;;  %v6245_v42 = vld [vmem:[%s9918_s8 + $0x50] sm:$0xf0]  ;;  %v6251_v13 = vld [vmem:[%s9918_s8 + $0x48] sm:$0xf] }
 0x324   :  { %3077 = vmatpush.bf16.msra.mxu3 %v6264_v34  ;;  %v6248_v12 = vor.u32 %v7422_v40, %v6245_v42  ;;  %v6252_v37 = vor.u32 %v7425_v36, %v6251_v13  ;;  %3065 = vmatpush.bf16.msra.mxu2 %v6244_v35  ;;  %v7421_v34 = vld [vmem:[%s9918_s8 + $0x34] sm:$0xf0]  ;;  %v6213_v31 = vld [vmem:[%s9918_s8 + $0x10] sm:$0xf0]  ;;  %v6219_v42 = vld [vmem:[%s9918_s8 + $0x8] sm:$0xf] }
 0x325   :  { %7692 = vpow2.f32 %v6174_v46  ;;  %v6216_v35 = vor.u32 %v7414_v30, %v6213_v31  ;;  %v7417_v13 = vld [vmem:[%s9918_s8 + $0x14] sm:$0xf0] }
 0x326   :  { %3091 = vmatpush.bf16.msrb.mxu0 %v6252_v37  ;;  %v6285_v37 = vld [vmem:[%s9918_s8 + $0x98] sm:$0xf0] }
 0x327   :  { %v2684_v22 = vpop.f32.mrf.mxu2  ;;  %v8686_v23 = vpop.f32.mrf.mxu3 }
 0x328   :  { %v2715_v25 = vadd.f32 %v2684_v22, %v1966_v15  ;;  %v2463_v53 = vpop.f32.mrf.mxu0  ;;  %v2673_v26 = vpop.f32.mrf.mxu1  ;;  %3078 = vmatpush.bf16.msra.mxu3 %v6248_v12  ;;  %v6232_v15 = vor.u32 %v7418_v41, %v6229_v14  ;;  %v2022_v22 = vadd.f32 %v8294_v50, %v8319_v0  ;;  %3066 = vmatpush.bf16.msra.mxu2 %v6228_v9  ;;  %v7431_v12 = vld [vmem:[%s9918_s8 + $0x8c] sm:$0xf]  ;;  %v6269_v14 = vld [vmem:[%s9918_s8 + $0x78] sm:$0xf0] }
 0x329   :  { %v6304_v53 = vor.u32 %v7435_v1, %v6301_v18  ;;  %v7416_v26 = vld [vmem:[%s9918_s8 + $0xc] sm:$0xf0]  ;;  %v2716_v41 = vadd.f32 %v8686_v23, %v1994_v45  ;;  %v7427_v9 = vld [vmem:[%s9918_s8 + $0x6c] sm:$0xf] }
 0x32a   :  { %v6175_v47 = vmul.f32 -1.442695, %v2715_v25  ;;  %v6236_v25 = vor.u32 %v7421_v34, %v6235_v59  ;;  %v6212_v50 = vor.u32 %v7416_v26, %v6211_v19  ;;  %v6272_v49 = vor.u32 %v7427_v9, %v6269_v14  ;;  %v7423_v23 = vld [vmem:[%s9918_s8 + $0x4c] sm:$0xf] }
 0x32b   :  { %v7693_v46 = vpop.eup %7692  ;;  %3101 = vmatpush.bf16.msrb.mxu1 %v6304_v53 }
 0x32c   :  { %v8721_v29 = vadd.f32 1.0, %v7693_v46  ;;  %7694 = vpow2.f32 %v6175_v47  ;;  %3079 = vmatpush.bf16.msra.mxu3 %v6232_v15  ;;  %3092 = vmatpush.bf16.msrb.mxu0 %v6236_v25  ;;  %v6220_v47 = vor.u32 %v7417_v13, %v6219_v42  ;;  %v6288_v46 = vor.u32 %v7431_v12, %v6285_v37  ;;  %v6253_v15 = vld [vmem:[%s9918_s8 + $0x58] sm:$0xf0]  ;;  %v7415_v12 = vld [vmem:[%s9918_s8 + $0xc] sm:$0xf] }
 0x32d   :  { %3067 = vmatpush.bf16.msra.mxu2 %v6212_v50  ;;  %v6237_v25 = vld [vmem:[%s9918_s8 + $0x38] sm:$0xf0] }
 0x32e   :  { %7696 = vrcp.f32 %v8721_v29  ;;  %v2733_v1 = vand.u32 2147483648, %v8721_v29  ;;  %vm2727_vm4 = vweird.f32 %v8721_v29 }
 0x32f   :  { %v2686_v24 = vpop.f32.mrf.mxu2  ;;  %v2699_v48 = vpop.f32.mrf.mxu3  ;;  %3102 = vmatpush.bf16.msrb.mxu1 %v6288_v46 }
 0x330   :  { %v2710_v40 = vpop.f32.mrf.mxu0  ;;  %3080 = vmatpush.bf16.msra.mxu3 %v6216_v35  ;;  %3093 = vmatpush.bf16.msrb.mxu0 %v6220_v47  ;;  %v6256_v24 = vor.u32 %v7423_v23, %v6253_v15  ;;  %v7419_v48 = vld [vmem:[%s9918_s8 + $0x2c] sm:$0xf] }
 0x331   :  { %v2717_v36 = vadd.f32 %v2710_v40, %v2022_v22  ;;  %v2731_v22 = vand.u32 2147483647, %v8721_v29  ;;  %v2734_v40 = vor.u32 1.1754944e-38, %v2733_v1  ;;  %v6240_v42 = vor.u32 %v7419_v48, %v6237_v25 }
 0x332   :  { %v7695_v44 = vpop.eup %7694 }
 0x333   :  { %v2740_v60 = vadd.f32 1.0, %v7695_v44  ;;  %v6176_v55 = vmul.f32 -1.442695, %v2717_v36  ;;  %3103 = vmatpush.bf16.msrb.mxu1 %v6272_v49  ;;  %vm2732_vm6 = vcmp.eq.f32.partialorder %v2731_v22, 8.507059e+37 }
 0x334   :  { %v7697_v39 = vpop.eup %7696 }
 0x335   :  { %v2723_v59 = vmul.f32 %v7697_v39, %v8721_v29  ;;  %7698 = vrcp.f32 %v2740_v60  ;;  %vm2728_vm3 = vweird.f32 %v7697_v39  ;;  %v6221_v29 = vld [vmem:[%s9918_s8 + $0x18] sm:$0xf0]  ;;  %v2752_v37 = vand.u32 2147483648, %v2740_v60 }
 0x336   :  { %7700 = vpow2.f32 %v6176_v55  ;;  %vm2729_vm5 = vmor %vm2727_vm4, %vm2728_vm3  ;;  %v2750_v46 = vand.u32 2147483647, %v2740_v60  ;;  %v6224_v55 = vor.u32 %v7415_v12, %v6221_v29  ;;  %vm2746_vm8 = vweird.f32 %v2740_v60  ;;  %v7485_v29 = vld [vmem:[%s9918_s8 + $0xf4] sm:$0xf0] }
 0x337   :  { %v2724_v34 = vsub.f32 1.0, %v2723_v59  ;;  %7702 = vtanh.f32 %v2716_v41  ;;  %3104 = vmatpush.bf16.msrb.mxu1 %v6256_v24  ;;  %v2753_v41 = vor.u32 1.1754944e-38, %v2752_v37 }
 0x338   :  { %v2712_v18 = vpop.f32.mrf.mxu0  ;;  %vm2751_vm10 = vcmp.eq.f32.partialorder %v2750_v46, 8.507059e+37  ;;  %v7480_v46 = vld [vmem:[%s9918_s8 + $0xcc] sm:$0xf0] }
 0x339   :  { %v2725_v19 = vmul.f32 %v7697_v39, %v2724_v34 }
 0x33b   :  { %v7699_v53 = vpop.eup %7698  ;;  %v2726_v26 = vadd.f32 %v7697_v39, %v2725_v19  ;;  %3105 = vmatpush.bf16.msrb.mxu1 %v6240_v42 }
 0x33c   :  { %v7701_v30 = vpop.eup %7700  ;;  %v2742_v31 = vmul.f32 %v7699_v53, %v2740_v60  ;;  %vm2747_vm7 = vweird.f32 %v7699_v53 }
 0x33d   :  { %v2730_v50 = vsel %vm2729_vm5, %v7697_v39, %v2726_v26  ;;  %v2760_v35 = vadd.f32 1.0, %v7701_v30  ;;  %v7703_v13 = vpop.eup %7702  ;;  %vm2748_vm9 = vmor %vm2746_vm8, %vm2747_vm7  ;;  %v7453_v26 = vld [vmem:[#allocation7 + $0x38] sm:$0xff]  ;;  %v7452_v30 = vld [vmem:[#allocation7 + $0x30] sm:$0xff] }
 0x33e   :  { %v2743_v36 = vsub.f32 1.0, %v2742_v31  ;;  %v2735_v47 = vsel %vm2732_vm6, %v2734_v40, %v2730_v50  ;;  %3248 = vmatpush.bf16.msrb.mxu2 %v7453_v26  ;;  %v7451_v31 = vld [vmem:[#allocation7 + $0x28] sm:$0xff]  ;;  %v7450_v40 = vld [vmem:[#allocation7 + $0x20] sm:$0xff] }
 0x33f   :  { %v2777_v44 = vmul.f32 %v7703_v13, %v2735_v47  ;;  %7704 = vrcp.f32 %v2760_v35  ;;  %3106 = vmatpush.bf16.msrb.mxu1 %v6224_v55  ;;  %v2772_v1 = vand.u32 2147483648, %v2760_v35  ;;  %v2770_v60 = vand.u32 2147483647, %v2760_v35  ;;  %v6486_v50 = vld [vmem:[%s9918_s8 + $0xe0] sm:$0xf]  ;;  %v7447_v26 = vld [vmem:[#allocation7 + $0x8] sm:$0xff] }
 0x340   :  { %v2744_v45 = vmul.f32 %v7699_v53, %v2743_v36  ;;  %vm2766_vm12 = vweird.f32 %v2760_v35  ;;  %v7482_v13 = vld [vmem:[%s9918_s8 + $0xe4] sm:$0xf]  ;;  %v6488_v36 = vld [vmem:[%s9918_s8 + $0xf0] sm:$0xf0]  ;;  %v6494_v47 = vld [vmem:[%s9918_s8 + $0xe8] sm:$0xf] }
 0x341   :  { %v2773_v22 = vor.u32 1.1754944e-38, %v2772_v1  ;;  %vm2771_vm14 = vcmp.eq.f32.partialorder %v2770_v60, 8.507059e+37  ;;  %v6491_v12 = vor.u32 %v7482_v13, %v6488_v36  ;;  %v6495_v37 = vor.u32 %v7485_v29, %v6494_v47  ;;  %v6454_v1 = vld [vmem:[%s9918_s8 + $0xa0] sm:$0xf]  ;;  %v6440_v13 = vld [vmem:[%s9918_s8 + $0x90] sm:$0xf0] }
 0x342   :  { %v2745_v39 = vadd.f32 %v7699_v53, %v2744_v45  ;;  %3249 = vmatpush.bf16.msrb.mxu2 %v7452_v30  ;;  %v6470_v45 = vld [vmem:[%s9918_s8 + $0xc0] sm:$0xf]  ;;  %v6446_v36 = vld [vmem:[%s9918_s8 + $0x88] sm:$0xf] }
 0x343   :  { %3471 = vmatpush.bf16.msra.mxu0 %v6491_v12  ;;  %v6471_v55 = vor.u32 %v7480_v46, %v6470_v45  ;;  %v6438_v30 = vld [vmem:[%s9918_s8 + $0x80] sm:$0xf]  ;;  %v7473_v12 = vld [vmem:[%s9918_s8 + $0x94] sm:$0xf0]  ;;  %v7468_v45 = vld [vmem:[%s9918_s8 + $0x6c] sm:$0xf0]  ;;  %v1940_v46 = vadd.f32 %v8296_v51, %v8303_v54 }
 0x344   :  { %v2749_v9 = vsel %vm2748_vm9, %v7699_v53, %v2745_v39  ;;  %v7478_v39 = vld [vmem:[%s9918_s8 + $0xc4] sm:$0xf]  ;;  %v6447_v29 = vor.u32 %v7473_v12, %v6446_v36  ;;  %v6390_v12 = vld [vmem:[%s9918_s8 + $0x20] sm:$0xf] }
 0x345   :  { %v7705_v14 = vpop.eup %7704  ;;  %v2754_v59 = vsel %vm2751_vm10, %v2753_v41, %v2749_v9  ;;  %v6472_v41 = vld [vmem:[%s9918_s8 + $0xd0] sm:$0xf0]  ;;  %v6478_v9 = vld [vmem:[%s9918_s8 + $0xc8] sm:$0xf] }
 0x346   :  { %v2776_v49 = vmul.f32 %v2754_v59, %v8577_v8  ;;  %v2762_v23 = vmul.f32 %v7705_v14, %v2760_v35  ;;  %vm2767_vm11 = vweird.f32 %v7705_v14  ;;  %3250 = vmatpush.bf16.msrb.mxu2 %v7451_v31  ;;  %v7484_v35 = vld [vmem:[%s9918_s8 + $0xec] sm:$0xf0]  ;;  %v7481_v59 = vld [vmem:[%s9918_s8 + $0xd4] sm:$0xf0] }
 0x347   :  { %vm2768_vm13 = vmor %vm2766_vm12, %vm2767_vm11  ;;  %v6487_v42 = vor.u32 %v7484_v35, %v6486_v50  ;;  %v7472_v31 = vld [vmem:[%s9918_s8 + $0x8c] sm:$0xf0] }
 0x348   :  { %v8797_v15 = vadd.f32 %v2777_v44, %v2776_v49  ;;  %v2763_v34 = vsub.f32 1.0, %v2762_v23  ;;  %v7449_v44 = vld [vmem:[#allocation7 + $0x18] sm:$0xff]  ;;  %v7667_v49 = vld [vmem:[%s9921_s11] ss:$0 sm:$0xff]  ;;  %v6479_v23 = vor.u32 %v7481_v59, %v6478_v9  ;;  %v6439_v35 = vor.u32 %v7472_v31, %v6438_v30  ;;  %v6430_v9 = vld [vmem:[%s9918_s8 + $0x68] sm:$0xf] }
 0x349   :  { %3458 = vmatpush.bf16.msrb.mxu3 %v6487_v42  ;;  %v7470_v42 = vld [vmem:[%s9918_s8 + $0x84] sm:$0xf]  ;;  %v6408_v30 = vld [vmem:[%s9918_s8 + $0x50] sm:$0xf0]  ;;  %v6414_v31 = vld [vmem:[%s9918_s8 + $0x48] sm:$0xf] }
 0x34a   :  { %7706 = vtanh.f32 %v8797_v15  ;;  %v2764_v18 = vmul.f32 %v7705_v14, %v2763_v34  ;;  %3251 = vmatpush.bf16.msrb.mxu2 %v7450_v40  ;;  %v7448_v34 = vld [vmem:[#allocation7 + $0x10] sm:$0xff]  ;;  %v6443_v47 = vor.u32 %v7470_v42, %v6440_v13  ;;  %v7465_v42 = vld [vmem:[%s9918_s8 + $0x54] sm:$0xf0]  ;;  %v7479_v13 = vld [vmem:[%s9918_s8 + $0xcc] sm:$0xf] }
 0x34b   :  { %v6415_v36 = vor.u32 %v7465_v42, %v6414_v31 }
 0x34c   :  { %v2765_v19 = vadd.f32 %v7705_v14, %v2764_v18  ;;  %v7476_v18 = vld [vmem:[%s9918_s8 + $0xac] sm:$0xf0] }
 0x34d   :  { %3459 = vmatpush.bf16.msrb.mxu3 %v6471_v55  ;;  %v6455_v60 = vor.u32 %v7476_v18, %v6454_v1 }
 0x34e   :  { %v2769_v24 = vsel %vm2768_vm13, %v7705_v14, %v2765_v19  ;;  %3252 = vmatpush.bf16.msrb.mxu2 %v7449_v44  ;;  %v6475_v14 = vor.u32 %v7478_v39, %v6472_v41  ;;  %v7474_v19 = vld [vmem:[%s9918_s8 + $0xa4] sm:$0xf]  ;;  %v6422_v44 = vld [vmem:[%s9918_s8 + $0x60] sm:$0xf]  ;;  %v6424_v41 = vld [vmem:[%s9918_s8 + $0x70] sm:$0xf0] }
 0x34f   :  { %v2774_v48 = vsel %vm2771_vm14, %v2773_v22, %v2769_v24  ;;  %v6456_v22 = vld [vmem:[%s9918_s8 + $0xb0] sm:$0xf0]  ;;  %v6462_v24 = vld [vmem:[%s9918_s8 + $0xa8] sm:$0xf]  ;;  %v6423_v55 = vor.u32 %v7468_v45, %v6422_v44  ;;  %v7466_v39 = vld [vmem:[%s9918_s8 + $0x64] sm:$0xf] }
 0x350   :  { %v7707_v25 = vpop.eup %7706  ;;  %3472 = vmatpush.bf16.msra.mxu0 %v6475_v14  ;;  %v1968_v14 = vadd.f32 %v8298_v52, %v8305_v56  ;;  %v6427_v51 = vor.u32 %v7466_v39, %v6424_v41  ;;  %v7458_v45 = vld [vmem:[%s9918_s8 + $0x24] sm:$0xf]  ;;  %v7461_v41 = vld [vmem:[%s9918_s8 + $0x34] sm:$0xf0] }
 0x351   :  { %v2780_v53 = vmul.f32 %v7707_v25, %v2774_v48  ;;  %v6459_v48 = vor.u32 %v7474_v19, %v6456_v22  ;;  %v7477_v25 = vld [vmem:[%s9918_s8 + $0xb4] sm:$0xf0]  ;;  %3460 = vmatpush.bf16.msrb.mxu3 %v6455_v60 }
 0x352   :  { %3253 = vmatpush.bf16.msrb.mxu2 %v7448_v34  ;;  %v6496_v34 = vld [vmem:[%s9918_s8 + $0xf8] sm:$0xf0] }
 0x353   :  { %v2781_v8 = vpack.c.bf16 %v2780_v53, %v2780_v53  ;;  %v6463_v53 = vor.u32 %v7477_v25, %v6462_v24  ;;  %v6406_v24 = vld [vmem:[%s9918_s8 + $0x40] sm:$0xf]  ;;  %v7462_v25 = vld [vmem:[%s9918_s8 + $0x44] sm:$0xf] }
 0x354   :  { %3473 = vmatpush.bf16.msra.mxu0 %v6459_v48  ;;  %v7464_v48 = vld [vmem:[%s9918_s8 + $0x4c] sm:$0xf0] }
 0x355   :  { %2858 = vmatmul.bf16.vlgmr.msra.gmra.mxu1 %v2781_v8  ;;  %3068 = vmatmul.bf16.vlgmr.msra.gmra.mxu2 %v2781_v8 }
 0x356   :  { %3081 = vmatmul.bf16.vlgmr.msra.gmra.mxu3 %v2781_v8  ;;  %3094 = vmatmul.bf16.vlgmr.msrb.gmra.mxu0 %v2781_v8 }
 0x357   :  { %3484 = vmatpush.bf16.msra.mxu1 %v6495_v37  ;;  %3254 = vmatpush.bf16.msrb.mxu2 %v7447_v26  ;;  %v7446_v37 = vld [vmem:[#allocation7] sm:$0xff]  ;;  %v6407_v26 = vor.u32 %v7464_v48, %v6406_v24  ;;  %v7457_v24 = vld [vmem:[%s9918_s8 + $0x14] sm:$0xf0] }
 0x358   :  { %3461 = vmatpush.bf16.msrb.mxu3 %v6439_v35  ;;  %3474 = vmatpush.bf16.msra.mxu0 %v6443_v47  ;;  %v6411_v35 = vor.u32 %v7462_v25, %v6408_v30  ;;  %v6480_v47 = vld [vmem:[%s9918_s8 + $0xd8] sm:$0xf0] }
 0x35b   :  { %3485 = vmatpush.bf16.msra.mxu1 %v6479_v23  ;;  %3255 = vmatpush.bf16.msrb.mxu2 %v7446_v37  ;;  %v7483_v23 = vld [vmem:[%s9918_s8 + $0xec] sm:$0xf]  ;;  %v6483_v37 = vor.u32 %v7479_v13, %v6480_v47  ;;  %v6432_v47 = vld [vmem:[%s9918_s8 + $0x78] sm:$0xf0] }
 0x35c   :  { %3462 = vmatpush.bf16.msrb.mxu3 %v6423_v55  ;;  %v6499_v52 = vor.u32 %v7483_v23, %v6496_v34  ;;  %3475 = vmatpush.bf16.msra.mxu0 %v6427_v51  ;;  %v6398_v55 = vld [vmem:[%s9918_s8 + $0x28] sm:$0xf]  ;;  %v6374_v23 = vld [vmem:[%s9918_s8] sm:$0xf]  ;;  %v7456_v34 = vld [vmem:[%s9918_s8 + $0xc] sm:$0xf0] }
 0x35d   :  { %v6399_v51 = vor.u32 %v7461_v41, %v6398_v55 }
 0x35f   :  { %3486 = vmatpush.bf16.msra.mxu1 %v6463_v53  ;;  %3497 = vmatpush.bf16.msra.mxu2 %v6499_v52  ;;  %v6375_v52 = vor.u32 %v7456_v34, %v6374_v23 }
 0x360   :  { %3463 = vmatpush.bf16.msrb.mxu3 %v6407_v26  ;;  %3476 = vmatpush.bf16.msra.mxu0 %v6411_v35 }
 0x363   :  { %3487 = vmatpush.bf16.msra.mxu1 %v6447_v29  ;;  %v7460_v29 = vld [vmem:[%s9918_s8 + $0x2c] sm:$0xf0]  ;;  %3498 = vmatpush.bf16.msra.mxu2 %v6483_v37  ;;  %v7463_v37 = vld [vmem:[%s9918_s8 + $0x4c] sm:$0xf] }
 0x364   :  { %v6391_v44 = vor.u32 %v7460_v29, %v6390_v12  ;;  %v1996_v29 = vadd.f32 %v8307_v57, %v8317_v63  ;;  %v7459_v57 = vld [vmem:[%s9918_s8 + $0x2c] sm:$0xf] }
 0x365   :  { %3107 = vmatmul.bf16.vlgmr.msrb.gmra.mxu1 %v2781_v8 }
 0x366   :  { %3464 = vmatpush.bf16.msrb.mxu3 %v6391_v44  ;;  %v6416_v44 = vld [vmem:[%s9918_s8 + $0x58] sm:$0xf0] }
 0x36a   :  { %3465 = vmatpush.bf16.msrb.mxu3 %v6375_v52 }
 0x3d2   :  { %v2859_v8 = vpop.f32.mrf.mxu1 }
 0x3d3   :  { %v2860_v40 = vadd.f32 %v7667_v49, %v2859_v8  ;;  %v8863_v50 = vpop.f32.mrf.mxu0  ;;  %v7469_v49 = vld [vmem:[%s9918_s8 + $0x74] sm:$0xf0] }
 0x3d4   :  { %v6431_v60 = vor.u32 %v7469_v49, %v6430_v9  ;;  %v7475_v9 = vld [vmem:[%s9918_s8 + $0xac] sm:$0xf] }
 0x3d5   :  { %2863 = vst [vmem:[%s9922_s12 + $0x8] sm:$0xff] %v2860_v40 }
 0x3d6   :  { %3488 = vmatpush.bf16.msra.mxu1 %v6431_v60 }
 0x3d8   :  { %v3069_v59 = vpop.f32.mrf.mxu2 }
 0x3d9   :  { %v3112_v1 = vadd.f32 %v3069_v59, %v1940_v46  ;;  %v3082_v18 = vpop.f32.mrf.mxu3  ;;  %v6392_v46 = vld [vmem:[%s9918_s8 + $0x30] sm:$0xf0] }
 0x3da   :  { %v3113_v19 = vadd.f32 %v3082_v18, %v1968_v14  ;;  %v2861_v22 = vpop.f32.mrf.mxu1  ;;  %3489 = vmatpush.bf16.msra.mxu1 %v6415_v36  ;;  %v6395_v39 = vor.u32 %v7458_v45, %v6392_v46  ;;  %v6464_v14 = vld [vmem:[%s9918_s8 + $0xb8] sm:$0xf0]  ;;  %v2024_v18 = vadd.f32 %v8309_v58, %v8319_v0  ;;  %v7471_v58 = vld [vmem:[%s9918_s8 + $0x8c] sm:$0xf]  ;;  %v3114_v46 = vadd.f32 %v8863_v50, %v1996_v29 }
 0x3db   :  { %v6337_v53 = vmul.f32 -1.442695, %v3112_v1  ;;  %v3097_v8 = vpop.f32.mrf.mxu0  ;;  %v6467_v49 = vor.u32 %v7475_v9, %v6464_v14  ;;  %v7454_v1 = vld [vmem:[%s9918_s8 + $0x4] sm:$0xf]  ;;  %v6382_v22 = vld [vmem:[%s9918_s8 + $0x8] sm:$0xf] }
 0x3dc   :  { %v6338_v40 = vmul.f32 -1.442695, %v3113_v19  ;;  %v6376_v19 = vld [vmem:[%s9918_s8 + $0x10] sm:$0xf0]  ;;  %3477 = vmatpush.bf16.msra.mxu0 %v6395_v39  ;;  %v6383_v30 = vor.u32 %v7457_v24, %v6382_v22  ;;  %v7467_v36 = vld [vmem:[%s9918_s8 + $0x6c] sm:$0xf]  ;;  %v6419_v39 = vor.u32 %v7463_v37, %v6416_v44 }
 0x3dd   :  { %7708 = vpow2.f32 %v6337_v53  ;;  %v6379_v25 = vor.u32 %v7454_v1, %v6376_v19  ;;  %v6448_v53 = vld [vmem:[%s9918_s8 + $0x98] sm:$0xf0]  ;;  %3499 = vmatpush.bf16.msra.mxu2 %v6467_v49  ;;  %v6435_v12 = vor.u32 %v7467_v36, %v6432_v47  ;;  %v7455_v19 = vld [vmem:[%s9918_s8 + $0xc] sm:$0xf] }
 0x3de   :  { %7710 = vpow2.f32 %v6338_v40  ;;  %3490 = vmatpush.bf16.msra.mxu1 %v6399_v51  ;;  %v6451_v35 = vor.u32 %v7471_v58, %v6448_v53  ;;  %v6400_v14 = vld [vmem:[%s9918_s8 + $0x38] sm:$0xf0] }
 0x3df   :  { %v6384_v22 = vld [vmem:[%s9918_s8 + $0x18] sm:$0xf0] }
 0x3e0   :  { %v3071_v59 = vpop.f32.mrf.mxu2  ;;  %3478 = vmatpush.bf16.msra.mxu0 %v6379_v25 }
 0x3e1   :  { %v3084_v60 = vpop.f32.mrf.mxu3  ;;  %3500 = vmatpush.bf16.msra.mxu2 %v6451_v35 }
 0x3e2   :  { %v3108_v48 = vpop.f32.mrf.mxu1  ;;  %3491 = vmatpush.bf16.msra.mxu1 %v6383_v30 }
 0x3e3   :  { %v7709_v8 = vpop.eup %7708  ;;  %v3115_v26 = vadd.f32 %v3108_v48, %v2024_v18  ;;  %v6403_v18 = vor.u32 %v7459_v57, %v6400_v14 }
 0x3e4   :  { %v7711_v31 = vpop.eup %7710  ;;  %v3119_v40 = vadd.f32 1.0, %v7709_v8  ;;  %v6387_v8 = vor.u32 %v7455_v19, %v6384_v22  ;;  %v7525_v22 = vld [vmem:[%s9918_s8 + $0xf4] sm:$0xf0] }
 0x3e5   :  { %v3138_v42 = vadd.f32 1.0, %v7711_v31  ;;  %v6339_v13 = vmul.f32 -1.442695, %v3115_v26  ;;  %3501 = vmatpush.bf16.msra.mxu2 %v6435_v12 }
 0x3e6   :  { %7712 = vrcp.f32 %v3119_v40  ;;  %v3129_v34 = vand.u32 2147483647, %v3119_v40  ;;  %v3131_v50 = vand.u32 2147483648, %v3119_v40  ;;  %vm3125_vm1 = vweird.f32 %v3119_v40 }
 0x3e7   :  { %7714 = vrcp.f32 %v3138_v42  ;;  %v3150_v52 = vand.u32 2147483648, %v3138_v42  ;;  %v3148_v48 = vand.u32 2147483647, %v3138_v42  ;;  %vm3144_vm3 = vweird.f32 %v3138_v42 }
 0x3e8   :  { %7716 = vpow2.f32 %v6339_v13  ;;  %v3132_v58 = vor.u32 1.1754944e-38, %v3131_v50  ;;  %vm3130_vm4 = vcmp.eq.f32.partialorder %v3129_v34, 8.507059e+37  ;;  %v6649_v34 = vld [vmem:[%s9918_s8 + $0xe0] sm:$0xf]  ;;  %v7524_v50 = vld [vmem:[%s9918_s8 + $0xec] sm:$0xf0] }
 0x3e9   :  { %7718 = vtanh.f32 %v3114_v46  ;;  %3502 = vmatpush.bf16.msra.mxu2 %v6419_v39  ;;  %v3151_v31 = vor.u32 1.1754944e-38, %v3150_v52  ;;  %vm3149_vm6 = vcmp.eq.f32.partialorder %v3148_v48, 8.507059e+37  ;;  %v6657_v52 = vld [vmem:[%s9918_s8 + $0xe8] sm:$0xf]  ;;  %v7489_v48 = vld [vmem:[#allocation7 + $0x18] sm:$0xff] }
 0x3ea   :  { %v3110_v45 = vpop.f32.mrf.mxu1 }
 0x3ec   :  { %v7713_v55 = vpop.eup %7712 }
 0x3ed   :  { %v7715_v41 = vpop.eup %7714  ;;  %v3121_v9 = vmul.f32 %v7713_v55, %v3119_v40  ;;  %vm3126_vm15 = vweird.f32 %v7713_v55  ;;  %3503 = vmatpush.bf16.msra.mxu2 %v6403_v18  ;;  %v7522_v18 = vld [vmem:[%s9918_s8 + $0xe4] sm:$0xf] }
 0x3ee   :  { %v7717_v59 = vpop.eup %7716  ;;  %v3140_v51 = vmul.f32 %v7715_v41, %v3138_v42  ;;  %vm3145_vm0 = vweird.f32 %v7715_v41  ;;  %vm3127_vm2 = vmor %vm3125_vm1, %vm3126_vm15 }
 0x3ef   :  { %v3122_v49 = vsub.f32 1.0, %v3121_v9  ;;  %v3158_v23 = vadd.f32 1.0, %v7717_v59  ;;  %v7719_v26 = vpop.eup %7718  ;;  %vm3146_vm5 = vmor %vm3144_vm3, %vm3145_vm0  ;;  %v7493_v59 = vld [vmem:[#allocation7 + $0x38] sm:$0xff] }
 0x3f0   :  { %v3141_v1 = vsub.f32 1.0, %v3140_v51  ;;  %3646 = vmatpush.bf16.msra.mxu3 %v7493_v59  ;;  %v7492_v51 = vld [vmem:[#allocation7 + $0x30] sm:$0xff]  ;;  %v6601_v59 = vld [vmem:[%s9918_s8 + $0x80] sm:$0xf] }
 0x3f1   :  { %v3123_v60 = vmul.f32 %v7713_v55, %v3122_v49  ;;  %7720 = vrcp.f32 %v3158_v23  ;;  %3504 = vmatpush.bf16.msra.mxu2 %v6387_v8  ;;  %v3170_v42 = vand.u32 2147483648, %v3158_v23  ;;  %v3168_v46 = vand.u32 2147483647, %v3158_v23  ;;  %v7491_v49 = vld [vmem:[#allocation7 + $0x28] sm:$0xff]  ;;  %v7518_v8 = vld [vmem:[%s9918_s8 + $0xc4] sm:$0xf] }
 0x3f2   :  { %v3142_v24 = vmul.f32 %v7715_v41, %v3141_v1  ;;  %vm3164_vm8 = vweird.f32 %v3158_v23  ;;  %v6650_v1 = vor.u32 %v7524_v50, %v6649_v34 }
 0x3f3   :  { %v3124_v25 = vadd.f32 %v7713_v55, %v3123_v60  ;;  %v3171_v39 = vor.u32 1.1754944e-38, %v3170_v42  ;;  %vm3169_vm10 = vcmp.eq.f32.partialorder %v3168_v46, 8.507059e+37  ;;  %v6651_v60 = vld [vmem:[%s9918_s8 + $0xf0] sm:$0xf0]  ;;  %v7514_v42 = vld [vmem:[%s9918_s8 + $0xa4] sm:$0xf] }
 0x3f4   :  { %v3143_v53 = vadd.f32 %v7715_v41, %v3142_v24  ;;  %3647 = vmatpush.bf16.msra.mxu3 %v7492_v51  ;;  %v6654_v19 = vor.u32 %v7522_v18, %v6651_v60  ;;  %3856 = vmatpush.bf16.msrb.mxu0 %v6650_v1  ;;  %v6658_v24 = vor.u32 %v7525_v22, %v6657_v52  ;;  %v6625_v46 = vld [vmem:[%s9918_s8 + $0xa8] sm:$0xf]  ;;  %v7510_v51 = vld [vmem:[%s9918_s8 + $0x84] sm:$0xf]  ;;  %v7513_v60 = vld [vmem:[%s9918_s8 + $0x94] sm:$0xf0] }
 0x3f5   :  { %v3128_v30 = vsel %vm3127_vm2, %v7713_v55, %v3124_v25  ;;  %v6633_v25 = vld [vmem:[%s9918_s8 + $0xc0] sm:$0xf]  ;;  %v6609_v18 = vld [vmem:[%s9918_s8 + $0x88] sm:$0xf] }
 0x3f6   :  { %v3133_v35 = vsel %vm3130_vm4, %v3132_v58, %v3128_v30  ;;  %v3147_v13 = vsel %vm3146_vm5, %v7715_v41, %v3143_v53  ;;  %3869 = vmatpush.bf16.msrb.mxu1 %v6654_v19  ;;  %v7520_v58 = vld [vmem:[%s9918_s8 + $0xcc] sm:$0xf0]  ;;  %v6641_v30 = vld [vmem:[%s9918_s8 + $0xc8] sm:$0xf]  ;;  %v6610_v22 = vor.u32 %v7513_v60, %v6609_v18  ;;  %v6555_v18 = vld [vmem:[%s9918_s8 + $0x30] sm:$0xf0] }
 0x3f7   :  { %v7721_v36 = vpop.eup %7720  ;;  %v3175_v47 = vmul.f32 %v7719_v26, %v3133_v35  ;;  %v3152_v12 = vsel %vm3149_vm6, %v3151_v31, %v3147_v13  ;;  %v6634_v53 = vor.u32 %v7520_v58, %v6633_v25  ;;  %v6635_v26 = vld [vmem:[%s9918_s8 + $0xd0] sm:$0xf0]  ;;  %v7521_v35 = vld [vmem:[%s9918_s8 + $0xd4] sm:$0xf0]  ;;  %v7508_v25 = vld [vmem:[%s9918_s8 + $0x6c] sm:$0xf0] }
 0x3f8   :  { %v3174_v29 = vmul.f32 %v3152_v12, %v8797_v15  ;;  %v3160_v40 = vmul.f32 %v7721_v36, %v3158_v23  ;;  %vm3165_vm7 = vweird.f32 %v7721_v36  ;;  %3648 = vmatpush.bf16.msra.mxu3 %v7491_v49  ;;  %v7490_v23 = vld [vmem:[#allocation7 + $0x20] sm:$0xff]  ;;  %v6638_v31 = vor.u32 %v7518_v8, %v6635_v26  ;;  %v7516_v12 = vld [vmem:[%s9918_s8 + $0xac] sm:$0xf0]  ;;  %v6603_v49 = vld [vmem:[%s9918_s8 + $0x90] sm:$0xf0] }
 0x3f9   :  { %vm3166_vm9 = vmor %vm3164_vm8, %vm3165_vm7  ;;  %3857 = vmatpush.bf16.msrb.mxu0 %v6634_v53  ;;  %v6642_v13 = vor.u32 %v7521_v35, %v6641_v30  ;;  %v6606_v1 = vor.u32 %v7510_v51, %v6603_v49  ;;  %v7506_v26 = vld [vmem:[%s9918_s8 + $0x64] sm:$0xf]  ;;  %v6587_v30 = vld [vmem:[%s9918_s8 + $0x70] sm:$0xf0] }
 0x3fa   :  { %v3161_v37 = vsub.f32 1.0, %v3160_v40  ;;  %v9010_v44 = vadd.f32 %v3175_v47, %v3174_v29  ;;  %3870 = vmatpush.bf16.msrb.mxu1 %v6638_v31  ;;  %v6617_v47 = vld [vmem:[%s9918_s8 + $0xa0] sm:$0xf]  ;;  %v6593_v31 = vld [vmem:[%s9918_s8 + $0x68] sm:$0xf] }
 0x3fb   :  { %v7509_v35 = vld [vmem:[%s9918_s8 + $0x74] sm:$0xf0]  ;;  %v6643_v51 = vld [vmem:[%s9918_s8 + $0xd8] sm:$0xf0]  ;;  %v6553_v49 = vld [vmem:[%s9918_s8 + $0x20] sm:$0xf] }
 0x3fc   :  { %v3162_v45 = vmul.f32 %v7721_v36, %v3161_v37  ;;  %7722 = vtanh.f32 %v9010_v44  ;;  %3649 = vmatpush.bf16.msra.mxu3 %v7490_v23  ;;  %v6618_v37 = vor.u32 %v7516_v12, %v6617_v47  ;;  %v7523_v47 = vld [vmem:[%s9918_s8 + $0xec] sm:$0xf]  ;;  %v6659_v12 = vld [vmem:[%s9918_s8 + $0xf8] sm:$0xf0] }
 0x3fe   :  { %v3163_v55 = vadd.f32 %v7721_v36, %v3162_v45  ;;  %v6619_v45 = vld [vmem:[%s9918_s8 + $0xb0] sm:$0xf0]  ;;  %3858 = vmatpush.bf16.msrb.mxu0 %v6618_v37  ;;  %v6662_v37 = vor.u32 %v7523_v47, %v6659_v12  ;;  %v6545_v47 = vld [vmem:[%s9918_s8 + $0x8] sm:$0xf]  ;;  %v7497_v12 = vld [vmem:[%s9918_s8 + $0x14] sm:$0xf0] }
 0x400   :  { %v3167_v41 = vsel %vm3166_vm9, %v7721_v36, %v3163_v55  ;;  %3650 = vmatpush.bf16.msra.mxu3 %v7489_v48  ;;  %v7488_v36 = vld [vmem:[#allocation7 + $0x10] sm:$0xff]  ;;  %v6585_v48 = vld [vmem:[%s9918_s8 + $0x60] sm:$0xf] }
 0x401   :  { %v3172_v9 = vsel %vm3169_vm10, %v3171_v39, %v3167_v41  ;;  %v6622_v39 = vor.u32 %v7514_v42, %v6619_v45  ;;  %v7517_v41 = vld [vmem:[%s9918_s8 + $0xb4] sm:$0xf0]  ;;  %v6569_v42 = vld [vmem:[%s9918_s8 + $0x40] sm:$0xf]  ;;  %v7504_v45 = vld [vmem:[%s9918_s8 + $0x4c] sm:$0xf0] }
 0x402   :  { %v7723_v57 = vpop.eup %7722 }
 0x403   :  { %v3178_v15 = vmul.f32 %v7723_v57, %v3172_v9  ;;  %v7668_v9 = vld [vmem:[%s9921_s11] ss:$0 sm:$0xff]  ;;  %v6626_v57 = vor.u32 %v7517_v41, %v6625_v46  ;;  %3871 = vmatpush.bf16.msrb.mxu1 %v6622_v39  ;;  %v7502_v46 = vld [vmem:[%s9918_s8 + $0x44] sm:$0xf]  ;;  %v6570_v39 = vor.u32 %v7504_v45, %v6569_v42  ;;  %v6571_v41 = vld [vmem:[%s9918_s8 + $0x50] sm:$0xf0] }
 0x404   :  { %3651 = vmatpush.bf16.msra.mxu3 %v7488_v36  ;;  %v6594_v36 = vor.u32 %v7509_v35, %v6593_v31  ;;  %v6539_v31 = vld [vmem:[%s9918_s8 + $0x10] sm:$0xf0]  ;;  %v6611_v45 = vld [vmem:[%s9918_s8 + $0x98] sm:$0xf0] }
 0x405   :  { %v3179_v14 = vpack.c.bf16 %v3178_v15, %v3178_v15 }
 0x407   :  { %3256 = vmatmul.bf16.vlgmr.msrb.gmra.mxu2 %v3179_v14  ;;  %3466 = vmatmul.bf16.vlgmr.msrb.gmra.mxu3 %v3179_v14 }
 0x408   :  { %3479 = vmatmul.bf16.vlgmr.msra.gmra.mxu0 %v3179_v14  ;;  %3492 = vmatmul.bf16.vlgmr.msra.gmra.mxu1 %v3179_v14 }
 0x409   :  { %3882 = vmatpush.bf16.msrb.mxu2 %v6658_v24  ;;  %3872 = vmatpush.bf16.msrb.mxu1 %v6606_v1  ;;  %v7486_v24 = vld [vmem:[#allocation7] sm:$0xff] }
 0x40a   :  { %v7498_v1 = vld [vmem:[%s9918_s8 + $0x24] sm:$0xf] }
 0x40d   :  { %3883 = vmatpush.bf16.msrb.mxu2 %v6642_v13  ;;  %v6590_v13 = vor.u32 %v7506_v26, %v6587_v30  ;;  %v7496_v26 = vld [vmem:[%s9918_s8 + $0xc] sm:$0xf0]  ;;  %v7494_v30 = vld [vmem:[%s9918_s8 + $0x4] sm:$0xf] }
 0x40f   :  { %3873 = vmatpush.bf16.msrb.mxu1 %v6590_v13 }
 0x411   :  { %3884 = vmatpush.bf16.msrb.mxu2 %v6626_v57 }
 0x415   :  { %3885 = vmatpush.bf16.msrb.mxu2 %v6610_v22  ;;  %v6561_v22 = vld [vmem:[%s9918_s8 + $0x28] sm:$0xf] }
 0x417   :  { %3505 = vmatmul.bf16.vlgmr.msra.gmra.mxu2 %v3179_v14  ;;  %v7487_v14 = vld [vmem:[#allocation7 + $0x8] sm:$0xff] }
 0x418   :  { %3652 = vmatpush.bf16.msra.mxu3 %v7487_v14  ;;  %v6574_v14 = vor.u32 %v7502_v46, %v6571_v41 }
 0x419   :  { %3886 = vmatpush.bf16.msrb.mxu2 %v6594_v36  ;;  %v6542_v36 = vor.u32 %v7494_v30, %v6539_v31 }
 0x41a   :  { %3874 = vmatpush.bf16.msrb.mxu1 %v6574_v14 }
 0x41c   :  { %3653 = vmatpush.bf16.msra.mxu3 %v7486_v24  ;;  %v7501_v24 = vld [vmem:[%s9918_s8 + $0x34] sm:$0xf0] }
 0x420   :  { %3895 = vmatpush.bf16.msrb.mxu3 %v6662_v37 }
 0x485   :  { %v3480_v29 = vpop.f32.mrf.mxu0  ;;  %v9055_v40 = vpop.f32.mrf.mxu1 }
 0x486   :  { %v3511_v55 = vadd.f32 %v3480_v29, %v8315_v62  ;;  %v7512_v62 = vld [vmem:[%s9918_s8 + $0x8c] sm:$0xf0] }
 0x487   :  { %v6602_v50 = vor.u32 %v7512_v62, %v6601_v59  ;;  %v7505_v59 = vld [vmem:[%s9918_s8 + $0x54] sm:$0xf0]  ;;  %v7519_v62 = vld [vmem:[%s9918_s8 + $0xcc] sm:$0xf] }
 0x488   :  { %v6501_v15 = vmul.f32 -1.442695, %v3511_v55 }
 0x489   :  { %3859 = vmatpush.bf16.msrb.mxu0 %v6602_v50  ;;  %v7500_v50 = vld [vmem:[%s9918_s8 + $0x2c] sm:$0xf0] }
 0x48a   :  { %7724 = vpow2.f32 %v6501_v15  ;;  %v3257_v23 = vpop.f32.mrf.mxu2  ;;  %v3467_v34 = vpop.f32.mrf.mxu3 }
 0x48b   :  { %v3258_v52 = vadd.f32 %v7668_v9, %v3257_v23  ;;  %v3510_v19 = vadd.f32 %v3467_v34, %v8312_v61  ;;  %v6586_v61 = vor.u32 %v7508_v25, %v6585_v48  ;;  %v6577_v9 = vld [vmem:[%s9918_s8 + $0x48] sm:$0xf]  ;;  %v6646_v34 = vor.u32 %v7519_v62, %v6643_v51 }
 0x48c   :  { %v6578_v23 = vor.u32 %v7505_v59, %v6577_v9  ;;  %v6562_v25 = vor.u32 %v7501_v24, %v6561_v22  ;;  %v3512_v51 = vadd.f32 %v9055_v40, %v8322_v2 }
 0x48d   :  { %3261 = vst [vmem:[%s9922_s12 + $0x10] sm:$0xff] %v3258_v52  ;;  %v6500_v58 = vmul.f32 -1.442695, %v3510_v19  ;;  %v3482_v53 = vpop.f32.mrf.mxu0  ;;  %v3495_v8 = vpop.f32.mrf.mxu1  ;;  %3860 = vmatpush.bf16.msrb.mxu0 %v6586_v61  ;;  %v6554_v52 = vor.u32 %v7500_v50, %v6553_v49  ;;  %v6558_v19 = vor.u32 %v7498_v1, %v6555_v18  ;;  %3896 = vmatpush.bf16.msrb.mxu3 %v6646_v34  ;;  %v6537_v61 = vld [vmem:[%s9918_s8] sm:$0xf] }
 0x48e   :  { %3887 = vmatpush.bf16.msrb.mxu2 %v6578_v23  ;;  %v6627_v53 = vld [vmem:[%s9918_s8 + $0xb8] sm:$0xf0]  ;;  %v6538_v13 = vor.u32 %v7496_v26, %v6537_v61  ;;  %v7503_v23 = vld [vmem:[%s9918_s8 + $0x4c] sm:$0xf] }
 0x48f   :  { %7726 = vpow2.f32 %v6500_v58  ;;  %v7515_v58 = vld [vmem:[%s9918_s8 + $0xac] sm:$0xf]  ;;  %3875 = vmatpush.bf16.msrb.mxu1 %v6558_v19  ;;  %v6579_v34 = vld [vmem:[%s9918_s8 + $0x58] sm:$0xf0] }
 0x490   :  { %v7725_v29 = vpop.eup %7724  ;;  %v6630_v8 = vor.u32 %v7515_v58, %v6627_v53  ;;  %v6582_v19 = vor.u32 %v7503_v23, %v6579_v34  ;;  %v6563_v58 = vld [vmem:[%s9918_s8 + $0x38] sm:$0xf0]  ;;  %v7532_v34 = vld [vmem:[#allocation7 + $0x30] sm:$0xff] }
 0x491   :  { %v9128_v55 = vadd.f32 1.0, %v7725_v29  ;;  %3861 = vmatpush.bf16.msrb.mxu0 %v6570_v39  ;;  %v7511_v29 = vld [vmem:[%s9918_s8 + $0x8c] sm:$0xf]  ;;  %v6546_v39 = vor.u32 %v7497_v12, %v6545_v47  ;;  %v6547_v47 = vld [vmem:[%s9918_s8 + $0x18] sm:$0xf0] }
 0x492   :  { %v3259_v57 = vpop.f32.mrf.mxu2  ;;  %v3469_v15 = vpop.f32.mrf.mxu3  ;;  %3888 = vmatpush.bf16.msrb.mxu2 %v6562_v25  ;;  %3897 = vmatpush.bf16.msrb.mxu3 %v6630_v8  ;;  %v6614_v41 = vor.u32 %v7511_v29, %v6611_v45  ;;  %v7533_v23 = vld [vmem:[#allocation7 + $0x38] sm:$0xff] }
 0x493   :  { %7728 = vrcp.f32 %v9128_v55  ;;  %v7507_v57 = vld [vmem:[%s9918_s8 + $0x6c] sm:$0xf]  ;;  %v6595_v15 = vld [vmem:[%s9918_s8 + $0x78] sm:$0xf0]  ;;  %3876 = vmatpush.bf16.msrb.mxu1 %v6542_v36  ;;  %v3548_v1 = vand.u32 2147483648, %v9128_v55  ;;  %vm3542_vm12 = vweird.f32 %v9128_v55 }
 0x494   :  { %v3546_v2 = vand.u32 2147483647, %v9128_v55  ;;  %v7495_v36 = vld [vmem:[%s9918_s8 + $0xc] sm:$0xf] }
 0x495   :  { %v7727_v60 = vpop.eup %7726  ;;  %3862 = vmatpush.bf16.msrb.mxu0 %v6554_v52  ;;  %v3549_v53 = vor.u32 1.1754944e-38, %v3548_v1  ;;  %v7530_v1 = vld [vmem:[#allocation7 + $0x20] sm:$0xff] }
 0x496   :  { %v9164_v48 = vadd.f32 1.0, %v7727_v60  ;;  %3889 = vmatpush.bf16.msrb.mxu2 %v6546_v39  ;;  %3898 = vmatpush.bf16.msrb.mxu3 %v6614_v41  ;;  %vm3547_vm15 = vcmp.eq.f32.partialorder %v3546_v2, 8.507059e+37  ;;  %v6812_v2 = vld [vmem:[%s9918_s8 + $0xe0] sm:$0xf] }
 0x498   :  { %7730 = vrcp.f32 %v9164_v48  ;;  %v3529_v60 = vand.u32 2147483648, %v9164_v48  ;;  %v3527_v25 = vand.u32 2147483647, %v9164_v48  ;;  %vm3523_vm0 = vweird.f32 %v9164_v48 }
 0x499   :  { %v7729_v35 = vpop.eup %7728  ;;  %3863 = vmatpush.bf16.msrb.mxu0 %v6538_v13 }
 0x49a   :  { %v3538_v37 = vmul.f32 %v7729_v35, %v9128_v55  ;;  %v3506_v42 = vpop.f32.mrf.mxu2  ;;  %vm3543_vm11 = vweird.f32 %v7729_v35  ;;  %v7499_v55 = vld [vmem:[%s9918_s8 + $0x2c] sm:$0xf]  ;;  %v3530_v30 = vor.u32 1.1754944e-38, %v3529_v60  ;;  %vm3528_vm2 = vcmp.eq.f32.partialorder %v3527_v25, 8.507059e+37  ;;  %v7562_v60 = vld [vmem:[%s9918_s8 + $0xe4] sm:$0xf] }
 0x49b   :  { %v3513_v46 = vadd.f32 %v3506_v42, %v8325_v3  ;;  %v6598_v3 = vor.u32 %v7507_v57, %v6595_v15  ;;  %vm9217_vm13 = vmor %vm3542_vm12, %vm3543_vm11  ;;  %v6550_v42 = vor.u32 %v7495_v36, %v6547_v47  ;;  %v1973_v47 = vadd.f32 %v8329_v5, %v8305_v56  ;;  %v6782_v56 = vld [vmem:[%s9918_s8 + $0xb0] sm:$0xf0]  ;;  %v6788_v5 = vld [vmem:[%s9918_s8 + $0xa8] sm:$0xf] }
 0x49c   :  { %v3539_v9 = vsub.f32 1.0, %v3538_v37 }
 0x49d   :  { %v6502_v14 = vmul.f32 -1.442695, %v3513_v46  ;;  %3899 = vmatpush.bf16.msrb.mxu3 %v6598_v3  ;;  %4044 = vmatpush.bf16.msra.mxu0 %v7533_v23 }
 0x49e   :  { %v7731_v59 = vpop.eup %7730  ;;  %v3540_v62 = vmul.f32 %v7729_v35, %v3539_v9 }
 0x49f   :  { %v3519_v49 = vmul.f32 %v7731_v59, %v9164_v48  ;;  %7732 = vpow2.f32 %v6502_v14  ;;  %vm3524_vm14 = vweird.f32 %v7731_v59 }
 0x4a0   :  { %v3541_v50 = vadd.f32 %v7729_v35, %v3540_v62  ;;  %7734 = vtanh.f32 %v3512_v51  ;;  %vm3525_vm1 = vmor %vm3523_vm0, %vm3524_vm14 }
 0x4a1   :  { %v3520_v40 = vsub.f32 1.0, %v3519_v49  ;;  %3900 = vmatpush.bf16.msrb.mxu3 %v6582_v19  ;;  %4045 = vmatpush.bf16.msra.mxu0 %v7532_v34  ;;  %v6820_v19 = vld [vmem:[%s9918_s8 + $0xe8] sm:$0xf] }
 0x4a2   :  { %v3508_v52 = vpop.f32.mrf.mxu2  ;;  %v3545_v22 = vsel %vm9217_vm13, %v7729_v35, %v3541_v50  ;;  %v6566_v35 = vor.u32 %v7499_v55, %v6563_v58  ;;  %v7531_v50 = vld [vmem:[#allocation7 + $0x28] sm:$0xff]  ;;  %v7529_v55 = vld [vmem:[#allocation7 + $0x18] sm:$0xff]  ;;  %v6796_v58 = vld [vmem:[%s9918_s8 + $0xc0] sm:$0xf] }
 0x4a3   :  { %v3521_v24 = vmul.f32 %v7731_v59, %v3520_v40  ;;  %v3550_v26 = vsel %vm3547_vm15, %v3549_v53, %v3545_v22  ;;  %v7564_v40 = vld [vmem:[%s9918_s8 + $0xec] sm:$0xf0]  ;;  %v6814_v52 = vld [vmem:[%s9918_s8 + $0xf0] sm:$0xf0] }
 0x4a4   :  { %v3572_v48 = vmul.f32 %v3550_v26, %v9010_v44  ;;  %v6813_v18 = vor.u32 %v7564_v40, %v6812_v2  ;;  %v6817_v22 = vor.u32 %v7562_v60, %v6814_v52  ;;  %v7560_v53 = vld [vmem:[%s9918_s8 + $0xcc] sm:$0xf0]  ;;  %v6798_v26 = vld [vmem:[%s9918_s8 + $0xd0] sm:$0xf0]  ;;  %v7553_v2 = vld [vmem:[%s9918_s8 + $0x94] sm:$0xf0] }
 0x4a5   :  { %v7733_v8 = vpop.eup %7732  ;;  %v3522_v61 = vadd.f32 %v7731_v59, %v3521_v24  ;;  %3901 = vmatpush.bf16.msrb.mxu3 %v6566_v35  ;;  %4046 = vmatpush.bf16.msra.mxu0 %v7531_v50  ;;  %v7565_v24 = vld [vmem:[%s9918_s8 + $0xf4] sm:$0xf0] }
 0x4a6   :  { %v3556_v31 = vadd.f32 1.0, %v7733_v8  ;;  %v7735_v12 = vpop.eup %7734  ;;  %4254 = vmatpush.bf16.msra.mxu1 %v6813_v18  ;;  %v6821_v25 = vor.u32 %v7565_v24, %v6820_v19  ;;  %4267 = vmatpush.bf16.msra.mxu2 %v6817_v22  ;;  %v6797_v8 = vor.u32 %v7560_v53, %v6796_v58  ;;  %v7561_v35 = vld [vmem:[%s9918_s8 + $0xd4] sm:$0xf0]  ;;  %v7526_v19 = vld [vmem:[#allocation7] sm:$0xff]  ;;  %v7548_v24 = vld [vmem:[%s9918_s8 + $0x6c] sm:$0xf0] }
 0x4a7   :  { %v3526_v13 = vsel %vm3525_vm1, %v7731_v59, %v3522_v61  ;;  %v7558_v61 = vld [vmem:[%s9918_s8 + $0xc4] sm:$0xf]  ;;  %v6748_v22 = vld [vmem:[%s9918_s8 + $0x60] sm:$0xf]  ;;  %v6750_v53 = vld [vmem:[%s9918_s8 + $0x70] sm:$0xf0] }
 0x4a8   :  { %v3531_v29 = vsel %vm3528_vm2, %v3530_v30, %v3526_v13  ;;  %7736 = vrcp.f32 %v3556_v31  ;;  %v3568_v9 = vand.u32 2147483648, %v3556_v31  ;;  %v3566_v15 = vand.u32 2147483647, %v3556_v31  ;;  %v6804_v30 = vld [vmem:[%s9918_s8 + $0xc8] sm:$0xf] }
 0x4a9   :  { %v3573_v37 = vmul.f32 %v7735_v12, %v3531_v29  ;;  %3902 = vmatpush.bf16.msrb.mxu3 %v6550_v42  ;;  %vm3562_vm4 = vweird.f32 %v3556_v31  ;;  %4047 = vmatpush.bf16.msra.mxu0 %v7530_v1  ;;  %v1945_v13 = vadd.f32 %v8327_v4, %v8303_v54  ;;  %v6805_v36 = vor.u32 %v7561_v35, %v6804_v30  ;;  %v7528_v29 = vld [vmem:[#allocation7 + $0x10] sm:$0xff]  ;;  %v7554_v4 = vld [vmem:[%s9918_s8 + $0xa4] sm:$0xf]  ;;  %v6772_v1 = vld [vmem:[%s9918_s8 + $0x88] sm:$0xf] }
 0x4aa   :  { %v3569_v59 = vor.u32 1.1754944e-38, %v3568_v9  ;;  %vm3567_vm6 = vcmp.eq.f32.partialorder %v3566_v15, 8.507059e+37  ;;  %4255 = vmatpush.bf16.msra.mxu1 %v6797_v8  ;;  %v7557_v9 = vld [vmem:[%s9918_s8 + $0xb4] sm:$0xf0]  ;;  %v7669_v15 = vld [vmem:[%s9921_s11] ss:$0 sm:$0xff]  ;;  %v6773_v60 = vor.u32 %v7553_v2, %v6772_v1 }
 0x4ab   :  { %v9239_v45 = vadd.f32 %v3573_v37, %v3572_v48  ;;  %v6780_v48 = vld [vmem:[%s9918_s8 + $0xa0] sm:$0xf]  ;;  %v7556_v37 = vld [vmem:[%s9918_s8 + $0xac] sm:$0xf0]  ;;  %v7546_v58 = vld [vmem:[%s9918_s8 + $0x64] sm:$0xf] }
 0x4ac   :  { %v6781_v54 = vor.u32 %v7556_v37, %v6780_v48  ;;  %v6753_v8 = vor.u32 %v7546_v58, %v6750_v53  ;;  %v7563_v30 = vld [vmem:[%s9918_s8 + $0xec] sm:$0xf]  ;;  %v7544_v48 = vld [vmem:[%s9918_s8 + $0x4c] sm:$0xf0]  ;;  %v6790_v1 = vld [vmem:[%s9918_s8 + $0xb8] sm:$0xf0] }
 0x4ad   :  { %7738 = vtanh.f32 %v9239_v45  ;;  %4048 = vmatpush.bf16.msra.mxu0 %v7529_v55  ;;  %v6749_v55 = vor.u32 %v7548_v24, %v6748_v22  ;;  %v2029_v24 = vadd.f32 %v8333_v7, %v8319_v0  ;;  %v6702_v58 = vld [vmem:[%s9918_s8 + $0x10] sm:$0xf0]  ;;  %v6708_v53 = vld [vmem:[%s9918_s8 + $0x8] sm:$0xf] }
 0x4ae   :  { %v7737_v46 = vpop.eup %7736  ;;  %4256 = vmatpush.bf16.msra.mxu1 %v6781_v54  ;;  %v6734_v54 = vld [vmem:[%s9918_s8 + $0x50] sm:$0xf0] }
 0x4af   :  { %v3558_v39 = vmul.f32 %v7737_v46, %v3556_v31  ;;  %vm3563_vm3 = vweird.f32 %v7737_v46  ;;  %v6801_v31 = vor.u32 %v7558_v61, %v6798_v26  ;;  %v6756_v61 = vld [vmem:[%s9918_s8 + $0x68] sm:$0xf]  ;;  %v7549_v26 = vld [vmem:[%s9918_s8 + $0x74] sm:$0xf0] }
 0x4b0   :  { %vm3564_vm5 = vmor %vm3562_vm4, %vm3563_vm3  ;;  %v6757_v35 = vor.u32 %v7549_v26, %v6756_v61 }
 0x4b1   :  { %v3559_v41 = vsub.f32 1.0, %v3558_v39  ;;  %4268 = vmatpush.bf16.msra.mxu2 %v6801_v31  ;;  %4049 = vmatpush.bf16.msra.mxu0 %v7528_v29  ;;  %v6732_v29 = vld [vmem:[%s9918_s8 + $0x40] sm:$0xf] }
 0x4b3   :  { %v3560_v57 = vmul.f32 %v7737_v46, %v3559_v41  ;;  %v7739_v62 = vpop.eup %7738  ;;  %v6785_v41 = vor.u32 %v7554_v4, %v6782_v56  ;;  %v6740_v56 = vld [vmem:[%s9918_s8 + $0x48] sm:$0xf] }
 0x4b5   :  { %v3561_v14 = vadd.f32 %v7737_v46, %v3560_v57  ;;  %4269 = vmatpush.bf16.msra.mxu2 %v6785_v41 }
 0x4b7   :  { %v3565_v44 = vsel %vm3564_vm5, %v7737_v46, %v3561_v14  ;;  %v6789_v14 = vor.u32 %v7557_v9, %v6788_v5 }
 0x4b8   :  { %v3570_v51 = vsel %vm3567_vm6, %v3569_v59, %v3565_v44  ;;  %v7527_v44 = vld [vmem:[#allocation7 + $0x8] sm:$0xff] }
 0x4b9   :  { %v3576_v3 = vmul.f32 %v7739_v62, %v3570_v51  ;;  %v6764_v62 = vld [vmem:[%s9918_s8 + $0x80] sm:$0xf]  ;;  %v7552_v51 = vld [vmem:[%s9918_s8 + $0x8c] sm:$0xf0]  ;;  %4050 = vmatpush.bf16.msra.mxu0 %v7527_v44 }
 0x4ba   :  { %v6765_v34 = vor.u32 %v7552_v51, %v6764_v62  ;;  %v6716_v44 = vld [vmem:[%s9918_s8 + $0x20] sm:$0xf]  ;;  %v7540_v62 = vld [vmem:[%s9918_s8 + $0x2c] sm:$0xf0] }
 0x4bb   :  { %v3577_v49 = vpack.c.bf16 %v3576_v3, %v3576_v3  ;;  %v7550_v3 = vld [vmem:[%s9918_s8 + $0x84] sm:$0xf]  ;;  %v6717_v51 = vor.u32 %v7540_v62, %v6716_v44 }
 0x4bc   :  { %4257 = vmatpush.bf16.msra.mxu1 %v6765_v34  ;;  %v7541_v34 = vld [vmem:[%s9918_s8 + $0x34] sm:$0xf0] }
 0x4bd   :  { %3654 = vmatmul.bf16.vlgmr.msra.gmra.mxu3 %v3577_v49  ;;  %3864 = vmatmul.bf16.vlgmr.msrb.gmra.mxu0 %v3577_v49 }
 0x4be   :  { %3877 = vmatmul.bf16.vlgmr.msrb.gmra.mxu1 %v3577_v49  ;;  %3890 = vmatmul.bf16.vlgmr.msrb.gmra.mxu2 %v3577_v49 }
 0x4bf   :  { %4280 = vmatpush.bf16.msra.mxu3 %v6821_v25  ;;  %4051 = vmatpush.bf16.msra.mxu0 %v7526_v19  ;;  %v7534_v19 = vld [vmem:[%s9918_s8 + $0x4] sm:$0xf] }
 0x4c0   :  { %4258 = vmatpush.bf16.msra.mxu1 %v6749_v55  ;;  %v6705_v0 = vor.u32 %v7534_v19, %v6702_v58 }
 0x4c3   :  { %4281 = vmatpush.bf16.msra.mxu3 %v6805_v36 }
 0x4c7   :  { %4282 = vmatpush.bf16.msra.mxu3 %v6789_v14  ;;  %v2001_v14 = vadd.f32 %v8331_v6, %v8317_v63  ;;  %v6718_v63 = vld [vmem:[%s9918_s8 + $0x30] sm:$0xf0]  ;;  %v6724_v6 = vld [vmem:[%s9918_s8 + $0x28] sm:$0xf] }
 0x4cb   :  { %4283 = vmatpush.bf16.msra.mxu3 %v6773_v60 }
 0x4cd   :  { %3903 = vmatmul.bf16.vlgmr.msrb.gmra.mxu3 %v3577_v49  ;;  %v6766_v49 = vld [vmem:[%s9918_s8 + $0x90] sm:$0xf0] }
 0x4ce   :  { %v6769_v50 = vor.u32 %v7550_v3, %v6766_v49  ;;  %v7538_v3 = vld [vmem:[%s9918_s8 + $0x24] sm:$0xf] }
 0x4cf   :  { %4284 = vmatpush.bf16.msra.mxu3 %v6757_v35 }
 0x4d0   :  { %4270 = vmatpush.bf16.msra.mxu2 %v6769_v50  ;;  %v7555_v50 = vld [vmem:[%s9918_s8 + $0xac] sm:$0xf] }
 0x4d1   :  { %v6793_v60 = vor.u32 %v7555_v50, %v6790_v1  ;;  %v6726_v50 = vld [vmem:[%s9918_s8 + $0x38] sm:$0xf0] }
 0x4d4   :  { %4271 = vmatpush.bf16.msra.mxu2 %v6753_v8  ;;  %v7537_v8 = vld [vmem:[%s9918_s8 + $0x14] sm:$0xf0] }
 0x4d5   :  { %v6709_v7 = vor.u32 %v7537_v8, %v6708_v53 }
 0x53a   :  { %v3865_v12 = vpop.f32.mrf.mxu0 }
 0x53b   :  { %v3908_v42 = vadd.f32 %v3865_v12, %v1945_v13  ;;  %v3878_v46 = vpop.f32.mrf.mxu1  ;;  %v6822_v13 = vld [vmem:[%s9918_s8 + $0xf8] sm:$0xf0] }
 0x53c   :  { %v3909_v39 = vadd.f32 %v3878_v46, %v1973_v47  ;;  %v6825_v12 = vor.u32 %v7563_v30, %v6822_v13  ;;  %v7542_v46 = vld [vmem:[%s9918_s8 + $0x44] sm:$0xf]  ;;  %v7551_v30 = vld [vmem:[%s9918_s8 + $0x8c] sm:$0xf] }
 0x53d   :  { %v6663_v57 = vmul.f32 -1.442695, %v3908_v42  ;;  %v6733_v42 = vor.u32 %v7544_v48, %v6732_v29  ;;  %v6737_v41 = vor.u32 %v7542_v46, %v6734_v54 }
 0x53e   :  { %v6664_v59 = vmul.f32 -1.442695, %v3909_v39  ;;  %4293 = vmatpush.bf16.msrb.mxu0 %v6825_v12  ;;  %v7545_v39 = vld [vmem:[%s9918_s8 + $0x54] sm:$0xf0] }
 0x53f   :  { %7740 = vpow2.f32 %v6663_v57  ;;  %4259 = vmatpush.bf16.msra.mxu1 %v6733_v42  ;;  %v6741_v9 = vor.u32 %v7545_v39, %v6740_v56  ;;  %v7559_v57 = vld [vmem:[%s9918_s8 + $0xcc] sm:$0xf]  ;;  %4272 = vmatpush.bf16.msra.mxu2 %v6737_v41  ;;  %v6758_v56 = vld [vmem:[%s9918_s8 + $0x78] sm:$0xf0] }
 0x540   :  { %7742 = vpow2.f32 %v6664_v59  ;;  %v3655_v23 = vpop.f32.mrf.mxu3 }
 0x541   :  { %v3656_v40 = vadd.f32 %v7669_v15, %v3655_v23  ;;  %v3891_v18 = vpop.f32.mrf.mxu2  ;;  %v6806_v15 = vld [vmem:[%s9918_s8 + $0xd8] sm:$0xf0]  ;;  %4285 = vmatpush.bf16.msra.mxu3 %v6741_v9  ;;  %v6721_v23 = vor.u32 %v7538_v3, %v6718_v63 }
 0x542   :  { %v3867_v52 = vpop.f32.mrf.mxu0  ;;  %v6809_v59 = vor.u32 %v7559_v57, %v6806_v15  ;;  %v3910_v49 = vadd.f32 %v3891_v18, %v2001_v14  ;;  %v6700_v18 = vld [vmem:[%s9918_s8] sm:$0xf]  ;;  %v7543_v14 = vld [vmem:[%s9918_s8 + $0x4c] sm:$0xf] }
 0x543   :  { %3659 = vst [vmem:[%s9922_s12 + $0x18] sm:$0xff] %v3656_v40  ;;  %v3880_v25 = vpop.f32.mrf.mxu1  ;;  %4260 = vmatpush.bf16.msra.mxu1 %v6717_v51  ;;  %v6725_v40 = vor.u32 %v7541_v34, %v6724_v6  ;;  %v7536_v52 = vld [vmem:[%s9918_s8 + $0xc] sm:$0xf0]  ;;  %4273 = vmatpush.bf16.msra.mxu2 %v6721_v23  ;;  %v7539_v34 = vld [vmem:[%s9918_s8 + $0x2c] sm:$0xf] }
 0x544   :  { %4294 = vmatpush.bf16.msrb.mxu0 %v6809_v59  ;;  %v6701_v55 = vor.u32 %v7536_v52, %v6700_v18  ;;  %v6742_v59 = vld [vmem:[%s9918_s8 + $0x58] sm:$0xf0]  ;;  %v7535_v18 = vld [vmem:[%s9918_s8 + $0xc] sm:$0xf] }
 0x545   :  { %v7741_v31 = vpop.eup %7740  ;;  %4286 = vmatpush.bf16.msra.mxu3 %v6725_v40 }
 0x546   :  { %v7743_v36 = vpop.eup %7742  ;;  %v9348_v47 = vadd.f32 1.0, %v7741_v31  ;;  %v6774_v31 = vld [vmem:[%s9918_s8 + $0x98] sm:$0xf0] }
 0x547   :  { %v9356_v37 = vadd.f32 1.0, %v7743_v36  ;;  %v6777_v36 = vor.u32 %v7551_v30, %v6774_v31  ;;  %4261 = vmatpush.bf16.msra.mxu1 %v6701_v55  ;;  %4274 = vmatpush.bf16.msra.mxu2 %v6705_v0  ;;  %v7573_v31 = vld [vmem:[#allocation7 + $0x38] sm:$0xff] }
 0x548   :  { %7744 = vrcp.f32 %v9348_v47  ;;  %v3657_v4 = vpop.f32.mrf.mxu3  ;;  %4295 = vmatpush.bf16.msrb.mxu0 %v6793_v60  ;;  %v3925_v48 = vand.u32 2147483647, %v9348_v47  ;;  %v3927_v42 = vand.u32 2147483648, %v9348_v47  ;;  %vm3921_vm9 = vweird.f32 %v9348_v47 }
 0x549   :  { %7746 = vrcp.f32 %v9356_v37  ;;  %v3893_v5 = vpop.f32.mrf.mxu2  ;;  %v3946_v29 = vand.u32 2147483648, %v9356_v37  ;;  %v7547_v4 = vld [vmem:[%s9918_s8 + $0x6c] sm:$0xf]  ;;  %v3944_v39 = vand.u32 2147483647, %v9356_v37  ;;  %4287 = vmatpush.bf16.msra.mxu3 %v6709_v7  ;;  %vm3940_vm10 = vweird.f32 %v9356_v37 }
 0x54a   :  { %7748 = vtanh.f32 %v3910_v49  ;;  %v6761_v9 = vor.u32 %v7547_v4, %v6758_v56  ;;  %v3928_v57 = vor.u32 1.1754944e-38, %v3927_v42  ;;  %vm3926_vm13 = vcmp.eq.f32.partialorder %v3925_v48, 8.507059e+37  ;;  %v7602_v42 = vld [vmem:[%s9918_s8 + $0xe4] sm:$0xf]  ;;  %v7605_v56 = vld [vmem:[%s9918_s8 + $0xf4] sm:$0xf0] }
 0x54b   :  { %vm3945_vm14 = vcmp.eq.f32.partialorder %v3944_v39, 8.507059e+37  ;;  %v6745_v49 = vor.u32 %v7543_v14, %v6742_v59  ;;  %v6729_v60 = vor.u32 %v7539_v34, %v6726_v50  ;;  %4442 = vmatpush.bf16.msrb.mxu1 %v7573_v31  ;;  %v7569_v39 = vld [vmem:[#allocation7 + $0x18] sm:$0xff]  ;;  %v6961_v14 = vld [vmem:[%s9918_s8 + $0xd0] sm:$0xf0]  ;;  %v6967_v59 = vld [vmem:[%s9918_s8 + $0xc8] sm:$0xf] }
 0x54c   :  { %4296 = vmatpush.bf16.msrb.mxu0 %v6777_v36  ;;  %v7570_v36 = vld [vmem:[#allocation7 + $0x20] sm:$0xff]  ;;  %v6951_v34 = vld [vmem:[%s9918_s8 + $0xa8] sm:$0xf] }
 0x54e   :  { %v7745_v2 = vpop.eup %7744 }
 0x54f   :  { %v7747_v22 = vpop.eup %7746  ;;  %v3917_v25 = vmul.f32 %v7745_v2, %v9348_v47  ;;  %vm3922_vm7 = vweird.f32 %v7745_v2  ;;  %v3947_v47 = vor.u32 1.1754944e-38, %v3946_v29  ;;  %v7604_v29 = vld [vmem:[%s9918_s8 + $0xec] sm:$0xf0] }
 0x550   :  { %v3936_v61 = vmul.f32 %v7747_v22, %v9356_v37  ;;  %v3904_v26 = vpop.f32.mrf.mxu3  ;;  %vm3941_vm8 = vweird.f32 %v7747_v22  ;;  %vm3923_vm11 = vmor %vm3921_vm9, %vm3922_vm7  ;;  %v7749_v44 = vpop.eup %7748  ;;  %4297 = vmatpush.bf16.msrb.mxu0 %v6761_v9  ;;  %v7600_v9 = vld [vmem:[%s9918_s8 + $0xcc] sm:$0xf0] }
 0x551   :  { %v3918_v35 = vsub.f32 1.0, %v3917_v25  ;;  %v3911_v13 = vadd.f32 %v3904_v26, %v2029_v24  ;;  %vm3942_vm12 = vmor %vm3940_vm10, %vm3941_vm8 }
 0x552   :  { %v3937_v12 = vsub.f32 1.0, %v3936_v61 }
 0x553   :  { %v3919_v46 = vmul.f32 %v7745_v2, %v3918_v35  ;;  %v6665_v54 = vmul.f32 -1.442695, %v3911_v13  ;;  %v7572_v35 = vld [vmem:[#allocation7 + $0x30] sm:$0xff]  ;;  %v7571_v13 = vld [vmem:[#allocation7 + $0x28] sm:$0xff] }
 0x554   :  { %v3938_v5 = vmul.f32 %v7747_v22, %v3937_v12  ;;  %4298 = vmatpush.bf16.msrb.mxu0 %v6745_v49  ;;  %4443 = vmatpush.bf16.msrb.mxu1 %v7572_v35  ;;  %v6975_v12 = vld [vmem:[%s9918_s8 + $0xe0] sm:$0xf]  ;;  %v7594_v49 = vld [vmem:[%s9918_s8 + $0xa4] sm:$0xf] }
 0x555   :  { %v3920_v41 = vadd.f32 %v7745_v2, %v3919_v46  ;;  %7750 = vpow2.f32 %v6665_v54  ;;  %v6976_v48 = vor.u32 %v7604_v29, %v6975_v12  ;;  %v6977_v46 = vld [vmem:[%s9918_s8 + $0xf0] sm:$0xf0]  ;;  %v6983_v54 = vld [vmem:[%s9918_s8 + $0xe8] sm:$0xf]  ;;  %v7586_v35 = vld [vmem:[%s9918_s8 + $0x64] sm:$0xf] }
 0x556   :  { %v3939_v15 = vadd.f32 %v7747_v22, %v3938_v5  ;;  %v6980_v4 = vor.u32 %v7602_v42, %v6977_v46  ;;  %v6984_v5 = vor.u32 %v7605_v56, %v6983_v54  ;;  %v7589_v29 = vld [vmem:[%s9918_s8 + $0x74] sm:$0xf0]  ;;  %v6985_v42 = vld [vmem:[%s9918_s8 + $0xf8] sm:$0xf0] }
 0x557   :  { %v3924_v62 = vsel %vm3923_vm11, %v7745_v2, %v3920_v41  ;;  %4652 = vmatpush.bf16.msrb.mxu2 %v6976_v48  ;;  %v6959_v41 = vld [vmem:[%s9918_s8 + $0xc0] sm:$0xf]  ;;  %v7603_v48 = vld [vmem:[%s9918_s8 + $0xec] sm:$0xf] }
 0x558   :  { %v3929_v51 = vsel %vm3926_vm13, %v3928_v57, %v3924_v62  ;;  %v3943_v37 = vsel %vm3942_vm12, %v7747_v22, %v3939_v15  ;;  %v3906_v3 = vpop.f32.mrf.mxu3  ;;  %4299 = vmatpush.bf16.msrb.mxu0 %v6729_v60  ;;  %4444 = vmatpush.bf16.msrb.mxu1 %v7571_v13  ;;  %v6960_v57 = vor.u32 %v7600_v9, %v6959_v41  ;;  %v7598_v15 = vld [vmem:[%s9918_s8 + $0xc4] sm:$0xf]  ;;  %v7670_v62 = vld [vmem:[%s9921_s11] ss:$0 sm:$0xff]  ;;  %v6913_v13 = vld [vmem:[%s9918_s8 + $0x70] sm:$0xf0] }
 0x559   :  { %v3948_v63 = vsel %vm3945_vm14, %v3947_v47, %v3943_v37  ;;  %v3971_v6 = vmul.f32 %v7749_v44, %v3929_v51  ;;  %4665 = vmatpush.bf16.msrb.mxu3 %v6980_v4  ;;  %v6964_v44 = vor.u32 %v7598_v15, %v6961_v14  ;;  %v7601_v47 = vld [vmem:[%s9918_s8 + $0xd4] sm:$0xf0]  ;;  %v7568_v37 = vld [vmem:[#allocation7 + $0x10] sm:$0xff]  ;;  %v6943_v3 = vld [vmem:[%s9918_s8 + $0xa0] sm:$0xf]  ;;  %v6916_v12 = vor.u32 %v7586_v35, %v6913_v13 }
 0x55a   :  { %v3970_v23 = vmul.f32 %v3948_v63, %v9239_v45  ;;  %v6710_v45 = vld [vmem:[%s9918_s8 + $0x18] sm:$0xf0]  ;;  %v6968_v51 = vor.u32 %v7601_v47, %v6967_v59  ;;  %v7596_v63 = vld [vmem:[%s9918_s8 + $0xac] sm:$0xf0]  ;;  %v6988_v56 = vor.u32 %v7603_v48, %v6985_v42  ;;  %v6895_v9 = vld [vmem:[%s9918_s8 + $0x40] sm:$0xf] }
 0x55b   :  { %v7751_v1 = vpop.eup %7750  ;;  %v6713_v52 = vor.u32 %v7535_v18, %v6710_v45  ;;  %4653 = vmatpush.bf16.msrb.mxu2 %v6960_v57  ;;  %v7567_v45 = vld [vmem:[#allocation7 + $0x8] sm:$0xff]  ;;  %v7584_v57 = vld [vmem:[%s9918_s8 + $0x4c] sm:$0xf0]  ;;  %v7582_v15 = vld [vmem:[%s9918_s8 + $0x44] sm:$0xf] }
 0x55c   :  { %v9459_v2 = vadd.f32 %v3971_v6, %v3970_v23  ;;  %v3954_v40 = vadd.f32 1.0, %v7751_v1  ;;  %4445 = vmatpush.bf16.msrb.mxu1 %v7570_v36  ;;  %v6944_v6 = vor.u32 %v7596_v63, %v6943_v3  ;;  %v6945_v23 = vld [vmem:[%s9918_s8 + $0xb0] sm:$0xf0]  ;;  %v7597_v1 = vld [vmem:[%s9918_s8 + $0xb4] sm:$0xf0]  ;;  %v6896_v14 = vor.u32 %v7584_v57, %v6895_v9 }
 0x55d   :  { %4300 = vmatpush.bf16.msrb.mxu0 %v6713_v52  ;;  %4666 = vmatpush.bf16.msrb.mxu3 %v6964_v44  ;;  %v6948_v50 = vor.u32 %v7594_v49, %v6945_v23  ;;  %v6927_v52 = vld [vmem:[%s9918_s8 + $0x80] sm:$0xf]  ;;  %v6919_v36 = vld [vmem:[%s9918_s8 + $0x68] sm:$0xf]  ;;  %v7585_v44 = vld [vmem:[%s9918_s8 + $0x54] sm:$0xf0] }
 0x55e   :  { %7752 = vrcp.f32 %v3954_v40  ;;  %v3966_v25 = vand.u32 2147483648, %v3954_v40  ;;  %v3964_v58 = vand.u32 2147483647, %v3954_v40  ;;  %vm3960_vm0 = vweird.f32 %v3954_v40  ;;  %v6903_v59 = vld [vmem:[%s9918_s8 + $0x48] sm:$0xf] }
 0x55f   :  { %7754 = vtanh.f32 %v9459_v2  ;;  %4654 = vmatpush.bf16.msrb.mxu2 %v6944_v6  ;;  %v6920_v4 = vor.u32 %v7589_v29, %v6919_v36  ;;  %v6969_v3 = vld [vmem:[%s9918_s8 + $0xd8] sm:$0xf0]  ;;  %v6879_v49 = vld [vmem:[%s9918_s8 + $0x20] sm:$0xf]  ;;  %v7580_v23 = vld [vmem:[%s9918_s8 + $0x2c] sm:$0xf0] }
 0x560   :  { %v3967_v8 = vor.u32 1.1754944e-38, %v3966_v25  ;;  %vm3965_vm2 = vcmp.eq.f32.partialorder %v3964_v58, 8.507059e+37  ;;  %4446 = vmatpush.bf16.msrb.mxu1 %v7569_v39  ;;  %v6929_v58 = vld [vmem:[%s9918_s8 + $0x90] sm:$0xf0]  ;;  %v7591_v13 = vld [vmem:[%s9918_s8 + $0x8c] sm:$0xf] }
 0x561   :  { %4667 = vmatpush.bf16.msrb.mxu3 %v6948_v50  ;;  %v6937_v36 = vld [vmem:[%s9918_s8 + $0x98] sm:$0xf0] }
 0x562   :  { %v6940_v29 = vor.u32 %v7591_v13, %v6937_v36 }
 0x564   :  { %v7753_v19 = vpop.eup %7752  ;;  %4447 = vmatpush.bf16.msrb.mxu1 %v7568_v37  ;;  %v7599_v37 = vld [vmem:[%s9918_s8 + $0xcc] sm:$0xf] }
 0x565   :  { %v3956_v22 = vmul.f32 %v7753_v19, %v3954_v40  ;;  %vm3961_vm15 = vweird.f32 %v7753_v19  ;;  %v7755_v26 = vpop.eup %7754  ;;  %v6952_v40 = vor.u32 %v7597_v1, %v6951_v34  ;;  %v6972_v6 = vor.u32 %v7599_v37, %v6969_v3  ;;  %v7578_v34 = vld [vmem:[%s9918_s8 + $0x24] sm:$0xf] }
 0x566   :  { %vm3962_vm1 = vmor %vm3960_vm0, %vm3961_vm15  ;;  %v6880_v1 = vor.u32 %v7580_v23, %v6879_v49 }
 0x567   :  { %v3957_v24 = vsub.f32 1.0, %v3956_v22 }
 0x568   :  { %4448 = vmatpush.bf16.msrb.mxu1 %v7567_v45  ;;  %v7581_v45 = vld [vmem:[%s9918_s8 + $0x34] sm:$0xf0] }
 0x569   :  { %v3958_v55 = vmul.f32 %v7753_v19, %v3957_v24 }
 0x56b   :  { %v3959_v53 = vadd.f32 %v7753_v19, %v3958_v55  ;;  %v7590_v55 = vld [vmem:[%s9918_s8 + $0x84] sm:$0xf] }
 0x56d   :  { %v3963_v61 = vsel %vm3962_vm1, %v7753_v19, %v3959_v53  ;;  %v7592_v19 = vld [vmem:[%s9918_s8 + $0x8c] sm:$0xf0]  ;;  %v6935_v53 = vld [vmem:[%s9918_s8 + $0x88] sm:$0xf] }
 0x56e   :  { %v3968_v0 = vsel %vm3965_vm2, %v3967_v8, %v3963_v61  ;;  %v6928_v25 = vor.u32 %v7592_v19, %v6927_v52  ;;  %v6932_v8 = vor.u32 %v7590_v55, %v6929_v58  ;;  %v7595_v52 = vld [vmem:[%s9918_s8 + $0xac] sm:$0xf]  ;;  %v6953_v19 = vld [vmem:[%s9918_s8 + $0xb8] sm:$0xf0] }
 0x56f   :  { %v3974_v7 = vmul.f32 %v7755_v26, %v3968_v0  ;;  %v7566_v0 = vld [vmem:[#allocation7] sm:$0xff]  ;;  %v6956_v58 = vor.u32 %v7595_v52, %v6953_v19 }
 0x570   :  { %4655 = vmatpush.bf16.msrb.mxu2 %v6928_v25  ;;  %4668 = vmatpush.bf16.msrb.mxu3 %v6932_v8  ;;  %v7574_v8 = vld [vmem:[%s9918_s8 + $0x4] sm:$0xf] }
 0x571   :  { %v3975_v30 = vpack.c.bf16 %v3974_v7, %v3974_v7  ;;  %v6911_v7 = vld [vmem:[%s9918_s8 + $0x60] sm:$0xf]  ;;  %4449 = vmatpush.bf16.msrb.mxu1 %v7566_v0 }
 0x573   :  { %4052 = vmatmul.bf16.vlgmr.msra.gmra.mxu0 %v3975_v30  ;;  %4262 = vmatmul.bf16.vlgmr.msra.gmra.mxu1 %v3975_v30 }
 0x574   :  { %4275 = vmatmul.bf16.vlgmr.msra.gmra.mxu2 %v3975_v30  ;;  %4288 = vmatmul.bf16.vlgmr.msra.gmra.mxu3 %v3975_v30 }
 0x575   :  { %4678 = vmatpush.bf16.msra.mxu0 %v6984_v5  ;;  %4669 = vmatpush.bf16.msrb.mxu3 %v6916_v12 }
 0x576   :  { %4691 = vmatpush.bf16.msra.mxu1 %v6988_v56  ;;  %v6921_v56 = vld [vmem:[%s9918_s8 + $0x78] sm:$0xf0] }
 0x579   :  { %4679 = vmatpush.bf16.msra.mxu0 %v6968_v51  ;;  %v6904_v51 = vor.u32 %v7585_v44, %v6903_v59  ;;  %v7579_v59 = vld [vmem:[%s9918_s8 + $0x2c] sm:$0xf]  ;;  %v6889_v44 = vld [vmem:[%s9918_s8 + $0x38] sm:$0xf0] }
 0x57a   :  { %4692 = vmatpush.bf16.msra.mxu1 %v6972_v6  ;;  %v6892_v49 = vor.u32 %v7579_v59, %v6889_v44  ;;  %v7638_v59 = vld [vmem:[%s9918_s8 + $0xc4] sm:$0xf]  ;;  %v7124_v44 = vld [vmem:[%s9918_s8 + $0xd0] sm:$0xf0] }
 0x57d   :  { %4680 = vmatpush.bf16.msra.mxu0 %v6952_v40  ;;  %v6881_v40 = vld [vmem:[%s9918_s8 + $0x30] sm:$0xf0] }
 0x57e   :  { %4693 = vmatpush.bf16.msra.mxu1 %v6956_v58 }
 0x582   :  { %4694 = vmatpush.bf16.msra.mxu1 %v6940_v29  ;;  %v7613_v29 = vld [vmem:[#allocation7 + $0x38] sm:$0xff] }
 0x583   :  { %4301 = vmatmul.bf16.vlgmr.msrb.gmra.mxu0 %v3975_v30  ;;  %v7588_v30 = vld [vmem:[%s9918_s8 + $0x6c] sm:$0xf0] }
 0x584   :  { %v6912_v31 = vor.u32 %v7588_v30, %v6911_v7  ;;  %v6871_v7 = vld [vmem:[%s9918_s8 + $0x8] sm:$0xf]  ;;  %v7577_v30 = vld [vmem:[%s9918_s8 + $0x14] sm:$0xf0] }
 0x585   :  { %v6872_v35 = vor.u32 %v7577_v30, %v6871_v7 }
 0x586   :  { %4656 = vmatpush.bf16.msrb.mxu2 %v6912_v31 }
 0x58a   :  { %4657 = vmatpush.bf16.msrb.mxu2 %v6896_v14 }
 0x58e   :  { %4658 = vmatpush.bf16.msrb.mxu2 %v6880_v1 }
 0x5f0   :  { %v4053_v60 = vpop.f32.mrf.mxu0  ;;  %v4263_v18 = vpop.f32.mrf.mxu1 }
 0x5f1   :  { %v4054_v22 = vadd.f32 %v7670_v62, %v4053_v60  ;;  %v4306_v24 = vadd.f32 %v4263_v18, %v8336_v10  ;;  %v7593_v10 = vld [vmem:[%s9918_s8 + $0x94] sm:$0xf0]  ;;  %v6887_v60 = vld [vmem:[%s9918_s8 + $0x28] sm:$0xf]  ;;  %v6884_v18 = vor.u32 %v7578_v34, %v6881_v40  ;;  %v7575_v40 = vld [vmem:[%s9918_s8 + $0xc] sm:$0xf] }
 0x5f2   :  { %v6936_v26 = vor.u32 %v7593_v10, %v6935_v53  ;;  %v6888_v55 = vor.u32 %v7581_v45, %v6887_v60  ;;  %v7576_v53 = vld [vmem:[%s9918_s8 + $0xc] sm:$0xf0]  ;;  %v6865_v10 = vld [vmem:[%s9918_s8 + $0x10] sm:$0xf0] }
 0x5f3   :  { %4057 = vst [vmem:[%s9922_s12 + $0x20] sm:$0xff] %v4054_v22  ;;  %v6826_v61 = vmul.f32 -1.442695, %v4306_v24  ;;  %v6863_v22 = vld [vmem:[%s9918_s8] sm:$0xf]  ;;  %v6868_v0 = vor.u32 %v7574_v8, %v6865_v10 }
 0x5f4   :  { %4681 = vmatpush.bf16.msra.mxu0 %v6936_v26  ;;  %v6864_v26 = vor.u32 %v7576_v53, %v6863_v22 }
 0x5f5   :  { %7756 = vpow2.f32 %v6826_v61 }
 0x5f6   :  { %4659 = vmatpush.bf16.msrb.mxu2 %v6864_v26 }
 0x5f7   :  { %v4276_v46 = vpop.f32.mrf.mxu2  ;;  %v9571_v54 = vpop.f32.mrf.mxu3 }
 0x5f8   :  { %v4307_v5 = vadd.f32 %v4276_v46, %v8339_v11  ;;  %v4055_v39 = vpop.f32.mrf.mxu0  ;;  %v4265_v41 = vpop.f32.mrf.mxu1  ;;  %4682 = vmatpush.bf16.msra.mxu0 %v6920_v4  ;;  %v6897_v11 = vld [vmem:[%s9918_s8 + $0x50] sm:$0xf0]  ;;  %v7587_v4 = vld [vmem:[%s9918_s8 + $0x6c] sm:$0xf] }
 0x5f9   :  { %v6900_v62 = vor.u32 %v7582_v15, %v6897_v11  ;;  %v6924_v39 = vor.u32 %v7587_v4, %v6921_v56  ;;  %v7644_v4 = vld [vmem:[%s9918_s8 + $0xec] sm:$0xf0] }
 0x5fa   :  { %v6827_v47 = vmul.f32 -1.442695, %v4307_v5  ;;  %4840 = vmatpush.bf16.msra.mxu2 %v7613_v29 }
 0x5fb   :  { %v7757_v63 = vpop.eup %7756  ;;  %4670 = vmatpush.bf16.msrb.mxu3 %v6900_v62  ;;  %4695 = vmatpush.bf16.msra.mxu1 %v6924_v39  ;;  %v7140_v39 = vld [vmem:[%s9918_s8 + $0xf0] sm:$0xf0] }
 0x5fc   :  { %v9607_v50 = vadd.f32 1.0, %v7757_v63  ;;  %7758 = vpow2.f32 %v6827_v47  ;;  %4683 = vmatpush.bf16.msra.mxu0 %v6904_v51 }
 0x5fe   :  { %7760 = vrcp.f32 %v9607_v50  ;;  %v4325_v9 = vand.u32 2147483648, %v9607_v50  ;;  %v4323_v14 = vand.u32 2147483647, %v9607_v50  ;;  %vm4319_vm4 = vweird.f32 %v9607_v50 }
 0x5ff   :  { %v4278_v24 = vpop.f32.mrf.mxu2  ;;  %v4291_v25 = vpop.f32.mrf.mxu3  ;;  %4671 = vmatpush.bf16.msrb.mxu3 %v6884_v18 }
 0x600   :  { %v4302_v61 = vpop.f32.mrf.mxu0  ;;  %4684 = vmatpush.bf16.msra.mxu0 %v6888_v55  ;;  %v4326_v3 = vor.u32 1.1754944e-38, %v4325_v9  ;;  %vm4324_vm6 = vcmp.eq.f32.partialorder %v4323_v14, 8.507059e+37  ;;  %v7640_v14 = vld [vmem:[%s9918_s8 + $0xcc] sm:$0xf0] }
 0x601   :  { %v4309_v31 = vadd.f32 %v4302_v61, %v8345_v17  ;;  %v4308_v17 = vadd.f32 %v9571_v54, %v8342_v16  ;;  %v7583_v16 = vld [vmem:[%s9918_s8 + $0x4c] sm:$0xf]  ;;  %v6905_v54 = vld [vmem:[%s9918_s8 + $0x58] sm:$0xf0] }
 0x602   :  { %v7759_v12 = vpop.eup %7758  ;;  %v6908_v11 = vor.u32 %v7583_v16, %v6905_v54  ;;  %v7146_v16 = vld [vmem:[%s9918_s8 + $0xe8] sm:$0xf] }
 0x603   :  { %v4332_v48 = vadd.f32 1.0, %v7759_v12  ;;  %v6828_v42 = vmul.f32 -1.442695, %v4309_v31  ;;  %4672 = vmatpush.bf16.msrb.mxu3 %v6868_v0 }
 0x604   :  { %v7761_v46 = vpop.eup %7760  ;;  %4685 = vmatpush.bf16.msra.mxu0 %v6872_v35  ;;  %4696 = vmatpush.bf16.msra.mxu1 %v6908_v11 }
 0x605   :  { %v4315_v5 = vmul.f32 %v7761_v46, %v9607_v50  ;;  %7762 = vrcp.f32 %v4332_v48  ;;  %vm4320_vm3 = vweird.f32 %v7761_v46  ;;  %v6873_v50 = vld [vmem:[%s9918_s8 + $0x18] sm:$0xf0]  ;;  %v4344_v60 = vand.u32 2147483648, %v4332_v48 }
 0x606   :  { %7764 = vpow2.f32 %v6828_v42  ;;  %vm4321_vm5 = vmor %vm4319_vm4, %vm4320_vm3  ;;  %v4342_v52 = vand.u32 2147483647, %v4332_v48  ;;  %v6876_v19 = vor.u32 %v7575_v40, %v6873_v50  ;;  %vm4338_vm8 = vweird.f32 %v4332_v48  ;;  %v7611_v42 = vld [vmem:[#allocation7 + $0x28] sm:$0xff] }
 0x607   :  { %v4316_v41 = vsub.f32 1.0, %v4315_v5  ;;  %7766 = vtanh.f32 %v4308_v17  ;;  %v4345_v24 = vor.u32 1.1754944e-38, %v4344_v60  ;;  %v7138_v17 = vld [vmem:[%s9918_s8 + $0xe0] sm:$0xf]  ;;  %v7642_v5 = vld [vmem:[%s9918_s8 + $0xe4] sm:$0xf] }
 0x608   :  { %v4304_v57 = vpop.f32.mrf.mxu0  ;;  %4697 = vmatpush.bf16.msra.mxu1 %v6892_v49  ;;  %vm4343_vm10 = vcmp.eq.f32.partialorder %v4342_v52, 8.507059e+37  ;;  %v7139_v56 = vor.u32 %v7644_v4, %v7138_v17  ;;  %v7143_v54 = vor.u32 %v7642_v5, %v7140_v39  ;;  %v7636_v49 = vld [vmem:[%s9918_s8 + $0xac] sm:$0xf0]  ;;  %v7114_v40 = vld [vmem:[%s9918_s8 + $0xa8] sm:$0xf] }
 0x609   :  { %v4317_v15 = vmul.f32 %v7761_v46, %v4316_v41  ;;  %v7645_v41 = vld [vmem:[%s9918_s8 + $0xf4] sm:$0xf0]  ;;  %v7607_v52 = vld [vmem:[#allocation7 + $0x8] sm:$0xff] }
 0x60a   :  { %5050 = vmatpush.bf16.msra.mxu3 %v7139_v56  ;;  %v7147_v9 = vor.u32 %v7645_v41, %v7146_v16  ;;  %5063 = vmatpush.bf16.msrb.mxu0 %v7143_v54  ;;  %v7609_v57 = vld [vmem:[#allocation7 + $0x18] sm:$0xff]  ;;  %v7058_v54 = vld [vmem:[%s9918_s8 + $0x40] sm:$0xf]  ;;  %v7624_v41 = vld [vmem:[%s9918_s8 + $0x4c] sm:$0xf0] }
 0x60b   :  { %v7763_v47 = vpop.eup %7762  ;;  %v4318_v62 = vadd.f32 %v7761_v46, %v4317_v15  ;;  %v7122_v15 = vld [vmem:[%s9918_s8 + $0xc0] sm:$0xf]  ;;  %v7637_v60 = vld [vmem:[%s9918_s8 + $0xb4] sm:$0xf0] }
 0x60c   :  { %v7765_v51 = vpop.eup %7764  ;;  %v4334_v37 = vmul.f32 %v7763_v47, %v4332_v48  ;;  %vm4339_vm7 = vweird.f32 %v7763_v47  ;;  %4698 = vmatpush.bf16.msra.mxu1 %v6876_v19  ;;  %v7612_v48 = vld [vmem:[#allocation7 + $0x30] sm:$0xff]  ;;  %v7123_v11 = vor.u32 %v7640_v14, %v7122_v15  ;;  %v7090_v19 = vld [vmem:[%s9918_s8 + $0x80] sm:$0xf]  ;;  %v7059_v15 = vor.u32 %v7624_v41, %v7058_v54  ;;  %v7066_v14 = vld [vmem:[%s9918_s8 + $0x48] sm:$0xf] }
 0x60d   :  { %v4322_v63 = vsel %vm4321_vm5, %v7761_v46, %v4318_v62  ;;  %v4352_v6 = vadd.f32 1.0, %v7765_v51  ;;  %v7767_v23 = vpop.eup %7766  ;;  %vm4340_vm9 = vmor %vm4338_vm8, %vm4339_vm7  ;;  %4841 = vmatpush.bf16.msra.mxu2 %v7612_v48  ;;  %v7610_v46 = vld [vmem:[#allocation7 + $0x20] sm:$0xff]  ;;  %v7127_v62 = vor.u32 %v7638_v59, %v7124_v44  ;;  %v7641_v51 = vld [vmem:[%s9918_s8 + $0xd4] sm:$0xf0] }
 0x60e   :  { %v4335_v34 = vsub.f32 1.0, %v4334_v37  ;;  %v4327_v1 = vsel %vm4324_vm6, %v4326_v3, %v4322_v63  ;;  %v7671_v37 = vld [vmem:[%s9921_s11] ss:$0 sm:$0xff]  ;;  %5051 = vmatpush.bf16.msra.mxu3 %v7123_v11  ;;  %v7608_v63 = vld [vmem:[#allocation7 + $0x10] sm:$0xff]  ;;  %v7629_v48 = vld [vmem:[%s9918_s8 + $0x74] sm:$0xf0] }
 0x60f   :  { %v4369_v18 = vmul.f32 %v7767_v23, %v4327_v1  ;;  %7768 = vrcp.f32 %v4352_v6  ;;  %v4364_v26 = vand.u32 2147483648, %v4352_v6  ;;  %v4362_v7 = vand.u32 2147483647, %v4352_v6  ;;  %5064 = vmatpush.bf16.msrb.mxu0 %v7127_v62  ;;  %v7108_v1 = vld [vmem:[%s9918_s8 + $0xb0] sm:$0xf0] }
 0x610   :  { %v4336_v45 = vmul.f32 %v7763_v47, %v4335_v34  ;;  %vm4358_vm12 = vweird.f32 %v4352_v6  ;;  %v7634_v34 = vld [vmem:[%s9918_s8 + $0xa4] sm:$0xf]  ;;  %v7625_v44 = vld [vmem:[%s9918_s8 + $0x54] sm:$0xf0] }
 0x611   :  { %v4365_v31 = vor.u32 1.1754944e-38, %v4364_v26  ;;  %vm4363_vm14 = vcmp.eq.f32.partialorder %v4362_v7, 8.507059e+37  ;;  %4842 = vmatpush.bf16.msra.mxu2 %v7611_v42  ;;  %v7111_v50 = vor.u32 %v7634_v34, %v7108_v1  ;;  %v7633_v26 = vld [vmem:[%s9918_s8 + $0x94] sm:$0xf0]  ;;  %v7606_v7 = vld [vmem:[#allocation7] sm:$0xff]  ;;  %v7067_v62 = vor.u32 %v7625_v44, %v7066_v14 }
 0x612   :  { %v4337_v22 = vadd.f32 %v7763_v47, %v4336_v45  ;;  %v7643_v42 = vld [vmem:[%s9918_s8 + $0xec] sm:$0xf]  ;;  %v7050_v34 = vld [vmem:[%s9918_s8 + $0x28] sm:$0xf] }
 0x613   :  { %5065 = vmatpush.bf16.msrb.mxu0 %v7111_v50  ;;  %v7635_v50 = vld [vmem:[%s9918_s8 + $0xac] sm:$0xf] }
 0x614   :  { %v4341_v25 = vsel %vm4340_vm9, %v7763_v47, %v4337_v22  ;;  %v7130_v47 = vld [vmem:[%s9918_s8 + $0xc8] sm:$0xf]  ;;  %v7632_v22 = vld [vmem:[%s9918_s8 + $0x8c] sm:$0xf0] }
 0x615   :  { %v7769_v55 = vpop.eup %7768  ;;  %v4346_v58 = vsel %vm4343_vm10, %v4345_v24, %v4341_v25  ;;  %4843 = vmatpush.bf16.msra.mxu2 %v7610_v46  ;;  %v7131_v3 = vor.u32 %v7641_v51, %v7130_v47  ;;  %v7148_v46 = vld [vmem:[%s9918_s8 + $0xf8] sm:$0xf0]  ;;  %v7639_v47 = vld [vmem:[%s9918_s8 + $0xcc] sm:$0xf] }
 0x616   :  { %v4368_v53 = vmul.f32 %v4346_v58, %v9459_v2  ;;  %v4354_v8 = vmul.f32 %v7769_v55, %v4352_v6  ;;  %vm4359_vm11 = vweird.f32 %v7769_v55  ;;  %v7106_v6 = vld [vmem:[%s9918_s8 + $0xa0] sm:$0xf]  ;;  %v7630_v58 = vld [vmem:[%s9918_s8 + $0x84] sm:$0xf]  ;;  %v7151_v5 = vor.u32 %v7643_v42, %v7148_v46  ;;  %v7132_v51 = vld [vmem:[%s9918_s8 + $0xd8] sm:$0xf0] }
 0x617   :  { %vm4360_vm13 = vmor %vm4358_vm12, %vm4359_vm11  ;;  %v7107_v23 = vor.u32 %v7636_v49, %v7106_v6  ;;  %v7618_v49 = vld [vmem:[%s9918_s8 + $0x24] sm:$0xf]  ;;  %v7627_v42 = vld [vmem:[%s9918_s8 + $0x6c] sm:$0xf] }
 0x618   :  { %v9681_v10 = vadd.f32 %v4369_v18, %v4368_v53  ;;  %v4355_v61 = vsub.f32 1.0, %v4354_v8  ;;  %v7115_v18 = vor.u32 %v7637_v60, %v7114_v40  ;;  %v7092_v53 = vld [vmem:[%s9918_s8 + $0x90] sm:$0xf0]  ;;  %v7098_v8 = vld [vmem:[%s9918_s8 + $0x88] sm:$0xf] }
 0x619   :  { %4844 = vmatpush.bf16.msra.mxu2 %v7609_v57  ;;  %5052 = vmatpush.bf16.msra.mxu3 %v7107_v23  ;;  %v7044_v23 = vld [vmem:[%s9918_s8 + $0x30] sm:$0xf0]  ;;  %v7621_v40 = vld [vmem:[%s9918_s8 + $0x34] sm:$0xf0]  ;;  %v7116_v60 = vld [vmem:[%s9918_s8 + $0xb8] sm:$0xf0] }
 0x61a   :  { %7770 = vtanh.f32 %v9681_v10  ;;  %v4356_v0 = vmul.f32 %v7769_v55, %v4355_v61  ;;  %v7095_v61 = vor.u32 %v7630_v58, %v7092_v53  ;;  %v7047_v1 = vor.u32 %v7618_v49, %v7044_v23  ;;  %v7028_v53 = vld [vmem:[%s9918_s8 + $0x10] sm:$0xf0] }
 0x61c   :  { %v4357_v30 = vadd.f32 %v7769_v55, %v4356_v0  ;;  %v7099_v0 = vor.u32 %v7633_v26, %v7098_v8  ;;  %5066 = vmatpush.bf16.msrb.mxu0 %v7095_v61  ;;  %v7034_v8 = vld [vmem:[%s9918_s8 + $0x8] sm:$0xf]  ;;  %v7617_v61 = vld [vmem:[%s9918_s8 + $0x14] sm:$0xf0] }
 0x61d   :  { %4845 = vmatpush.bf16.msra.mxu2 %v7608_v63  ;;  %v7135_v63 = vor.u32 %v7639_v47, %v7132_v51  ;;  %v7036_v51 = vld [vmem:[%s9918_s8 + $0x18] sm:$0xf0] }
 0x61e   :  { %v4361_v35 = vsel %vm4360_vm13, %v7769_v55, %v4357_v30  ;;  %v7091_v55 = vor.u32 %v7632_v22, %v7090_v19  ;;  %v7074_v30 = vld [vmem:[%s9918_s8 + $0x60] sm:$0xf]  ;;  %v7616_v22 = vld [vmem:[%s9918_s8 + $0xc] sm:$0xf0] }
 0x61f   :  { %v4366_v13 = vsel %vm4363_vm14, %v4365_v31, %v4361_v35  ;;  %v7628_v31 = vld [vmem:[%s9918_s8 + $0x6c] sm:$0xf0]  ;;  %v7026_v19 = vld [vmem:[%s9918_s8] sm:$0xf] }
 0x620   :  { %v7771_v36 = vpop.eup %7770  ;;  %5053 = vmatpush.bf16.msra.mxu3 %v7091_v55  ;;  %v7075_v35 = vor.u32 %v7628_v31, %v7074_v30  ;;  %v7027_v58 = vor.u32 %v7616_v22, %v7026_v19  ;;  %v7100_v30 = vld [vmem:[%s9918_s8 + $0x98] sm:$0xf0] }
 0x621   :  { %v4372_v12 = vmul.f32 %v7771_v36, %v4366_v13  ;;  %4846 = vmatpush.bf16.msra.mxu2 %v7607_v52  ;;  %v7626_v13 = vld [vmem:[%s9918_s8 + $0x64] sm:$0xf]  ;;  %v7076_v36 = vld [vmem:[%s9918_s8 + $0x70] sm:$0xf0]  ;;  %v7119_v52 = vor.u32 %v7635_v50, %v7116_v60 }
 0x622   :  { %v7079_v29 = vor.u32 %v7626_v13, %v7076_v36  ;;  %v7035_v13 = vor.u32 %v7617_v61, %v7034_v8 }
 0x623   :  { %v4373_v2 = vpack.c.bf16 %v4372_v12, %v4372_v12  ;;  %v7082_v12 = vld [vmem:[%s9918_s8 + $0x68] sm:$0xf] }
 0x624   :  { %5054 = vmatpush.bf16.msra.mxu3 %v7075_v35  ;;  %v7083_v56 = vor.u32 %v7629_v48, %v7082_v12  ;;  %5067 = vmatpush.bf16.msrb.mxu0 %v7079_v29 }
 0x625   :  { %4450 = vmatmul.bf16.vlgmr.msrb.gmra.mxu1 %v4373_v2  ;;  %4660 = vmatmul.bf16.vlgmr.msrb.gmra.mxu2 %v4373_v2 }
 0x626   :  { %4673 = vmatmul.bf16.vlgmr.msrb.gmra.mxu3 %v4373_v2  ;;  %4686 = vmatmul.bf16.vlgmr.msra.gmra.mxu0 %v4373_v2 }
 0x627   :  { %5076 = vmatpush.bf16.msrb.mxu1 %v7147_v9  ;;  %4847 = vmatpush.bf16.msra.mxu2 %v7606_v7  ;;  %v7631_v7 = vld [vmem:[%s9918_s8 + $0x8c] sm:$0xf] }
 0x628   :  { %5055 = vmatpush.bf16.msra.mxu3 %v7059_v15 }
 0x62b   :  { %5077 = vmatpush.bf16.msrb.mxu1 %v7131_v3  ;;  %5089 = vmatpush.bf16.msrb.mxu2 %v7151_v5  ;;  %v7620_v3 = vld [vmem:[%s9918_s8 + $0x2c] sm:$0xf0] }
 0x62f   :  { %5078 = vmatpush.bf16.msrb.mxu1 %v7115_v18  ;;  %5090 = vmatpush.bf16.msrb.mxu2 %v7135_v63 }
 0x633   :  { %5079 = vmatpush.bf16.msrb.mxu1 %v7099_v0  ;;  %5091 = vmatpush.bf16.msrb.mxu2 %v7119_v52 }
 0x635   :  { %4699 = vmatmul.bf16.vlgmr.msra.gmra.mxu1 %v4373_v2 }
 0x637   :  { %5080 = vmatpush.bf16.msrb.mxu1 %v7083_v56 }
 0x63b   :  { %5081 = vmatpush.bf16.msrb.mxu1 %v7067_v62  ;;  %v7615_v62 = vld [vmem:[%s9918_s8 + $0xc] sm:$0xf] }
 0x63c   :  { %v7039_v23 = vor.u32 %v7615_v62, %v7036_v51 }
 0x6a2   :  { %v4451_v45 = vpop.f32.mrf.mxu1 }
 0x6a3   :  { %v4452_v24 = vadd.f32 %v7671_v37, %v4451_v45  ;;  %v9747_v25 = vpop.f32.mrf.mxu0  ;;  %v7042_v37 = vld [vmem:[%s9918_s8 + $0x20] sm:$0xf]  ;;  %v7051_v45 = vor.u32 %v7621_v40, %v7050_v34 }
 0x6a4   :  { %v7043_v6 = vor.u32 %v7620_v3, %v7042_v37  ;;  %v4706_v5 = vadd.f32 %v9747_v25, %v8369_v32 }
 0x6a5   :  { %4455 = vst [vmem:[%s9922_s12 + $0x28] sm:$0xff] %v4452_v24  ;;  %v7614_v24 = vld [vmem:[%s9918_s8 + $0x4] sm:$0xf]  ;;  %5082 = vmatpush.bf16.msrb.mxu1 %v7051_v45 }
 0x6a6   :  { %5056 = vmatpush.bf16.msra.mxu3 %v7043_v6  ;;  %v7031_v0 = vor.u32 %v7614_v24, %v7028_v53 }
 0x6a8   :  { %v4661_v2 = vpop.f32.mrf.mxu2 }
 0x6a9   :  { %v4704_v17 = vadd.f32 %v4661_v2, %v8348_v20  ;;  %v4674_v4 = vpop.f32.mrf.mxu3  ;;  %v7622_v20 = vld [vmem:[%s9918_s8 + $0x44] sm:$0xf]  ;;  %v7103_v2 = vor.u32 %v7631_v7, %v7100_v30  ;;  %5083 = vmatpush.bf16.msrb.mxu1 %v7035_v13  ;;  %v7652_v13 = vld [vmem:[#allocation7 + $0x30] sm:$0xff] }
 0x6aa   :  { %v4705_v39 = vadd.f32 %v4674_v4, %v8351_v21  ;;  %v4453_v16 = vpop.f32.mrf.mxu1  ;;  %v7060_v21 = vld [vmem:[%s9918_s8 + $0x50] sm:$0xf0]  ;;  %5057 = vmatpush.bf16.msra.mxu3 %v7027_v58  ;;  %v7068_v4 = vld [vmem:[%s9918_s8 + $0x58] sm:$0xf0] }
 0x6ab   :  { %v6989_v9 = vmul.f32 -1.442695, %v4704_v17  ;;  %v4689_v57 = vpop.f32.mrf.mxu0  ;;  %v7063_v59 = vor.u32 %v7622_v20, %v7060_v21  ;;  %5092 = vmatpush.bf16.msrb.mxu2 %v7103_v2  ;;  %v7623_v17 = vld [vmem:[%s9918_s8 + $0x4c] sm:$0xf] }
 0x6ac   :  { %v6990_v11 = vmul.f32 -1.442695, %v4705_v39  ;;  %v7071_v16 = vor.u32 %v7623_v17, %v7068_v4  ;;  %v7619_v20 = vld [vmem:[%s9918_s8 + $0x2c] sm:$0xf] }
 0x6ad   :  { %7772 = vpow2.f32 %v6989_v9  ;;  %5068 = vmatpush.bf16.msrb.mxu0 %v7063_v59  ;;  %v7052_v9 = vld [vmem:[%s9918_s8 + $0x38] sm:$0xf0]  ;;  %v7651_v2 = vld [vmem:[#allocation7 + $0x28] sm:$0xff] }
 0x6ae   :  { %7774 = vpow2.f32 %v6990_v11  ;;  %v7055_v59 = vor.u32 %v7619_v20, %v7052_v9  ;;  %v7648_v20 = vld [vmem:[#allocation7 + $0x10] sm:$0xff] }
 0x6b0   :  { %v4663_v18 = vpop.f32.mrf.mxu2 }
 0x6b1   :  { %v4676_v55 = vpop.f32.mrf.mxu3  ;;  %5069 = vmatpush.bf16.msrb.mxu0 %v7047_v1 }
 0x6b2   :  { %v4700_v26 = vpop.f32.mrf.mxu1 }
 0x6b3   :  { %v7773_v31 = vpop.eup %7772  ;;  %v4707_v35 = vadd.f32 %v4700_v26, %v8372_v33  ;;  %v7084_v33 = vld [vmem:[%s9918_s8 + $0x78] sm:$0xf0] }
 0x6b4   :  { %v7775_v36 = vpop.eup %7774  ;;  %v4711_v12 = vadd.f32 1.0, %v7773_v31  ;;  %v7087_v46 = vor.u32 %v7627_v42, %v7084_v33  ;;  %v7650_v33 = vld [vmem:[#allocation7 + $0x20] sm:$0xff] }
 0x6b5   :  { %v4730_v29 = vadd.f32 1.0, %v7775_v36  ;;  %v6991_v48 = vmul.f32 -1.442695, %v4707_v35  ;;  %5070 = vmatpush.bf16.msrb.mxu0 %v7031_v0  ;;  %v7653_v35 = vld [vmem:[#allocation7 + $0x38] sm:$0xff] }
 0x6b6   :  { %7776 = vrcp.f32 %v4711_v12  ;;  %5093 = vmatpush.bf16.msrb.mxu2 %v7087_v46  ;;  %v4721_v11 = vand.u32 2147483647, %v4711_v12  ;;  %v4723_v32 = vand.u32 2147483648, %v4711_v12  ;;  %vm4717_vm1 = vweird.f32 %v4711_v12  ;;  %5238 = vmatpush.bf16.msrb.mxu3 %v7653_v35 }
 0x6b7   :  { %7778 = vrcp.f32 %v4730_v29  ;;  %v4742_v47 = vand.u32 2147483648, %v4730_v29  ;;  %v4740_v3 = vand.u32 2147483647, %v4730_v29  ;;  %vm4736_vm3 = vweird.f32 %v4730_v29 }
 0x6b8   :  { %7780 = vpow2.f32 %v6991_v48  ;;  %v4724_v6 = vor.u32 1.1754944e-38, %v4723_v32  ;;  %vm4722_vm4 = vcmp.eq.f32.partialorder %v4721_v11, 8.507059e+37  ;;  %v7672_v48 = vld [vmem:[%s9921_s11] ss:$0 sm:$0xff] }
 0x6b9   :  { %7782 = vtanh.f32 %v4706_v5  ;;  %v4743_v40 = vor.u32 1.1754944e-38, %v4742_v47  ;;  %vm4741_vm6 = vcmp.eq.f32.partialorder %v4740_v3, 8.507059e+37 }
 0x6ba   :  { %v4702_v56 = vpop.f32.mrf.mxu1  ;;  %5094 = vmatpush.bf16.msrb.mxu2 %v7071_v16  ;;  %5239 = vmatpush.bf16.msrb.mxu3 %v7652_v13  ;;  %v7649_v16 = vld [vmem:[#allocation7 + $0x18] sm:$0xff] }
 0x6bc   :  { %v7777_v39 = vpop.eup %7776 }
 0x6bd   :  { %v7779_v54 = vpop.eup %7778  ;;  %v4713_v41 = vmul.f32 %v7777_v39, %v4711_v12  ;;  %vm4718_vm15 = vweird.f32 %v7777_v39 }
 0x6be   :  { %v7781_v57 = vpop.eup %7780  ;;  %v4732_v15 = vmul.f32 %v7779_v54, %v4730_v29  ;;  %vm4737_vm0 = vweird.f32 %v7779_v54  ;;  %vm4719_vm2 = vmor %vm4717_vm1, %vm4718_vm15  ;;  %5095 = vmatpush.bf16.msrb.mxu2 %v7055_v59  ;;  %5240 = vmatpush.bf16.msrb.mxu3 %v7651_v2 }
 0x6bf   :  { %v4714_v21 = vsub.f32 1.0, %v4713_v41  ;;  %v4750_v14 = vadd.f32 1.0, %v7781_v57  ;;  %v7783_v34 = vpop.eup %7782  ;;  %vm4738_vm5 = vmor %vm4736_vm3, %vm4737_vm0 }
 0x6c0   :  { %v4733_v25 = vsub.f32 1.0, %v4732_v15  ;;  %v7647_v15 = vld [vmem:[#allocation7 + $0x8] sm:$0xff] }
 0x6c1   :  { %v4715_v44 = vmul.f32 %v7777_v39, %v4714_v21  ;;  %7784 = vrcp.f32 %v4750_v14  ;;  %v4762_v58 = vand.u32 2147483648, %v4750_v14  ;;  %v4760_v8 = vand.u32 2147483647, %v4750_v14 }
 0x6c2   :  { %v4734_v37 = vmul.f32 %v7779_v54, %v4733_v25  ;;  %5096 = vmatpush.bf16.msrb.mxu2 %v7039_v23  ;;  %vm4756_vm8 = vweird.f32 %v4750_v14  ;;  %5241 = vmatpush.bf16.msrb.mxu3 %v7650_v33 }
 0x6c3   :  { %v4716_v63 = vadd.f32 %v7777_v39, %v4715_v44  ;;  %v4763_v26 = vor.u32 1.1754944e-38, %v4762_v58  ;;  %vm4761_vm10 = vcmp.eq.f32.partialorder %v4760_v8, 8.507059e+37 }
 0x6c4   :  { %v4735_v49 = vadd.f32 %v7779_v54, %v4734_v37 }
 0x6c5   :  { %v4720_v1 = vsel %vm4719_vm2, %v7777_v39, %v4716_v63 }
 0x6c6   :  { %v4725_v50 = vsel %vm4722_vm4, %v4724_v6, %v4720_v1  ;;  %v4739_v60 = vsel %vm4738_vm5, %v7779_v54, %v4735_v49  ;;  %5242 = vmatpush.bf16.msrb.mxu3 %v7649_v16 }
 0x6c7   :  { %v7785_v18 = vpop.eup %7784  ;;  %v4767_v45 = vmul.f32 %v7783_v34, %v4725_v50  ;;  %v4744_v52 = vsel %vm4741_vm6, %v4743_v40, %v4739_v60 }
 0x6c8   :  { %v4766_v19 = vmul.f32 %v4744_v52, %v9681_v10  ;;  %v4752_v22 = vmul.f32 %v7785_v18, %v4750_v14  ;;  %vm4757_vm7 = vweird.f32 %v7785_v18  ;;  %v7646_v14 = vld [vmem:[#allocation7] sm:$0xff] }
 0x6c9   :  { %vm4758_vm9 = vmor %vm4756_vm8, %vm4757_vm7 }
 0x6ca   :  { %v4753_v24 = vsub.f32 1.0, %v4752_v22  ;;  %v9890_v55 = vadd.f32 %v4767_v45, %v4766_v19  ;;  %5243 = vmatpush.bf16.msrb.mxu3 %v7648_v20 }
 0x6cc   :  { %v4754_v53 = vmul.f32 %v7785_v18, %v4753_v24  ;;  %7786 = vtanh.f32 %v9890_v55 }
 0x6ce   :  { %v4755_v61 = vadd.f32 %v7785_v18, %v4754_v53  ;;  %5244 = vmatpush.bf16.msrb.mxu3 %v7647_v15 }
 0x6d0   :  { %v4759_v0 = vsel %vm4758_vm9, %v7785_v18, %v4755_v61 }
 0x6d1   :  { %v4764_v7 = vsel %vm4761_vm10, %v4763_v26, %v4759_v0 }
 0x6d2   :  { %v7787_v30 = vpop.eup %7786  ;;  %5245 = vmatpush.bf16.msrb.mxu3 %v7646_v14 }
 0x6d3   :  { %v4770_v10 = vmul.f32 %v7787_v30, %v4764_v7 }
 0x6d5   :  { %v4771_v31 = vpack.c.bf16 %v4770_v10, %v4770_v10 }
 0x6d7   :  { %4848 = vmatmul.bf16.vlgmr.msra.gmra.mxu2 %v4771_v31  ;;  %5058 = vmatmul.bf16.vlgmr.msra.gmra.mxu3 %v4771_v31 }
 0x6d8   :  { %5071 = vmatmul.bf16.vlgmr.msrb.gmra.mxu0 %v4771_v31  ;;  %5084 = vmatmul.bf16.vlgmr.msrb.gmra.mxu1 %v4771_v31 }
 0x6e7   :  { %5097 = vmatmul.bf16.vlgmr.msrb.gmra.mxu2 %v4771_v31 }
 0x755   :  { %v5072_v36 = vpop.f32.mrf.mxu0  ;;  %v5085_v12 = vpop.f32.mrf.mxu1 }
 0x756   :  { %v5103_v29 = vadd.f32 %v5072_v36, %v8381_v43  ;;  %v5104_v37 = vadd.f32 %v5085_v12, %v8422_v27 }
 0x758   :  { %v7153_v42 = vmul.f32 -1.442695, %v5103_v29 }
 0x75a   :  { %7788 = vpow2.f32 %v7153_v42  ;;  %v4849_v46 = vpop.f32.mrf.mxu2  ;;  %v5059_v17 = vpop.f32.mrf.mxu3 }
 0x75b   :  { %v4850_v4 = vadd.f32 %v7672_v48, %v4849_v46  ;;  %v5102_v56 = vadd.f32 %v5059_v17, %v8378_v38  ;;  %v7673_v48 = vld [vmem:[%s9921_s11] ss:$0 sm:$0xff] }
 0x75d   :  { %4853 = vst [vmem:[%s9922_s12 + $0x30] sm:$0xff] %v4850_v4  ;;  %v7152_v5 = vmul.f32 -1.442695, %v5102_v56  ;;  %v5074_v43 = vpop.f32.mrf.mxu0  ;;  %v5087_v39 = vpop.f32.mrf.mxu1 }
 0x75f   :  { %7790 = vpow2.f32 %v7152_v5 }
 0x760   :  { %v7789_v54 = vpop.eup %7788 }
 0x761   :  { %v5128_v41 = vadd.f32 1.0, %v7789_v54 }
 0x762   :  { %v4851_v9 = vpop.f32.mrf.mxu2  ;;  %v5061_v57 = vpop.f32.mrf.mxu3 }
 0x763   :  { %7792 = vrcp.f32 %v5128_v41  ;;  %v5140_v6 = vand.u32 2147483648, %v5128_v41  ;;  %vm5134_vm12 = vweird.f32 %v5128_v41  ;;  %v5138_v49 = vand.u32 2147483647, %v5128_v41 }
 0x765   :  { %v7791_v38 = vpop.eup %7790  ;;  %v5141_v60 = vor.u32 1.1754944e-38, %v5140_v6  ;;  %vm5139_vm15 = vcmp.eq.f32.partialorder %v5138_v49, 8.507059e+37 }
 0x766   :  { %v5109_v21 = vadd.f32 1.0, %v7791_v38 }
 0x768   :  { %7794 = vrcp.f32 %v5109_v21  ;;  %v5121_v34 = vand.u32 2147483648, %v5109_v21  ;;  %v5119_v50 = vand.u32 2147483647, %v5109_v21  ;;  %vm5115_vm0 = vweird.f32 %v5109_v21 }
 0x769   :  { %v7793_v11 = vpop.eup %7792 }
 0x76a   :  { %v5130_v32 = vmul.f32 %v7793_v11, %v5128_v41  ;;  %v5098_v25 = vpop.f32.mrf.mxu2  ;;  %vm5135_vm11 = vweird.f32 %v7793_v11  ;;  %v5122_v52 = vor.u32 1.1754944e-38, %v5121_v34  ;;  %vm5120_vm2 = vcmp.eq.f32.partialorder %v5119_v50, 8.507059e+37 }
 0x76b   :  { %v5105_v59 = vadd.f32 %v5098_v25, %v8425_v28  ;;  %vm5136_vm13 = vmor %vm5134_vm12, %vm5135_vm11 }
 0x76c   :  { %v5131_v44 = vsub.f32 1.0, %v5130_v32 }
 0x76d   :  { %v7154_v47 = vmul.f32 -1.442695, %v5105_v59 }
 0x76e   :  { %v7795_v62 = vpop.eup %7794  ;;  %v5132_v51 = vmul.f32 %v7793_v11, %v5131_v44 }
 0x76f   :  { %v5111_v3 = vmul.f32 %v7795_v62, %v5109_v21  ;;  %7796 = vpow2.f32 %v7154_v47  ;;  %vm5116_vm14 = vweird.f32 %v7795_v62 }
 0x770   :  { %v5133_v63 = vadd.f32 %v7793_v11, %v5132_v51  ;;  %7798 = vtanh.f32 %v5104_v37  ;;  %vm5117_vm1 = vmor %vm5115_vm0, %vm5116_vm14 }
 0x771   :  { %v5112_v23 = vsub.f32 1.0, %v5111_v3 }
 0x772   :  { %v5100_v1 = vpop.f32.mrf.mxu2  ;;  %v5137_v28 = vsel %vm5136_vm13, %v7793_v11, %v5133_v63 }
 0x773   :  { %v5113_v40 = vmul.f32 %v7795_v62, %v5112_v23  ;;  %v5142_v45 = vsel %vm5139_vm15, %v5141_v60, %v5137_v28 }
 0x774   :  { %v5164_v53 = vmul.f32 %v5142_v45, %v9890_v55 }
 0x775   :  { %v7797_v18 = vpop.eup %7796  ;;  %v5114_v27 = vadd.f32 %v7795_v62, %v5113_v40 }
 0x776   :  { %v5148_v19 = vadd.f32 1.0, %v7797_v18  ;;  %v7799_v24 = vpop.eup %7798 }
 0x777   :  { %v5118_v22 = vsel %vm5117_vm1, %v7795_v62, %v5114_v27 }
 0x778   :  { %v5123_v58 = vsel %vm5120_vm2, %v5122_v52, %v5118_v22  ;;  %7800 = vrcp.f32 %v5148_v19  ;;  %v5160_v30 = vand.u32 2147483648, %v5148_v19  ;;  %v5158_v31 = vand.u32 2147483647, %v5148_v19 }
 0x779   :  { %v5165_v8 = vmul.f32 %v7799_v24, %v5123_v58  ;;  %vm5154_vm4 = vweird.f32 %v5148_v19 }
 0x77a   :  { %v5161_v13 = vor.u32 1.1754944e-38, %v5160_v30  ;;  %vm5159_vm6 = vcmp.eq.f32.partialorder %v5158_v31, 8.507059e+37 }
 0x77b   :  { %v5166_v61 = vadd.f32 %v5165_v8, %v5164_v53 }
 0x77d   :  { %7802 = vtanh.f32 %v5166_v61 }
 0x77e   :  { %v7801_v26 = vpop.eup %7800 }
 0x77f   :  { %v5150_v0 = vmul.f32 %v7801_v26, %v5148_v19  ;;  %vm5155_vm3 = vweird.f32 %v7801_v26 }
 0x780   :  { %vm5156_vm5 = vmor %vm5154_vm4, %vm5155_vm3 }
 0x781   :  { %v5151_v7 = vsub.f32 1.0, %v5150_v0 }
 0x783   :  { %v5152_v10 = vmul.f32 %v7801_v26, %v5151_v7  ;;  %v7803_v12 = vpop.eup %7802 }
 0x785   :  { %v5153_v35 = vadd.f32 %v7801_v26, %v5152_v10 }
 0x787   :  { %v5157_v36 = vsel %vm5156_vm5, %v7801_v26, %v5153_v35 }
 0x788   :  { %v5162_v2 = vsel %vm5159_vm6, %v5161_v13, %v5157_v36 }
 0x789   :  { %v5168_v29 = vmul.f32 %v7803_v12, %v5162_v2 }
 0x78b   :  { %v5169_v55 = vpack.c.bf16 %v5168_v29, %v5168_v29 }
 0x78d   :  { %5246 = vmatmul.bf16.vlgmr.msrb.gmra.mxu3 %v5169_v55 }
 0x810   :  { %v5247_v42 = vpop.f32.mrf.mxu3 }
 0x811   :  { %v5248_v33 = vadd.f32 %v7673_v48, %v5247_v42 }
 0x813   :  { %5251 = vst [vmem:[%s9922_s12 + $0x38] sm:$0xff] %v5248_v33 }
 0x818   :  { %v5249_v46 = vpop.f32.mrf.mxu3 }
 0x819   :  { %5256 = vsyncpa [#allocation4], 1 }
 0x81a   :  { %5257 = vsyncpa [#allocation6], 1 }

</bundles_post_ra>
